<compile_context>
chip_gen: v5e
topology: v5e:2x2
jax: 0.10.0
libtpu: 0.0.40
codegen_flags: <defaults>
</compile_context>

<pallas_src>
import numpy as np
import jax
import jax.numpy as jnp
from jax.experimental import pallas as pl
from jax.experimental.pallas import tpu as pltpu


# ------------------------------------------------------------------
# The single fused kernel: 6 GEMMs over (N, C*H*W) activations
# ------------------------------------------------------------------
def _leaky_relu(v):
    return jnp.where(v >= 0.0, v, 0.01 * v)


def _vae_kernel(x_ref, eps_ref, w512_ref, w1280_ref, whead_ref, wlin_ref,
                out_ref, mlv_ref):
    f32 = jnp.float32

    def mm(a, b):
        return jnp.dot(a, b, preferred_element_type=f32)

    # Static, tile-aligned sub-views of the packed weight buffers (zero cost).
    m1 = w512_ref[0:1024, :]          # conv1    (1024, 512)
    m3 = w512_ref[1024:1280, :]       # deconv1  (256, 512)
    m2 = w1280_ref[:, 0:256]          # conv2    (512, 256)
    m4 = w1280_ref[:, 256:1280]       # deconv2  (512, 1024)
    head_w = whead_ref[0:256, :]      # mu|log_var head      (256, 64)
    head_b = whead_ref[256:257, :]    # head bias            (1, 64)
    mu_mask = whead_ref[257:258, :]   # [1]*32 + [0]*32      (1, 64)
    lin_w2 = wlin_ref[0:64, :]        # [[lin_w],[lin_w]]    (64, 256)
    lin_b = wlin_ref[64:65, :]        # decoder linear bias  (1, 256)

    # ---------------- encoder: stride-2 convs as dense GEMMs ----------------
    x = x_ref[...]                                         # (2, 1024) = (N, C*H*W)
    a1 = _leaky_relu(mm(x, m1))                            # (2, 512)
    a2 = _leaky_relu(mm(a1, m2))                           # (2, 256) == Flatten output

    # -------- fused mu/log_var head + reparameterization + decoder Linear ----
    mlv = mm(a2, head_w) + head_b                          # (2, 64) = [mu | log_var]
    mlv_ref[...] = mlv
    # zcat = [mu | eps*exp(0.5*log_var)];  zcat @ [[W],[W]] == z @ W  (no lane slices)
    zcat = mlv * mu_mask + eps_ref[...] * jnp.exp(0.5 * mlv)
    d = mm(zcat, lin_w2) + lin_b                           # (2, 256) == view(B,16,4,4)

    # ------------- decoder: stride-2 transposed convs as dense GEMMs --------
    a4 = _leaky_relu(mm(d, m3))                            # (2, 512)
    out_ref[...] = jax.nn.sigmoid(mm(a4, m4))              # (2, 1024), lane-dense


# ------------------------------------------------------------------
# Host-side weight repacking (done once, outside jit)
# ------------------------------------------------------------------
def _conv_matrix(w, ih, iw, stride, pad=1):
    """Dense (IC*ih*iw, OC*oh*ow) matrix M so that y_flat = x_flat @ M equals
    Conv2d(k=3, stride, padding=pad, bias=False) on a row-major (N, C*H*W) layout."""
    w = np.asarray(w, dtype=np.float32)
    oc, ic, kh, kw = w.shape
    oh = (ih + 2 * pad - kh) // stride + 1
    ow = (iw + 2 * pad - kw) // stride + 1
    m = np.zeros((ic * ih * iw, oc * oh * ow), dtype=np.float32)
    for o in range(oc):
        for c in range(ic):
            for i in range(oh):
                for j in range(ow):
                    for di in range(kh):
                        for dj in range(kw):
                            r = stride * i + di - pad
                            s = stride * j + dj - pad
                            if 0 <= r < ih and 0 <= s < iw:
                                m[c * ih * iw + r * iw + s,
                                  o * oh * ow + i * ow + j] += w[o, c, di, dj]
    return m


def _deconv_matrix(w, ih, iw, stride, pad=1, out_pad=1):
    """Dense matrix for ConvTranspose2d(k=3, stride, padding=pad, output_padding=out_pad,
    bias=False), weight layout (IC, OC, kh, kw), acting on (N, C*H*W)."""
    w = np.asarray(w, dtype=np.float32)
    ic, oc, kh, kw = w.shape
    oh = (ih - 1) * stride - 2 * pad + kh + out_pad
    ow = (iw - 1) * stride - 2 * pad + kw + out_pad
    m = np.zeros((ic * ih * iw, oc * oh * ow), dtype=np.float32)
    for c in range(ic):
        for o in range(oc):
            for r in range(ih):
                for s in range(iw):
                    for di in range(kh):
                        for dj in range(kw):
                            i = stride * r + di - pad
                            j = stride * s + dj - pad
                            if 0 <= i < oh and 0 <= j < ow:
                                m[c * ih * iw + r * iw + s,
                                  o * oh * ow + i * ow + j] += w[c, o, di, dj]
    return m


def prepare_params(p):
    """Fold convs into dense matrices and pack everything into 4 VMEM buffers."""
    m1 = _conv_matrix(p["enc_w1"], 16, 16, 2)        # (1024, 512)
    m2 = _conv_matrix(p["enc_w2"], 8, 8, 2)          # (512, 256)
    m3 = _deconv_matrix(p["dec_w1"], 4, 4, 2)        # (256, 512)
    m4 = _deconv_matrix(p["dec_w2"], 8, 8, 2)        # (512, 1024)

    head_w = np.concatenate([np.asarray(p["mu_w"], np.float32).T,
                             np.asarray(p["lv_w"], np.float32).T], axis=1)   # (256, 64)
    head_b = np.concatenate([np.asarray(p["mu_b"], np.float32),
                             np.asarray(p["lv_b"], np.float32)])[None, :]    # (1, 64)
    mu_mask = np.concatenate([np.ones(32, np.float32),
                              np.zeros(32, np.float32)])[None, :]            # (1, 64)
    lin_w = np.asarray(p["lin_w"], np.float32).T                             # (32, 256)
    lin_b = np.asarray(p["lin_b"], np.float32)[None, :]                      # (1, 256)

    return {
        # lane-width-512 group: conv1 on top, deconv1 below
        "w512": jnp.asarray(np.concatenate([m1, m3], axis=0), jnp.float32),   # (1280, 512)
        # lane-width-(256|1024) group: conv2 | deconv2 side by side
        "w1280": jnp.asarray(np.concatenate([m2, m4], axis=1), jnp.float32),  # (512, 1280)
        # head weight + bias + mu-lane mask
        "whead": jnp.asarray(np.concatenate([head_w, head_b, mu_mask], axis=0),
                             jnp.float32),                                    # (258, 64)
        # duplicated decoder-linear weight + bias
        "wlin": jnp.asarray(np.concatenate(
            [np.concatenate([lin_w, lin_w], axis=0), lin_b], axis=0),
            jnp.float32),                                                     # (65, 256)
    }


# ------------------------------------------------------------------
# pallas_call wrapper
# ------------------------------------------------------------------
def _full_spec(shape):
    # Full-array block with grid=(1,): block index 0 along every dim is exact.
    nd = len(shape)
    return pl.BlockSpec(shape, lambda i, _nd=nd: (0,) * _nd)


@jax.jit
def vae_forward(x, packed, eps):
    n = x.shape[0]
    x2 = x.reshape(n, 4 * 16 * 16).astype(jnp.float32)          # (2, 1024), free reshape
    # eps aligned with the log_var lanes of mlv: [0...0 | eps]
    eps64 = jnp.concatenate([jnp.zeros_like(eps), eps], axis=1).astype(jnp.float32)

    inputs = (x2, eps64, packed["w512"], packed["w1280"],
              packed["whead"], packed["wlin"])
    out_shapes = (jax.ShapeDtypeStruct((n, 4 * 16 * 16), jnp.float32),   # image, lane-dense
                  jax.ShapeDtypeStruct((n, 64), jnp.float32))            # [mu | log_var]

    out2, mlv = pl.pallas_call(
        _vae_kernel,
        out_shape=out_shapes,
        grid=(1,),
        in_specs=[_full_spec(a.shape) for a in inputs],
        out_specs=tuple(_full_spec(s.shape) for s in out_shapes),
        compiler_params=pltpu.CompilerParams(
            dimension_semantics=("arbitrary",),
            vmem_limit_bytes=32 * 1024 * 1024),
    )(*inputs)

    mu, log_var = mlv[:, :32], mlv[:, 32:]                      # free slices in XLA
    return out2.reshape(n, 4, 16, 16), mu, log_var


# ------------------------------------------------------------------
# Plain-JAX reference (for correctness check only; runs outside the kernel)
# ------------------------------------------------------------------
def _ref_forward(x, p, eps):
    dn = ("NCHW", "OIHW", "NCHW")

    def conv(v, w, s, pad):
        return jax.lax.conv_general_dilated(v, w, (s, s), [(pad, pad)] * 2,
                                            dimension_numbers=dn)

    def deconv(v, w, s, pad, op):
        wf = jnp.flip(w, (2, 3)).transpose(1, 0, 2, 3)
        pl_, ph_ = 2 - pad, 2 - pad + op
        return jax.lax.conv_general_dilated(v, wf, (1, 1), [(pl_, ph_)] * 2,
                                            lhs_dilation=(s, s),
                                            dimension_numbers=dn)

    def lrelu(v):
        return jnp.where(v >= 0, v, 0.01 * v)

    h = lrelu(conv(x, p["enc_w1"], 2, 1))
    h = lrelu(conv(h, p["enc_w2"], 2, 1))
    flat = h.reshape(x.shape[0], -1)
    mu = flat @ p["mu_w"].T + p["mu_b"]
    lv = flat @ p["lv_w"].T + p["lv_b"]
    z = eps * jnp.exp(0.5 * lv) + mu
    d = (z @ p["lin_w"].T + p["lin_b"]).reshape(x.shape[0], 16, 4, 4)
    d = lrelu(deconv(d, p["dec_w1"], 2, 1, 1))
    out = jax.nn.sigmoid(deconv(d, p["dec_w2"], 2, 1, 1))
    return out, mu, lv


def init_params(key):
    ks = jax.random.split(key, 8)
    s = 0.1
    return {
        # encoder Conv2d weights: (OC, IC, KH, KW), bias=False
        "enc_w1": jax.random.normal(ks[0], (8, 4, 3, 3), jnp.float32) * s,
        "enc_w2": jax.random.normal(ks[1], (16, 8, 3, 3), jnp.float32) * s,
        # Linear layers (PyTorch stores weight as (out_features, in_features))
        "mu_w": jax.random.normal(ks[2], (32, 256), jnp.float32) * s,
        "mu_b": jax.random.normal(ks[3], (32,), jnp.float32) * s,
        "lv_w": jax.random.normal(ks[4], (32, 256), jnp.float32) * s,
        "lv_b": jnp.zeros((32,), jnp.float32),
        "lin_w": jax.random.normal(ks[5], (256, 32), jnp.float32) * s,
        "lin_b": jnp.zeros((256,), jnp.float32),
        # decoder ConvTranspose2d weights: (IC, OC, KH, KW), bias=False
        "dec_w1": jax.random.normal(ks[6], (16, 8, 3, 3), jnp.float32) * s,
        "dec_w2": jax.random.normal(ks[7], (8, 4, 3, 3), jnp.float32) * s,
    }


if __name__ == "__main__":
    key = jax.random.PRNGKey(0)
    k_x, k_p, k_eps = jax.random.split(key, 3)

    x = jax.random.normal(k_x, (2, 4, 16, 16), jnp.float32)           # NCHW input
    params = init_params(k_p)
    # torch.randn_like(log_var) equivalent: deterministic standard-normal noise.
    eps = jax.random.normal(k_eps, (2, 32), jnp.float32)

    packed = prepare_params(params)                                   # one-time weight repack
    out, mu, log_var = vae_forward(x, packed, eps)
    jax.block_until_ready((out, mu, log_var))

    # shape / sanity checks
    assert out.shape == (2, 4, 16, 16)
    assert mu.shape == (2, 32) and log_var.shape == (2, 32)
    assert bool(jnp.all(jnp.isfinite(out)))
    assert bool(jnp.all((out >= 0.0) & (out <= 1.0)))                 # sigmoid output

    # numerical check against a plain-JAX reference of the PyTorch module
    ref_out, ref_mu, ref_lv = _ref_forward(x, params, eps)
    assert bool(jnp.allclose(mu, ref_mu, atol=2e-4, rtol=2e-3))
    assert bool(jnp.allclose(log_var, ref_lv, atol=2e-4, rtol=2e-3))
    assert bool(jnp.allclose(out, ref_out, atol=2e-4, rtol=2e-3))

    print("KERNEL_OK")
</pallas_src>

<mosaic_0001>
module attributes {stable_mosaic.version = 11 : i64} {
  func.func @_vae_kernel(%arg0: i32, %arg1: memref<2x1024xf32, #tpu.memory_space<vmem>>, %arg2: memref<2x64xf32, #tpu.memory_space<vmem>>, %arg3: memref<1280x512xf32, #tpu.memory_space<vmem>>, %arg4: memref<512x1280xf32, #tpu.memory_space<vmem>>, %arg5: memref<258x64xf32, #tpu.memory_space<vmem>>, %arg6: memref<65x256xf32, #tpu.memory_space<vmem>>, %arg7: memref<2x1024xf32, #tpu.memory_space<vmem>>, %arg8: memref<2x64xf32, #tpu.memory_space<vmem>>) attributes {dimension_semantics = [#tpu.dimension_semantics<arbitrary>], iteration_bounds = array<i64: 1>, scalar_prefetch = 0 : i64, scratch_operands = 0 : i64, tpu.core_type = #tpu.core_type<tc>, window_params = [{pipeline_mode = #tpu.pipeline_mode<synchronous>, transform_indices = @transform_0, window_bounds = array<i64: 2, 1024>}, {pipeline_mode = #tpu.pipeline_mode<synchronous>, transform_indices = @transform_1, window_bounds = array<i64: 2, 64>}, {pipeline_mode = #tpu.pipeline_mode<synchronous>, transform_indices = @transform_2, window_bounds = array<i64: 1280, 512>}, {pipeline_mode = #tpu.pipeline_mode<synchronous>, transform_indices = @transform_3, window_bounds = array<i64: 512, 1280>}, {pipeline_mode = #tpu.pipeline_mode<synchronous>, transform_indices = @transform_4, window_bounds = array<i64: 258, 64>}, {pipeline_mode = #tpu.pipeline_mode<synchronous>, transform_indices = @transform_5, window_bounds = array<i64: 65, 256>}, {pipeline_mode = #tpu.pipeline_mode<synchronous>, transform_indices = @transform_6, window_bounds = array<i64: 2, 1024>}, {pipeline_mode = #tpu.pipeline_mode<synchronous>, transform_indices = @transform_7, window_bounds = array<i64: 2, 64>}]} {
    %c0 = arith.constant 0 : index
    %c0_0 = arith.constant 0 : index
    %0 = vector.load %arg3[%c0, %c0_0] : memref<1280x512xf32, #tpu.memory_space<vmem>>, vector<1024x512xf32>
    %c1024 = arith.constant 1024 : index
    %c0_1 = arith.constant 0 : index
    %1 = vector.load %arg3[%c1024, %c0_1] : memref<1280x512xf32, #tpu.memory_space<vmem>>, vector<256x512xf32>
    %c0_2 = arith.constant 0 : index
    %c0_3 = arith.constant 0 : index
    %2 = vector.load %arg4[%c0_2, %c0_3] : memref<512x1280xf32, #tpu.memory_space<vmem>>, vector<512x256xf32>
    %c0_4 = arith.constant 0 : index
    %c256 = arith.constant 256 : index
    %3 = vector.load %arg4[%c0_4, %c256] : memref<512x1280xf32, #tpu.memory_space<vmem>>, vector<512x1024xf32>
    %c0_5 = arith.constant 0 : index
    %c0_6 = arith.constant 0 : index
    %4 = vector.load %arg5[%c0_5, %c0_6] : memref<258x64xf32, #tpu.memory_space<vmem>>, vector<256x64xf32>
    %c256_7 = arith.constant 256 : index
    %c0_8 = arith.constant 0 : index
    %5 = vector.load %arg5[%c256_7, %c0_8] : memref<258x64xf32, #tpu.memory_space<vmem>>, vector<1x64xf32>
    %c257 = arith.constant 257 : index
    %c0_9 = arith.constant 0 : index
    %6 = vector.load %arg5[%c257, %c0_9] : memref<258x64xf32, #tpu.memory_space<vmem>>, vector<1x64xf32>
    %c0_10 = arith.constant 0 : index
    %c0_11 = arith.constant 0 : index
    %7 = vector.load %arg6[%c0_10, %c0_11] : memref<65x256xf32, #tpu.memory_space<vmem>>, vector<64x256xf32>
    %c64 = arith.constant 64 : index
    %c0_12 = arith.constant 0 : index
    %8 = vector.load %arg6[%c64, %c0_12] : memref<65x256xf32, #tpu.memory_space<vmem>>, vector<1x256xf32>
    %c0_13 = arith.constant 0 : index
    %c0_14 = arith.constant 0 : index
    %9 = vector.load %arg1[%c0_13, %c0_14] : memref<2x1024xf32, #tpu.memory_space<vmem>>, vector<2x1024xf32>
    %cst = arith.constant dense<0.000000e+00> : vector<2x512xf32>
    %10 = tpu.matmul %9, %0, %cst {dimension_numbers = #tpu.dot_dimension_numbers<[1], [0], [0], [1], [0, 0, 1, 1], [], []>} : vector<2x1024xf32>, vector<1024x512xf32>, vector<2x512xf32> -> vector<2x512xf32>
    %cst_15 = arith.constant 0.000000e+00 : f32
    %11 = vector.broadcast %cst_15 : f32 to vector<2x512xf32>
    %12 = arith.cmpf oge, %10, %11 : vector<2x512xf32>
    %cst_16 = arith.constant 0.00999999977 : f32
    %13 = vector.broadcast %cst_16 : f32 to vector<2x512xf32>
    %14 = arith.mulf %13, %10 : vector<2x512xf32>
    %15 = arith.select %12, %10, %14 : vector<2x512xi1>, vector<2x512xf32>
    %cst_17 = arith.constant dense<0.000000e+00> : vector<2x256xf32>
    %16 = tpu.matmul %15, %2, %cst_17 {dimension_numbers = #tpu.dot_dimension_numbers<[1], [0], [0], [1], [0, 0, 1, 1], [], []>} : vector<2x512xf32>, vector<512x256xf32>, vector<2x256xf32> -> vector<2x256xf32>
    %cst_18 = arith.constant 0.000000e+00 : f32
    %17 = vector.broadcast %cst_18 : f32 to vector<2x256xf32>
    %18 = arith.cmpf oge, %16, %17 : vector<2x256xf32>
    %cst_19 = arith.constant 0.00999999977 : f32
    %19 = vector.broadcast %cst_19 : f32 to vector<2x256xf32>
    %20 = arith.mulf %19, %16 : vector<2x256xf32>
    %21 = arith.select %18, %16, %20 : vector<2x256xi1>, vector<2x256xf32>
    %cst_20 = arith.constant dense<0.000000e+00> : vector<2x64xf32>
    %22 = tpu.matmul %21, %4, %cst_20 {dimension_numbers = #tpu.dot_dimension_numbers<[1], [0], [0], [1], [0, 0, 1, 1], [], []>} : vector<2x256xf32>, vector<256x64xf32>, vector<2x64xf32> -> vector<2x64xf32>
    %23 = vector.broadcast %5 : vector<1x64xf32> to vector<2x64xf32>
    %24 = arith.addf %22, %23 : vector<2x64xf32>
    %c0_21 = arith.constant 0 : index
    %c0_22 = arith.constant 0 : index
    %25 = vector.load %arg8[%c0_21, %c0_22] : memref<2x64xf32, #tpu.memory_space<vmem>>, vector<2x64xf32>
    tpu.vector_store %arg8[%c0_21, %c0_22], %24 {strides = array<i32>} : memref<2x64xf32, #tpu.memory_space<vmem>>, vector<2x64xf32>,
    %26 = vector.broadcast %6 : vector<1x64xf32> to vector<2x64xf32>
    %27 = arith.mulf %24, %26 : vector<2x64xf32>
    %c0_23 = arith.constant 0 : index
    %c0_24 = arith.constant 0 : index
    %28 = vector.load %arg2[%c0_23, %c0_24] : memref<2x64xf32, #tpu.memory_space<vmem>>, vector<2x64xf32>
    %cst_25 = arith.constant 5.000000e-01 : f32
    %29 = vector.broadcast %cst_25 : f32 to vector<2x64xf32>
    %30 = arith.mulf %29, %24 : vector<2x64xf32>
    %31 = math.exp %30 : vector<2x64xf32>
    %32 = arith.mulf %28, %31 : vector<2x64xf32>
    %33 = arith.addf %27, %32 : vector<2x64xf32>
    %cst_26 = arith.constant dense<0.000000e+00> : vector<2x256xf32>
    %34 = tpu.matmul %33, %7, %cst_26 {dimension_numbers = #tpu.dot_dimension_numbers<[1], [0], [0], [1], [0, 0, 1, 1], [], []>} : vector<2x64xf32>, vector<64x256xf32>, vector<2x256xf32> -> vector<2x256xf32>
    %35 = vector.broadcast %8 : vector<1x256xf32> to vector<2x256xf32>
    %36 = arith.addf %34, %35 : vector<2x256xf32>
    %cst_27 = arith.constant dense<0.000000e+00> : vector<2x512xf32>
    %37 = tpu.matmul %36, %1, %cst_27 {dimension_numbers = #tpu.dot_dimension_numbers<[1], [0], [0], [1], [0, 0, 1, 1], [], []>} : vector<2x256xf32>, vector<256x512xf32>, vector<2x512xf32> -> vector<2x512xf32>
    %cst_28 = arith.constant 0.000000e+00 : f32
    %38 = vector.broadcast %cst_28 : f32 to vector<2x512xf32>
    %39 = arith.cmpf oge, %37, %38 : vector<2x512xf32>
    %cst_29 = arith.constant 0.00999999977 : f32
    %40 = vector.broadcast %cst_29 : f32 to vector<2x512xf32>
    %41 = arith.mulf %40, %37 : vector<2x512xf32>
    %42 = arith.select %39, %37, %41 : vector<2x512xi1>, vector<2x512xf32>
    %cst_30 = arith.constant dense<0.000000e+00> : vector<2x1024xf32>
    %43 = tpu.matmul %42, %3, %cst_30 {dimension_numbers = #tpu.dot_dimension_numbers<[1], [0], [0], [1], [0, 0, 1, 1], [], []>} : vector<2x512xf32>, vector<512x1024xf32>, vector<2x1024xf32> -> vector<2x1024xf32>
    %44 = arith.negf %43 : vector<2x1024xf32>
    %45 = math.exp %44 : vector<2x1024xf32>
    %cst_31 = arith.constant 1.000000e+00 : f32
    %46 = vector.broadcast %cst_31 : f32 to vector<2x1024xf32>
    %47 = arith.addf %46, %45 : vector<2x1024xf32>
    %48 = arith.divf %46, %47 : vector<2x1024xf32>
    %c0_32 = arith.constant 0 : index
    %c0_33 = arith.constant 0 : index
    %49 = vector.load %arg7[%c0_32, %c0_33] : memref<2x1024xf32, #tpu.memory_space<vmem>>, vector<2x1024xf32>
    tpu.vector_store %arg7[%c0_32, %c0_33], %48 {strides = array<i32>} : memref<2x1024xf32, #tpu.memory_space<vmem>>, vector<2x1024xf32>,
    return
  }
  func.func @transform_0(%arg0: i32) -> (i32, i32) {
    %c0_i32 = arith.constant 0 : i32
    %c0_i32_0 = arith.constant 0 : i32
    %c0_i32_1 = arith.constant 0 : i32
    return %c0_i32, %c0_i32_0 : i32, i32
  }
  func.func @transform_1(%arg0: i32) -> (i32, i32) {
    %c0_i32 = arith.constant 0 : i32
    %c0_i32_0 = arith.constant 0 : i32
    %c0_i32_1 = arith.constant 0 : i32
    return %c0_i32, %c0_i32_0 : i32, i32
  }
  func.func @transform_2(%arg0: i32) -> (i32, i32) {
    %c0_i32 = arith.constant 0 : i32
    %c0_i32_0 = arith.constant 0 : i32
    %c0_i32_1 = arith.constant 0 : i32
    return %c0_i32, %c0_i32_0 : i32, i32
  }
  func.func @transform_3(%arg0: i32) -> (i32, i32) {
    %c0_i32 = arith.constant 0 : i32
    %c0_i32_0 = arith.constant 0 : i32
    %c0_i32_1 = arith.constant 0 : i32
    return %c0_i32, %c0_i32_0 : i32, i32
  }
  func.func @transform_4(%arg0: i32) -> (i32, i32) {
    %c0_i32 = arith.constant 0 : i32
    %c0_i32_0 = arith.constant 0 : i32
    %c0_i32_1 = arith.constant 0 : i32
    return %c0_i32, %c0_i32_0 : i32, i32
  }
  func.func @transform_5(%arg0: i32) -> (i32, i32) {
    %c0_i32 = arith.constant 0 : i32
    %c0_i32_0 = arith.constant 0 : i32
    %c0_i32_1 = arith.constant 0 : i32
    return %c0_i32, %c0_i32_0 : i32, i32
  }
  func.func @transform_6(%arg0: i32) -> (i32, i32) {
    %c0_i32 = arith.constant 0 : i32
    %c0_i32_0 = arith.constant 0 : i32
    %c0_i32_1 = arith.constant 0 : i32
    return %c0_i32, %c0_i32_0 : i32, i32
  }
  func.func @transform_7(%arg0: i32) -> (i32, i32) {
    %c0_i32 = arith.constant 0 : i32
    %c0_i32_0 = arith.constant 0 : i32
    %c0_i32_1 = arith.constant 0 : i32
    return %c0_i32, %c0_i32_0 : i32, i32
  }
}

</mosaic_0001>

<bundles_post_ra>
// kernel: vae_forward.1
= control target key start
LH: loop header
LB: loop body
LE: loop exit
PB: predicated region body
PF: predicated region fallthrough
CT: control target
= control target key end

     0   :  { %13 = vsyncpa [#allocation3], 0  ;;  %s3890_s0 = inlined_call_operand.vmem [shape: f32[2,1024], index: 0, kind: input, shape index: {}]   ;;  %s3891_s1 = inlined_call_operand.vmem [shape: f32[2,64], index: 1, kind: input, shape index: {}]   ;;  %s3892_s2 = inlined_call_operand.hbm [shape: f32[1280,512], index: 2, kind: input, shape index: {}]   ;;  %s3893_s3 = inlined_call_operand.hbm [shape: f32[512,1280], index: 3, kind: input, shape index: {}]   ;;  %s3894_s4 = inlined_call_operand.vmem [shape: f32[258,64], index: 4, kind: input, shape index: {}]   ;;  %s3895_s5 = inlined_call_operand.hbm [shape: f32[65,256], index: 5, kind: input, shape index: {}]   ;;  %s3896_s6 = inlined_call_operand.vmem [shape: f32[2,1024], index: 6, kind: output, shape index: {0}]   ;;  %s3897_s7 = inlined_call_operand.vmem [shape: f32[2,64], index: 7, kind: output, shape index: {1}]  }
   0x1   :  { %14 = vsyncpa [#allocation5], 0  ;;  %s36_s26 = sshll.u32 %s3893_s3, 4  ;;  %s3484_s27 = smov [#allocation4]   ;;  %s37_s26 = int_to_ptr.hbm [resolvable:$true] %s36_s26 }
   0x2   :  { %s38_s28 = sshll.u32 %s3484_s27, 4  ;;  %s23_s8 = sshll.u32 %s3892_s2, 4  ;;  %s39_s28 = int_to_ptr.vmem [resolvable:$true] %s38_s28  ;;  %s24_s8 = int_to_ptr.hbm [resolvable:$true] %s23_s8 }
   0x3   :  { %s3485_s9 = smov 1280   ;;  %s3486_s10 = smov 80  }
   0x4   :  { %44 = dma.hbm_to_vmem [thread:$0]  %s37_s26, 81920, %s39_s28, [#allocation5], %s3485_s9, %s3485_s9, %s3486_s10  }
   0x5   :  { %s3487_s11 = smov [#allocation2]   ;;  %s3488_s13 = smov 512  }
   0x6   :  { %s25_s12 = sshll.u32 %s3487_s11, 4  ;;  %s3489_s14 = smov 32   ;;  %s26_s12 = int_to_ptr.vmem [resolvable:$true] %s25_s12 }
   0x7   :  { %31 = dma.hbm_to_vmem [thread:$0]  %s24_s8, 81920, %s26_s12, [#allocation3], %s3488_s13, %s3488_s13, %s3489_s14  }
   0x8   :  { %s51_s16 = sshll.u32 %s3895_s5, 4  ;;  %s3490_s17 = smov [#allocation6]   ;;  %s52_s16 = int_to_ptr.hbm [resolvable:$true] %s51_s16 }
   0x9   :  { %s53_s18 = sshll.u32 %s3490_s17, 4  ;;  %s3491_s19 = smov 256   ;;  %s54_s18 = int_to_ptr.vmem [resolvable:$true] %s53_s18 }
   0xa   :  { %s3492_s2 = smov 16  }
   0xb   :  { %59 = dma.hbm_to_vmem [thread:$0]  %s52_s16, 2304, %s54_s18, [#allocation5], %s3491_s19, %s3491_s19, %s3492_s2  }
   0xc   :  { %3480 = dma.done.wait [#allocation3], 81920  }
   0xd   :  { %3481 = vsyncadd [#allocation3], 4294885376 }
   0xe   :  { %3482 = dma.done.wait [#allocation5], 84224  }
   0xf   :  { %3483 = vsyncadd [#allocation5], 4294883072  ;;  %v132_v0 = vld [vmem:[#allocation2 + $0x1e0] sm:$0xff]  ;;  %vm2286_vm6 = vcmask 517120   ;;  %vm2301_vm7 = vcmask 523264  }
  0x10   :  { %v196_v1 = vld [vmem:[#allocation2 + $0x3e0] sm:$0xff]  ;;  %1427 = vmatpush.msra.mxu0 %v132_v0 }
  0x11   :  { %v260_v2 = vld [vmem:[#allocation2 + $0x5e0] sm:$0xff]  ;;  %1447 = vmatpush.msra.mxu1 %v196_v1 }
  0x12   :  { %v128_v3 = vld [vmem:[#allocation2 + $0x1c0] sm:$0xff]  ;;  %1467 = vmatpush.msra.mxu2 %v260_v2 }
  0x13   :  { %v192_v4 = vld [vmem:[#allocation2 + $0x3c0] sm:$0xff]  ;;  %1428 = vmatpush.msra.mxu0 %v128_v3 }
  0x14   :  { %v256_v5 = vld [vmem:[#allocation2 + $0x5c0] sm:$0xff]  ;;  %1448 = vmatpush.msra.mxu1 %v192_v4 }
  0x15   :  { %v324_v6 = vld [vmem:[#allocation2 + $0x7e0] sm:$0xff]  ;;  %1468 = vmatpush.msra.mxu2 %v256_v5 }
  0x16   :  { %v124_v7 = vld [vmem:[#allocation2 + $0x1a0] sm:$0xff]  ;;  %1487 = vmatpush.msra.mxu3 %v324_v6 }
  0x17   :  { %v188_v8 = vld [vmem:[#allocation2 + $0x3a0] sm:$0xff]  ;;  %1429 = vmatpush.msra.mxu0 %v124_v7 }
  0x18   :  { %v252_v9 = vld [vmem:[#allocation2 + $0x5a0] sm:$0xff]  ;;  %1449 = vmatpush.msra.mxu1 %v188_v8 }
  0x19   :  { %v320_v10 = vld [vmem:[#allocation2 + $0x7c0] sm:$0xff]  ;;  %1469 = vmatpush.msra.mxu2 %v252_v9 }
  0x1a   :  { %v120_v11 = vld [vmem:[#allocation2 + $0x180] sm:$0xff]  ;;  %1488 = vmatpush.msra.mxu3 %v320_v10 }
  0x1b   :  { %v184_v12 = vld [vmem:[#allocation2 + $0x380] sm:$0xff]  ;;  %1430 = vmatpush.msra.mxu0 %v120_v11 }
  0x1c   :  { %v248_v13 = vld [vmem:[#allocation2 + $0x580] sm:$0xff]  ;;  %1450 = vmatpush.msra.mxu1 %v184_v12 }
  0x1d   :  { %v316_v14 = vld [vmem:[#allocation2 + $0x7a0] sm:$0xff]  ;;  %1470 = vmatpush.msra.mxu2 %v248_v13 }
  0x1e   :  { %v116_v15 = vld [vmem:[#allocation2 + $0x160] sm:$0xff]  ;;  %1489 = vmatpush.msra.mxu3 %v316_v14 }
  0x1f   :  { %v180_v16 = vld [vmem:[#allocation2 + $0x360] sm:$0xff]  ;;  %1431 = vmatpush.msra.mxu0 %v116_v15 }
  0x20   :  { %v244_v17 = vld [vmem:[#allocation2 + $0x560] sm:$0xff]  ;;  %1451 = vmatpush.msra.mxu1 %v180_v16 }
  0x21   :  { %v312_v18 = vld [vmem:[#allocation2 + $0x780] sm:$0xff]  ;;  %1471 = vmatpush.msra.mxu2 %v244_v17 }
  0x22   :  { %v112_v19 = vld [vmem:[#allocation2 + $0x140] sm:$0xff]  ;;  %1490 = vmatpush.msra.mxu3 %v312_v18 }
  0x23   :  { %v176_v20 = vld [vmem:[#allocation2 + $0x340] sm:$0xff]  ;;  %1432 = vmatpush.msra.mxu0 %v112_v19  ;;  %v1404_v19 = vld [vmem:[%s3890_s0] sm:$0xff] }
  0x24   :  { %v240_v21 = vld [vmem:[#allocation2 + $0x540] sm:$0xff]  ;;  %1452 = vmatpush.msra.mxu1 %v176_v20  ;;  %1408 = vst [vmem:[#allocation1] ss:$4 sm:$0xff] %v1404_v19 }
  0x25   :  { %v308_v22 = vld [vmem:[#allocation2 + $0x760] sm:$0xff]  ;;  %1472 = vmatpush.msra.mxu2 %v240_v21 }
  0x26   :  { %v108_v23 = vld [vmem:[#allocation2 + $0x120] sm:$0xff]  ;;  %1491 = vmatpush.msra.mxu3 %v308_v22 }
  0x27   :  { %v172_v24 = vld [vmem:[#allocation2 + $0x320] sm:$0xff]  ;;  %1433 = vmatpush.msra.mxu0 %v108_v23 }
  0x28   :  { %v236_v25 = vld [vmem:[#allocation2 + $0x520] sm:$0xff]  ;;  %1453 = vmatpush.msra.mxu1 %v172_v24 }
  0x29   :  { %v304_v26 = vld [vmem:[#allocation2 + $0x740] sm:$0xff]  ;;  %1473 = vmatpush.msra.mxu2 %v236_v25 }
  0x2a   :  { %v104_v27 = vld [vmem:[#allocation2 + $0x100] sm:$0xff]  ;;  %1492 = vmatpush.msra.mxu3 %v304_v26 }
  0x2b   :  { %v168_v28 = vld [vmem:[#allocation2 + $0x300] sm:$0xff]  ;;  %1434 = vmatpush.msra.mxu0 %v104_v27 }
  0x2c   :  { %v232_v29 = vld [vmem:[#allocation2 + $0x500] sm:$0xff]  ;;  %1454 = vmatpush.msra.mxu1 %v168_v28 }
  0x2d   :  { %v300_v30 = vld [vmem:[#allocation2 + $0x720] sm:$0xff]  ;;  %1474 = vmatpush.msra.mxu2 %v232_v29 }
  0x2e   :  { %v100_v31 = vld [vmem:[#allocation2 + $0xe0] sm:$0xff]  ;;  %1493 = vmatpush.msra.mxu3 %v300_v30 }
  0x2f   :  { %v164_v32 = vld [vmem:[#allocation2 + $0x2e0] sm:$0xff]  ;;  %1435 = vmatpush.msra.mxu0 %v100_v31 }
  0x30   :  { %v228_v33 = vld [vmem:[#allocation2 + $0x4e0] sm:$0xff]  ;;  %1455 = vmatpush.msra.mxu1 %v164_v32 }
  0x31   :  { %v296_v34 = vld [vmem:[#allocation2 + $0x700] sm:$0xff]  ;;  %1475 = vmatpush.msra.mxu2 %v228_v33 }
  0x32   :  { %v96_v35 = vld [vmem:[#allocation2 + $0xc0] sm:$0xff]  ;;  %1494 = vmatpush.msra.mxu3 %v296_v34 }
  0x33   :  { %v160_v36 = vld [vmem:[#allocation2 + $0x2c0] sm:$0xff]  ;;  %1436 = vmatpush.msra.mxu0 %v96_v35 }
  0x34   :  { %v224_v37 = vld [vmem:[#allocation2 + $0x4c0] sm:$0xff]  ;;  %1456 = vmatpush.msra.mxu1 %v160_v36 }
  0x35   :  { %v292_v38 = vld [vmem:[#allocation2 + $0x6e0] sm:$0xff]  ;;  %1476 = vmatpush.msra.mxu2 %v224_v37 }
  0x36   :  { %v92_v39 = vld [vmem:[#allocation2 + $0xa0] sm:$0xff]  ;;  %1495 = vmatpush.msra.mxu3 %v292_v38 }
  0x37   :  { %v156_v40 = vld [vmem:[#allocation2 + $0x2a0] sm:$0xff]  ;;  %1437 = vmatpush.msra.mxu0 %v92_v39 }
  0x38   :  { %v220_v41 = vld [vmem:[#allocation2 + $0x4a0] sm:$0xff]  ;;  %1457 = vmatpush.msra.mxu1 %v156_v40 }
  0x39   :  { %v288_v42 = vld [vmem:[#allocation2 + $0x6c0] sm:$0xff]  ;;  %1477 = vmatpush.msra.mxu2 %v220_v41 }
  0x3a   :  { %v88_v43 = vld [vmem:[#allocation2 + $0x80] sm:$0xff]  ;;  %1496 = vmatpush.msra.mxu3 %v288_v42 }
  0x3b   :  { %v152_v44 = vld [vmem:[#allocation2 + $0x280] sm:$0xff]  ;;  %1438 = vmatpush.msra.mxu0 %v88_v43 }
  0x3c   :  { %v216_v45 = vld [vmem:[#allocation2 + $0x480] sm:$0xff]  ;;  %1458 = vmatpush.msra.mxu1 %v152_v44 }
  0x3d   :  { %v284_v46 = vld [vmem:[#allocation2 + $0x6a0] sm:$0xff]  ;;  %1478 = vmatpush.msra.mxu2 %v216_v45 }
  0x3e   :  { %v84_v47 = vld [vmem:[#allocation2 + $0x60] sm:$0xff]  ;;  %1497 = vmatpush.msra.mxu3 %v284_v46 }
  0x3f   :  { %v148_v48 = vld [vmem:[#allocation2 + $0x260] sm:$0xff]  ;;  %1439 = vmatpush.msra.mxu0 %v84_v47 }
  0x40   :  { %v212_v49 = vld [vmem:[#allocation2 + $0x460] sm:$0xff]  ;;  %1459 = vmatpush.msra.mxu1 %v148_v48 }
  0x41   :  { %v280_v50 = vld [vmem:[#allocation2 + $0x680] sm:$0xff]  ;;  %1479 = vmatpush.msra.mxu2 %v212_v49 }
  0x42   :  { %v80_v51 = vld [vmem:[#allocation2 + $0x40] sm:$0xff]  ;;  %1498 = vmatpush.msra.mxu3 %v280_v50 }
  0x43   :  { %v144_v52 = vld [vmem:[#allocation2 + $0x240] sm:$0xff]  ;;  %1440 = vmatpush.msra.mxu0 %v80_v51 }
  0x44   :  { %v208_v53 = vld [vmem:[#allocation2 + $0x440] sm:$0xff]  ;;  %1460 = vmatpush.msra.mxu1 %v144_v52 }
  0x45   :  { %v276_v54 = vld [vmem:[#allocation2 + $0x660] sm:$0xff]  ;;  %1480 = vmatpush.msra.mxu2 %v208_v53 }
  0x46   :  { %v76_v55 = vld [vmem:[#allocation2 + $0x20] sm:$0xff]  ;;  %1499 = vmatpush.msra.mxu3 %v276_v54 }
  0x47   :  { %v140_v56 = vld [vmem:[#allocation2 + $0x220] sm:$0xff]  ;;  %1441 = vmatpush.msra.mxu0 %v76_v55 }
  0x48   :  { %v204_v57 = vld [vmem:[#allocation2 + $0x420] sm:$0xff]  ;;  %1461 = vmatpush.msra.mxu1 %v140_v56 }
  0x49   :  { %v272_v58 = vld [vmem:[#allocation2 + $0x640] sm:$0xff]  ;;  %1481 = vmatpush.msra.mxu2 %v204_v57  ;;  %v3548_v57 = vld.sshfl [vmem:[#allocation1 + $0x10] sm:$0xff pattern:$0x73625140] }
  0x4a   :  { %v72_v59 = vld [vmem:[#allocation2] sm:$0xff]  ;;  %1500 = vmatpush.msra.mxu3 %v272_v58 }
  0x4b   :  { %v136_v60 = vld [vmem:[#allocation2 + $0x200] sm:$0xff]  ;;  %1442 = vmatpush.msra.mxu0 %v72_v59 }
  0x4c   :  { %v200_v61 = vld [vmem:[#allocation2 + $0x400] sm:$0xff]  ;;  %1462 = vmatpush.msra.mxu1 %v136_v60 }
  0x4d   :  { %v268_v62 = vld [vmem:[#allocation2 + $0x620] sm:$0xff]  ;;  %1482 = vmatpush.msra.mxu2 %v200_v61 }
  0x4e   :  { %v388_v63 = vld [vmem:[#allocation2 + $0x9e0] sm:$0xff]  ;;  %1501 = vmatpush.msra.mxu3 %v268_v62  ;;  %v3550_v62 = vld.sshfl [vmem:[#allocation1] sm:$0xff pattern:$0x73625140]  ;;  %1483 = vmatmul.f32.vlgmr.msra.gmra.mxu2 %v3548_v57 }
  0x4f   :  { %v452_v0 = vld [vmem:[#allocation2 + $0xbe0] sm:$0xff]  ;;  %1507 = vmatpush.msrb.mxu0 %v388_v63  ;;  %v3553_v63 = vld.sshfl [vmem:[#allocation1 + $0x18] sm:$0xff pattern:$0x73625140] }
  0x50   :  { %v516_v1 = vld [vmem:[#allocation2 + $0xde0] sm:$0xff]  ;;  %1527 = vmatpush.msrb.mxu1 %v452_v0  ;;  %1443 = vmatmul.f32.vlgmr.msra.gmra.mxu0 %v3550_v62 }
  0x51   :  { %v264_v2 = vld [vmem:[#allocation2 + $0x600] sm:$0xff]  ;;  %1547 = vmatpush.msrb.mxu2 %v516_v1 }
  0x52   :  { %v384_v3 = vld [vmem:[#allocation2 + $0x9c0] sm:$0xff]  ;;  %1502 = vmatpush.msra.mxu3 %v264_v2 }
  0x53   :  { %v448_v4 = vld [vmem:[#allocation2 + $0xbc0] sm:$0xff]  ;;  %1508 = vmatpush.msrb.mxu0 %v384_v3  ;;  %1503 = vmatmul.f32.vlgmr.msra.gmra.mxu3 %v3553_v63 }
  0x54   :  { %v512_v5 = vld [vmem:[#allocation2 + $0xdc0] sm:$0xff]  ;;  %1528 = vmatpush.msrb.mxu1 %v448_v4 }
  0x55   :  { %v580_v6 = vld [vmem:[#allocation2 + $0xfe0] sm:$0xff]  ;;  %1548 = vmatpush.msrb.mxu2 %v512_v5  ;;  %v133_v5 = vld [vmem:[#allocation2 + $0x1e8] sm:$0xff] }
  0x56   :  { %v380_v7 = vld [vmem:[#allocation2 + $0x9a0] sm:$0xff]  ;;  %1567 = vmatpush.msrb.mxu3 %v580_v6  ;;  %v197_v6 = vld [vmem:[#allocation2 + $0x3e8] sm:$0xff] }
  0x57   :  { %v444_v8 = vld [vmem:[#allocation2 + $0xba0] sm:$0xff]  ;;  %1509 = vmatpush.msrb.mxu0 %v380_v7  ;;  %v261_v7 = vld [vmem:[#allocation2 + $0x5e8] sm:$0xff] }
  0x58   :  { %v508_v9 = vld [vmem:[#allocation2 + $0xda0] sm:$0xff]  ;;  %1529 = vmatpush.msrb.mxu1 %v444_v8 }
  0x59   :  { %v576_v10 = vld [vmem:[#allocation2 + $0xfc0] sm:$0xff]  ;;  %1549 = vmatpush.msrb.mxu2 %v508_v9  ;;  %v129_v9 = vld [vmem:[#allocation2 + $0x1c8] sm:$0xff] }
  0x5a   :  { %v376_v11 = vld [vmem:[#allocation2 + $0x980] sm:$0xff]  ;;  %1568 = vmatpush.msrb.mxu3 %v576_v10  ;;  %v193_v10 = vld [vmem:[#allocation2 + $0x3c8] sm:$0xff] }
  0x5b   :  { %v440_v12 = vld [vmem:[#allocation2 + $0xb80] sm:$0xff]  ;;  %1510 = vmatpush.msrb.mxu0 %v376_v11  ;;  %v257_v11 = vld [vmem:[#allocation2 + $0x5c8] sm:$0xff] }
  0x5c   :  { %v504_v13 = vld [vmem:[#allocation2 + $0xd80] sm:$0xff]  ;;  %1530 = vmatpush.msrb.mxu1 %v440_v12  ;;  %v325_v12 = vld [vmem:[#allocation2 + $0x7e8] sm:$0xff] }
  0x5d   :  { %v572_v14 = vld [vmem:[#allocation2 + $0xfa0] sm:$0xff]  ;;  %1550 = vmatpush.msrb.mxu2 %v504_v13 }
  0x5e   :  { %v372_v15 = vld [vmem:[#allocation2 + $0x960] sm:$0xff]  ;;  %1569 = vmatpush.msrb.mxu3 %v572_v14  ;;  %v125_v14 = vld [vmem:[#allocation2 + $0x1a8] sm:$0xff] }
  0x5f   :  { %v436_v16 = vld [vmem:[#allocation2 + $0xb60] sm:$0xff]  ;;  %1511 = vmatpush.msrb.mxu0 %v372_v15  ;;  %v189_v15 = vld [vmem:[#allocation2 + $0x3a8] sm:$0xff] }
  0x60   :  { %v500_v17 = vld [vmem:[#allocation2 + $0xd60] sm:$0xff]  ;;  %1531 = vmatpush.msrb.mxu1 %v436_v16  ;;  %v253_v16 = vld [vmem:[#allocation2 + $0x5a8] sm:$0xff] }
  0x61   :  { %v568_v18 = vld [vmem:[#allocation2 + $0xf80] sm:$0xff]  ;;  %1551 = vmatpush.msrb.mxu2 %v500_v17  ;;  %v321_v17 = vld [vmem:[#allocation2 + $0x7c8] sm:$0xff] }
  0x62   :  { %v368_v20 = vld [vmem:[#allocation2 + $0x940] sm:$0xff]  ;;  %1570 = vmatpush.msrb.mxu3 %v568_v18 }
  0x63   :  { %v432_v21 = vld [vmem:[#allocation2 + $0xb40] sm:$0xff]  ;;  %1512 = vmatpush.msrb.mxu0 %v368_v20  ;;  %v121_v20 = vld [vmem:[#allocation2 + $0x188] sm:$0xff] }
  0x64   :  { %v496_v22 = vld [vmem:[#allocation2 + $0xd40] sm:$0xff]  ;;  %1532 = vmatpush.msrb.mxu1 %v432_v21  ;;  %v185_v21 = vld [vmem:[#allocation2 + $0x388] sm:$0xff] }
  0x65   :  { %v564_v23 = vld [vmem:[#allocation2 + $0xf60] sm:$0xff]  ;;  %1552 = vmatpush.msrb.mxu2 %v496_v22  ;;  %v249_v22 = vld [vmem:[#allocation2 + $0x588] sm:$0xff] }
  0x66   :  { %v364_v24 = vld [vmem:[#allocation2 + $0x920] sm:$0xff]  ;;  %1571 = vmatpush.msrb.mxu3 %v564_v23  ;;  %v317_v23 = vld [vmem:[#allocation2 + $0x7a8] sm:$0xff] }
  0x67   :  { %v428_v25 = vld [vmem:[#allocation2 + $0xb20] sm:$0xff]  ;;  %1513 = vmatpush.msrb.mxu0 %v364_v24 }
  0x68   :  { %v492_v26 = vld [vmem:[#allocation2 + $0xd20] sm:$0xff]  ;;  %1533 = vmatpush.msrb.mxu1 %v428_v25  ;;  %v117_v25 = vld [vmem:[#allocation2 + $0x168] sm:$0xff] }
  0x69   :  { %v560_v27 = vld [vmem:[#allocation2 + $0xf40] sm:$0xff]  ;;  %1553 = vmatpush.msrb.mxu2 %v492_v26  ;;  %v181_v26 = vld [vmem:[#allocation2 + $0x368] sm:$0xff] }
  0x6a   :  { %v360_v28 = vld [vmem:[#allocation2 + $0x900] sm:$0xff]  ;;  %1572 = vmatpush.msrb.mxu3 %v560_v27  ;;  %v245_v27 = vld [vmem:[#allocation2 + $0x568] sm:$0xff] }
  0x6b   :  { %v424_v29 = vld [vmem:[#allocation2 + $0xb00] sm:$0xff]  ;;  %1514 = vmatpush.msrb.mxu0 %v360_v28  ;;  %v313_v28 = vld [vmem:[#allocation2 + $0x788] sm:$0xff] }
  0x6c   :  { %v488_v30 = vld [vmem:[#allocation2 + $0xd00] sm:$0xff]  ;;  %1534 = vmatpush.msrb.mxu1 %v424_v29  ;;  %v113_v29 = vld [vmem:[#allocation2 + $0x148] sm:$0xff] }
  0x6d   :  { %v556_v31 = vld [vmem:[#allocation2 + $0xf20] sm:$0xff]  ;;  %1554 = vmatpush.msrb.mxu2 %v488_v30  ;;  %v177_v30 = vld [vmem:[#allocation2 + $0x348] sm:$0xff] }
  0x6e   :  { %v1405_v32 = vld [vmem:[%s3890_s0 + $0x8] sm:$0xff]  ;;  %1573 = vmatpush.msrb.mxu3 %v556_v31  ;;  %v241_v31 = vld [vmem:[#allocation2 + $0x548] sm:$0xff] }
  0x6f   :  { %v356_v33 = vld [vmem:[#allocation2 + $0x8e0] sm:$0xff]  ;;  %1410 = vst [vmem:[#allocation1 + $0x20] ss:$4 sm:$0xff] %v1405_v32  ;;  %v309_v32 = vld [vmem:[#allocation2 + $0x768] sm:$0xff] }
  0x70   :  { %v420_v34 = vld [vmem:[#allocation2 + $0xae0] sm:$0xff]  ;;  %1515 = vmatpush.msrb.mxu0 %v356_v33  ;;  %v109_v33 = vld [vmem:[#allocation2 + $0x128] sm:$0xff] }
  0x71   :  { %v484_v35 = vld [vmem:[#allocation2 + $0xce0] sm:$0xff]  ;;  %1535 = vmatpush.msrb.mxu1 %v420_v34  ;;  %v173_v34 = vld [vmem:[#allocation2 + $0x328] sm:$0xff] }
  0x72   :  { %v552_v36 = vld [vmem:[#allocation2 + $0xf00] sm:$0xff]  ;;  %1555 = vmatpush.msrb.mxu2 %v484_v35  ;;  %v237_v35 = vld [vmem:[#allocation2 + $0x528] sm:$0xff] }
  0x73   :  { %v352_v37 = vld [vmem:[#allocation2 + $0x8c0] sm:$0xff]  ;;  %1574 = vmatpush.msrb.mxu3 %v552_v36  ;;  %v305_v36 = vld [vmem:[#allocation2 + $0x748] sm:$0xff] }
  0x74   :  { %v416_v38 = vld [vmem:[#allocation2 + $0xac0] sm:$0xff]  ;;  %1516 = vmatpush.msrb.mxu0 %v352_v37  ;;  %v105_v37 = vld [vmem:[#allocation2 + $0x108] sm:$0xff] }
  0x75   :  { %v480_v39 = vld [vmem:[#allocation2 + $0xcc0] sm:$0xff]  ;;  %1536 = vmatpush.msrb.mxu1 %v416_v38  ;;  %v169_v38 = vld [vmem:[#allocation2 + $0x308] sm:$0xff] }
  0x76   :  { %v548_v40 = vld [vmem:[#allocation2 + $0xee0] sm:$0xff]  ;;  %1556 = vmatpush.msrb.mxu2 %v480_v39  ;;  %v3560_v13 = vld.sshfl [vmem:[#allocation1 + $0x30] sm:$0xff pattern:$0x73625140] }
  0x77   :  { %v348_v41 = vld [vmem:[#allocation2 + $0x8a0] sm:$0xff]  ;;  %1575 = vmatpush.msrb.mxu3 %v548_v40  ;;  %v3562_v18 = vld.sshfl [vmem:[#allocation1 + $0x20] sm:$0xff pattern:$0x73625140]  ;;  %v233_v39 = vld [vmem:[#allocation2 + $0x508] sm:$0xff] }
  0x78   :  { %v412_v42 = vld [vmem:[#allocation2 + $0xaa0] sm:$0xff]  ;;  %1517 = vmatpush.msrb.mxu0 %v348_v41  ;;  %v3565_v19 = vld.sshfl [vmem:[#allocation1 + $0x38] sm:$0xff pattern:$0x73625140]  ;;  %v301_v40 = vld [vmem:[#allocation2 + $0x728] sm:$0xff] }
  0x79   :  { %v476_v43 = vld [vmem:[#allocation2 + $0xca0] sm:$0xff]  ;;  %1537 = vmatpush.msrb.mxu1 %v412_v42  ;;  %v101_v41 = vld [vmem:[#allocation2 + $0xe8] sm:$0xff] }
  0x7a   :  { %v544_v44 = vld [vmem:[#allocation2 + $0xec0] sm:$0xff]  ;;  %1557 = vmatpush.msrb.mxu2 %v476_v43  ;;  %v165_v42 = vld [vmem:[#allocation2 + $0x2e8] sm:$0xff] }
  0x7b   :  { %v344_v45 = vld [vmem:[#allocation2 + $0x880] sm:$0xff]  ;;  %1576 = vmatpush.msrb.mxu3 %v544_v44  ;;  %v229_v43 = vld [vmem:[#allocation2 + $0x4e8] sm:$0xff] }
  0x7c   :  { %v408_v46 = vld [vmem:[#allocation2 + $0xa80] sm:$0xff]  ;;  %1518 = vmatpush.msrb.mxu0 %v344_v45  ;;  %v297_v44 = vld [vmem:[#allocation2 + $0x708] sm:$0xff] }
  0x7d   :  { %v472_v47 = vld [vmem:[#allocation2 + $0xc80] sm:$0xff]  ;;  %1538 = vmatpush.msrb.mxu1 %v408_v46  ;;  %v97_v45 = vld [vmem:[#allocation2 + $0xc8] sm:$0xff] }
  0x7e   :  { %v540_v48 = vld [vmem:[#allocation2 + $0xea0] sm:$0xff]  ;;  %1558 = vmatpush.msrb.mxu2 %v472_v47  ;;  %v161_v46 = vld [vmem:[#allocation2 + $0x2c8] sm:$0xff] }
  0x7f   :  { %v340_v49 = vld [vmem:[#allocation2 + $0x860] sm:$0xff]  ;;  %1577 = vmatpush.msrb.mxu3 %v540_v48  ;;  %v225_v47 = vld [vmem:[#allocation2 + $0x4c8] sm:$0xff] }
  0x80   :  { %v404_v50 = vld [vmem:[#allocation2 + $0xa60] sm:$0xff]  ;;  %1519 = vmatpush.msrb.mxu0 %v340_v49  ;;  %v293_v48 = vld [vmem:[#allocation2 + $0x6e8] sm:$0xff] }
  0x81   :  { %v468_v51 = vld [vmem:[#allocation2 + $0xc60] sm:$0xff]  ;;  %1539 = vmatpush.msrb.mxu1 %v404_v50  ;;  %v93_v49 = vld [vmem:[#allocation2 + $0xa8] sm:$0xff] }
  0x82   :  { %v536_v52 = vld [vmem:[#allocation2 + $0xe80] sm:$0xff]  ;;  %1559 = vmatpush.msrb.mxu2 %v468_v51  ;;  %v157_v50 = vld [vmem:[#allocation2 + $0x2a8] sm:$0xff] }
  0x83   :  { %v336_v53 = vld [vmem:[#allocation2 + $0x840] sm:$0xff]  ;;  %1578 = vmatpush.msrb.mxu3 %v536_v52  ;;  %v221_v51 = vld [vmem:[#allocation2 + $0x4a8] sm:$0xff] }
  0x84   :  { %v400_v54 = vld [vmem:[#allocation2 + $0xa40] sm:$0xff]  ;;  %1520 = vmatpush.msrb.mxu0 %v336_v53  ;;  %v289_v52 = vld [vmem:[#allocation2 + $0x6c8] sm:$0xff] }
  0x85   :  { %v464_v55 = vld [vmem:[#allocation2 + $0xc40] sm:$0xff]  ;;  %1540 = vmatpush.msrb.mxu1 %v400_v54  ;;  %v89_v53 = vld [vmem:[#allocation2 + $0x88] sm:$0xff] }
  0x86   :  { %v532_v56 = vld [vmem:[#allocation2 + $0xe60] sm:$0xff]  ;;  %1560 = vmatpush.msrb.mxu2 %v464_v55  ;;  %v153_v54 = vld [vmem:[#allocation2 + $0x288] sm:$0xff] }
  0x87   :  { %v332_v58 = vld [vmem:[#allocation2 + $0x820] sm:$0xff]  ;;  %1579 = vmatpush.msrb.mxu3 %v532_v56  ;;  %v217_v55 = vld [vmem:[#allocation2 + $0x488] sm:$0xff] }
  0x88   :  { %v396_v59 = vld [vmem:[#allocation2 + $0xa20] sm:$0xff]  ;;  %1521 = vmatpush.msrb.mxu0 %v332_v58  ;;  %v285_v56 = vld [vmem:[#allocation2 + $0x6a8] sm:$0xff] }
  0x89   :  { %v460_v60 = vld [vmem:[#allocation2 + $0xc20] sm:$0xff]  ;;  %1541 = vmatpush.msrb.mxu1 %v396_v59  ;;  %v85_v58 = vld [vmem:[#allocation2 + $0x68] sm:$0xff] }
  0x8a   :  { %v528_v61 = vld [vmem:[#allocation2 + $0xe40] sm:$0xff]  ;;  %1561 = vmatpush.msrb.mxu2 %v460_v60  ;;  %v149_v59 = vld [vmem:[#allocation2 + $0x268] sm:$0xff] }
  0x8b   :  { %v328_v0 = vld [vmem:[#allocation2 + $0x800] sm:$0xff]  ;;  %1580 = vmatpush.msrb.mxu3 %v528_v61  ;;  %v213_v60 = vld [vmem:[#allocation2 + $0x468] sm:$0xff] }
  0x8c   :  { %v392_v1 = vld [vmem:[#allocation2 + $0xa00] sm:$0xff]  ;;  %1522 = vmatpush.msrb.mxu0 %v328_v0  ;;  %v281_v61 = vld [vmem:[#allocation2 + $0x688] sm:$0xff] }
  0x8d   :  { %v456_v2 = vld [vmem:[#allocation2 + $0xc00] sm:$0xff]  ;;  %1542 = vmatpush.msrb.mxu1 %v392_v1  ;;  %1523 = vmatmul.f32.vlgmr.msrb.gmra.mxu0 %v3562_v18  ;;  %v81_v0 = vld [vmem:[#allocation2 + $0x48] sm:$0xff] }
  0x8e   :  { %v524_v3 = vld [vmem:[#allocation2 + $0xe20] sm:$0xff]  ;;  %1562 = vmatpush.msrb.mxu2 %v456_v2  ;;  %1587 = vmatpush.msra.mxu0 %v133_v5  ;;  %v145_v1 = vld [vmem:[#allocation2 + $0x248] sm:$0xff] }
  0x8f   :  { %v3556_v4 = vld.sshfl [vmem:[#allocation1 + $0x8] sm:$0xff pattern:$0x73625140]  ;;  %1581 = vmatpush.msrb.mxu3 %v524_v3  ;;  %1563 = vmatmul.f32.vlgmr.msrb.gmra.mxu2 %v3560_v13  ;;  %v209_v2 = vld [vmem:[#allocation2 + $0x448] sm:$0xff] }
  0x90   :  { %v520_v8 = vld [vmem:[#allocation2 + $0xe00] sm:$0xff]  ;;  %1463 = vmatmul.f32.vlgmr.msra.gmra.mxu1 %v3556_v4  ;;  %1627 = vmatpush.msra.mxu2 %v261_v7  ;;  %v277_v3 = vld [vmem:[#allocation2 + $0x668] sm:$0xff] }
  0x91   :  { %1607 = vmatpush.msra.mxu1 %v197_v6  ;;  %1582 = vmatpush.msrb.mxu3 %v520_v8  ;;  %v3568_v24 = vld.sshfl [vmem:[#allocation1 + $0x28] sm:$0xff pattern:$0x73625140]  ;;  %v77_v5 = vld [vmem:[#allocation2 + $0x28] sm:$0xff] }
  0x92   :  { %1588 = vmatpush.msra.mxu0 %v129_v9  ;;  %1628 = vmatpush.msra.mxu2 %v257_v11  ;;  %v141_v6 = vld [vmem:[#allocation2 + $0x228] sm:$0xff] }
  0x93   :  { %1608 = vmatpush.msra.mxu1 %v193_v10  ;;  %1647 = vmatpush.msra.mxu3 %v325_v12  ;;  %v205_v7 = vld [vmem:[#allocation2 + $0x428] sm:$0xff] }
  0x94   :  { %1589 = vmatpush.msra.mxu0 %v125_v14  ;;  %1629 = vmatpush.msra.mxu2 %v253_v16  ;;  %v273_v8 = vld [vmem:[#allocation2 + $0x648] sm:$0xff] }
  0x95   :  { %1609 = vmatpush.msra.mxu1 %v189_v15  ;;  %1648 = vmatpush.msra.mxu3 %v321_v17  ;;  %v73_v9 = vld [vmem:[#allocation2 + $0x8] sm:$0xff] }
  0x96   :  { %1583 = vmatmul.f32.vlgmr.msrb.gmra.mxu3 %v3565_v19  ;;  %1590 = vmatpush.msra.mxu0 %v121_v20  ;;  %v137_v10 = vld [vmem:[#allocation2 + $0x208] sm:$0xff] }
  0x97   :  { %1610 = vmatpush.msra.mxu1 %v185_v21  ;;  %1630 = vmatpush.msra.mxu2 %v249_v22  ;;  %v201_v11 = vld [vmem:[#allocation2 + $0x408] sm:$0xff] }
  0x98   :  { %1649 = vmatpush.msra.mxu3 %v317_v23  ;;  %1543 = vmatmul.f32.vlgmr.msrb.gmra.mxu1 %v3568_v24  ;;  %v269_v12 = vld [vmem:[#allocation2 + $0x628] sm:$0xff] }
  0x99   :  { %1591 = vmatpush.msra.mxu0 %v117_v25  ;;  %1611 = vmatpush.msra.mxu1 %v181_v26  ;;  %v389_v14 = vld [vmem:[#allocation2 + $0x9e8] sm:$0xff] }
  0x9a   :  { %1631 = vmatpush.msra.mxu2 %v245_v27  ;;  %1650 = vmatpush.msra.mxu3 %v313_v28  ;;  %v453_v15 = vld [vmem:[#allocation2 + $0xbe8] sm:$0xff] }
  0x9b   :  { %1592 = vmatpush.msra.mxu0 %v113_v29  ;;  %1612 = vmatpush.msra.mxu1 %v177_v30  ;;  %v517_v16 = vld [vmem:[#allocation2 + $0xde8] sm:$0xff] }
  0x9c   :  { %1632 = vmatpush.msra.mxu2 %v241_v31  ;;  %1651 = vmatpush.msra.mxu3 %v309_v32  ;;  %v265_v17 = vld [vmem:[#allocation2 + $0x608] sm:$0xff] }
  0x9d   :  { %1593 = vmatpush.msra.mxu0 %v109_v33  ;;  %1613 = vmatpush.msra.mxu1 %v173_v34  ;;  %v385_v20 = vld [vmem:[#allocation2 + $0x9c8] sm:$0xff] }
  0x9e   :  { %1633 = vmatpush.msra.mxu2 %v237_v35  ;;  %1652 = vmatpush.msra.mxu3 %v305_v36  ;;  %v449_v21 = vld [vmem:[#allocation2 + $0xbc8] sm:$0xff] }
  0x9f   :  { %1594 = vmatpush.msra.mxu0 %v105_v37  ;;  %1614 = vmatpush.msra.mxu1 %v169_v38  ;;  %v513_v22 = vld [vmem:[#allocation2 + $0xdc8] sm:$0xff] }
  0xa0   :  { %1634 = vmatpush.msra.mxu2 %v233_v39  ;;  %1653 = vmatpush.msra.mxu3 %v301_v40  ;;  %v581_v23 = vld [vmem:[#allocation2 + $0xfe8] sm:$0xff] }
  0xa1   :  { %1595 = vmatpush.msra.mxu0 %v101_v41  ;;  %1615 = vmatpush.msra.mxu1 %v165_v42  ;;  %v381_v25 = vld [vmem:[#allocation2 + $0x9a8] sm:$0xff] }
  0xa2   :  { %1635 = vmatpush.msra.mxu2 %v229_v43  ;;  %1654 = vmatpush.msra.mxu3 %v297_v44  ;;  %v445_v26 = vld [vmem:[#allocation2 + $0xba8] sm:$0xff] }
  0xa3   :  { %1596 = vmatpush.msra.mxu0 %v97_v45  ;;  %1616 = vmatpush.msra.mxu1 %v161_v46  ;;  %v509_v27 = vld [vmem:[#allocation2 + $0xda8] sm:$0xff] }
  0xa4   :  { %1636 = vmatpush.msra.mxu2 %v225_v47  ;;  %1655 = vmatpush.msra.mxu3 %v293_v48  ;;  %v577_v28 = vld [vmem:[#allocation2 + $0xfc8] sm:$0xff] }
  0xa5   :  { %1597 = vmatpush.msra.mxu0 %v93_v49  ;;  %1617 = vmatpush.msra.mxu1 %v157_v50  ;;  %v377_v29 = vld [vmem:[#allocation2 + $0x988] sm:$0xff] }
  0xa6   :  { %1637 = vmatpush.msra.mxu2 %v221_v51  ;;  %1656 = vmatpush.msra.mxu3 %v289_v52  ;;  %v441_v30 = vld [vmem:[#allocation2 + $0xb88] sm:$0xff] }
  0xa7   :  { %1598 = vmatpush.msra.mxu0 %v89_v53  ;;  %1618 = vmatpush.msra.mxu1 %v153_v54  ;;  %v505_v31 = vld [vmem:[#allocation2 + $0xd88] sm:$0xff] }
  0xa8   :  { %1638 = vmatpush.msra.mxu2 %v217_v55  ;;  %1657 = vmatpush.msra.mxu3 %v285_v56  ;;  %v573_v32 = vld [vmem:[#allocation2 + $0xfa8] sm:$0xff] }
  0xa9   :  { %1599 = vmatpush.msra.mxu0 %v85_v58  ;;  %1619 = vmatpush.msra.mxu1 %v149_v59  ;;  %v373_v33 = vld [vmem:[#allocation2 + $0x968] sm:$0xff] }
  0xaa   :  { %1639 = vmatpush.msra.mxu2 %v213_v60  ;;  %1658 = vmatpush.msra.mxu3 %v281_v61  ;;  %v437_v34 = vld [vmem:[#allocation2 + $0xb68] sm:$0xff] }
  0xab   :  { %1600 = vmatpush.msra.mxu0 %v81_v0  ;;  %1620 = vmatpush.msra.mxu1 %v145_v1  ;;  %v501_v35 = vld [vmem:[#allocation2 + $0xd68] sm:$0xff] }
  0xac   :  { %1640 = vmatpush.msra.mxu2 %v209_v2  ;;  %1659 = vmatpush.msra.mxu3 %v277_v3  ;;  %v569_v36 = vld [vmem:[#allocation2 + $0xf88] sm:$0xff] }
  0xad   :  { %1601 = vmatpush.msra.mxu0 %v77_v5  ;;  %1621 = vmatpush.msra.mxu1 %v141_v6  ;;  %v369_v37 = vld [vmem:[#allocation2 + $0x948] sm:$0xff] }
  0xae   :  { %1641 = vmatpush.msra.mxu2 %v205_v7  ;;  %1660 = vmatpush.msra.mxu3 %v273_v8  ;;  %v433_v38 = vld [vmem:[#allocation2 + $0xb48] sm:$0xff] }
  0xaf   :  { %1602 = vmatpush.msra.mxu0 %v73_v9  ;;  %1622 = vmatpush.msra.mxu1 %v137_v10  ;;  %v497_v39 = vld [vmem:[#allocation2 + $0xd48] sm:$0xff] }
  0xb0   :  { %1642 = vmatpush.msra.mxu2 %v201_v11  ;;  %1661 = vmatpush.msra.mxu3 %v269_v12  ;;  %v565_v40 = vld [vmem:[#allocation2 + $0xf68] sm:$0xff] }
  0xb1   :  { %1667 = vmatpush.msrb.mxu0 %v389_v14  ;;  %1687 = vmatpush.msrb.mxu1 %v453_v15  ;;  %v365_v41 = vld [vmem:[#allocation2 + $0x928] sm:$0xff] }
  0xb2   :  { %1707 = vmatpush.msrb.mxu2 %v517_v16  ;;  %1662 = vmatpush.msra.mxu3 %v265_v17  ;;  %v429_v42 = vld [vmem:[#allocation2 + $0xb28] sm:$0xff] }
  0xb3   :  { %1668 = vmatpush.msrb.mxu0 %v385_v20  ;;  %1688 = vmatpush.msrb.mxu1 %v449_v21  ;;  %v493_v43 = vld [vmem:[#allocation2 + $0xd28] sm:$0xff] }
  0xb4   :  { %1708 = vmatpush.msrb.mxu2 %v513_v22  ;;  %1727 = vmatpush.msrb.mxu3 %v581_v23  ;;  %v561_v44 = vld [vmem:[#allocation2 + $0xf48] sm:$0xff] }
  0xb5   :  { %1669 = vmatpush.msrb.mxu0 %v381_v25  ;;  %1689 = vmatpush.msrb.mxu1 %v445_v26  ;;  %v361_v45 = vld [vmem:[#allocation2 + $0x908] sm:$0xff]  ;;  %v134_v25 = vld [vmem:[#allocation2 + $0x1f0] sm:$0xff] }
  0xb6   :  { %1709 = vmatpush.msrb.mxu2 %v509_v27  ;;  %1728 = vmatpush.msrb.mxu3 %v577_v28  ;;  %v425_v46 = vld [vmem:[#allocation2 + $0xb08] sm:$0xff]  ;;  %v198_v26 = vld [vmem:[#allocation2 + $0x3f0] sm:$0xff] }
  0xb7   :  { %1670 = vmatpush.msrb.mxu0 %v377_v29  ;;  %1690 = vmatpush.msrb.mxu1 %v441_v30  ;;  %v489_v47 = vld [vmem:[#allocation2 + $0xd08] sm:$0xff]  ;;  %v262_v27 = vld [vmem:[#allocation2 + $0x5f0] sm:$0xff] }
  0xb8   :  { %1710 = vmatpush.msrb.mxu2 %v505_v31  ;;  %1729 = vmatpush.msrb.mxu3 %v573_v32  ;;  %v557_v48 = vld [vmem:[#allocation2 + $0xf28] sm:$0xff]  ;;  %v194_v29 = vld [vmem:[#allocation2 + $0x3d0] sm:$0xff] }
  0xb9   :  { %1671 = vmatpush.msrb.mxu0 %v373_v33  ;;  %1691 = vmatpush.msrb.mxu1 %v437_v34  ;;  %v357_v49 = vld [vmem:[#allocation2 + $0x8e8] sm:$0xff]  ;;  %v258_v30 = vld [vmem:[#allocation2 + $0x5d0] sm:$0xff] }
  0xba   :  { %1711 = vmatpush.msrb.mxu2 %v501_v35  ;;  %1730 = vmatpush.msrb.mxu3 %v569_v36  ;;  %v421_v50 = vld [vmem:[#allocation2 + $0xae8] sm:$0xff]  ;;  %v326_v31 = vld [vmem:[#allocation2 + $0x7f0] sm:$0xff] }
  0xbb   :  { %1672 = vmatpush.msrb.mxu0 %v369_v37  ;;  %1692 = vmatpush.msrb.mxu1 %v433_v38  ;;  %v485_v51 = vld [vmem:[#allocation2 + $0xce8] sm:$0xff]  ;;  %v254_v32 = vld [vmem:[#allocation2 + $0x5b0] sm:$0xff] }
  0xbc   :  { %1712 = vmatpush.msrb.mxu2 %v497_v39  ;;  %1731 = vmatpush.msrb.mxu3 %v565_v40  ;;  %v553_v52 = vld [vmem:[#allocation2 + $0xf08] sm:$0xff]  ;;  %v322_v33 = vld [vmem:[#allocation2 + $0x7d0] sm:$0xff] }
  0xbd   :  { %1673 = vmatpush.msrb.mxu0 %v365_v41  ;;  %1693 = vmatpush.msrb.mxu1 %v429_v42  ;;  %v353_v53 = vld [vmem:[#allocation2 + $0x8c8] sm:$0xff]  ;;  %v186_v34 = vld [vmem:[#allocation2 + $0x390] sm:$0xff] }
  0xbe   :  { %1713 = vmatpush.msrb.mxu2 %v493_v43  ;;  %1732 = vmatpush.msrb.mxu3 %v561_v44  ;;  %v417_v54 = vld [vmem:[#allocation2 + $0xac8] sm:$0xff]  ;;  %v250_v35 = vld [vmem:[#allocation2 + $0x590] sm:$0xff] }
  0xbf   :  { %1674 = vmatpush.msrb.mxu0 %v361_v45  ;;  %1694 = vmatpush.msrb.mxu1 %v425_v46  ;;  %v481_v55 = vld [vmem:[#allocation2 + $0xcc8] sm:$0xff]  ;;  %v318_v36 = vld [vmem:[#allocation2 + $0x7b0] sm:$0xff] }
  0xc0   :  { %1714 = vmatpush.msrb.mxu2 %v489_v47  ;;  %1733 = vmatpush.msrb.mxu3 %v557_v48  ;;  %v549_v56 = vld [vmem:[#allocation2 + $0xee8] sm:$0xff]  ;;  %v118_v37 = vld [vmem:[#allocation2 + $0x170] sm:$0xff] }
  0xc1   :  { %1675 = vmatpush.msrb.mxu0 %v357_v49  ;;  %1695 = vmatpush.msrb.mxu1 %v421_v50  ;;  %v349_v58 = vld [vmem:[#allocation2 + $0x8a8] sm:$0xff]  ;;  %v182_v38 = vld [vmem:[#allocation2 + $0x370] sm:$0xff] }
  0xc2   :  { %1715 = vmatpush.msrb.mxu2 %v485_v51  ;;  %1734 = vmatpush.msrb.mxu3 %v553_v52  ;;  %v413_v59 = vld [vmem:[#allocation2 + $0xaa8] sm:$0xff]  ;;  %v246_v39 = vld [vmem:[#allocation2 + $0x570] sm:$0xff] }
  0xc3   :  { %1676 = vmatpush.msrb.mxu0 %v353_v53  ;;  %1696 = vmatpush.msrb.mxu1 %v417_v54  ;;  %v477_v60 = vld [vmem:[#allocation2 + $0xca8] sm:$0xff]  ;;  %v314_v40 = vld [vmem:[#allocation2 + $0x790] sm:$0xff] }
  0xc4   :  { %v545_v61 = vld [vmem:[#allocation2 + $0xec8] sm:$0xff]  ;;  %1716 = vmatpush.msrb.mxu2 %v481_v55  ;;  %1735 = vmatpush.msrb.mxu3 %v549_v56  ;;  %v178_v41 = vld [vmem:[#allocation2 + $0x350] sm:$0xff] }
  0xc5   :  { %v345_v0 = vld [vmem:[#allocation2 + $0x888] sm:$0xff]  ;;  %1677 = vmatpush.msrb.mxu0 %v349_v58  ;;  %1697 = vmatpush.msrb.mxu1 %v413_v59  ;;  %v242_v42 = vld [vmem:[#allocation2 + $0x550] sm:$0xff] }
  0xc6   :  { %v409_v1 = vld [vmem:[#allocation2 + $0xa88] sm:$0xff]  ;;  %1717 = vmatpush.msrb.mxu2 %v477_v60  ;;  %1736 = vmatpush.msrb.mxu3 %v545_v61  ;;  %v310_v43 = vld [vmem:[#allocation2 + $0x770] sm:$0xff] }
  0xc7   :  { %v473_v2 = vld [vmem:[#allocation2 + $0xc88] sm:$0xff]  ;;  %1678 = vmatpush.msrb.mxu0 %v345_v0  ;;  %1698 = vmatpush.msrb.mxu1 %v409_v1  ;;  %v238_v44 = vld [vmem:[#allocation2 + $0x530] sm:$0xff] }
  0xc8   :  { %v541_v3 = vld [vmem:[#allocation2 + $0xea8] sm:$0xff]  ;;  %1718 = vmatpush.msrb.mxu2 %v473_v2  ;;  %1603 = vmatmul.f32.vlgmr.msra.gmra.mxu0 %v3550_v62  ;;  %v126_v62 = vld [vmem:[#allocation2 + $0x1b0] sm:$0xff] }
  0xc9   :  { %v341_v5 = vld [vmem:[#allocation2 + $0x868] sm:$0xff]  ;;  %1737 = vmatpush.msrb.mxu3 %v541_v3  ;;  %1643 = vmatmul.f32.vlgmr.msra.gmra.mxu2 %v3548_v57  ;;  %v130_v57 = vld [vmem:[#allocation2 + $0x1d0] sm:$0xff] }
  0xca   :  { %v405_v6 = vld [vmem:[#allocation2 + $0xa68] sm:$0xff]  ;;  %1679 = vmatpush.msrb.mxu0 %v341_v5  ;;  %1663 = vmatmul.f32.vlgmr.msra.gmra.mxu3 %v3553_v63  ;;  %v190_v63 = vld [vmem:[#allocation2 + $0x3b0] sm:$0xff] }
  0xcb   :  { %v469_v7 = vld [vmem:[#allocation2 + $0xc68] sm:$0xff]  ;;  %1699 = vmatpush.msrb.mxu1 %v405_v6  ;;  %v306_v45 = vld [vmem:[#allocation2 + $0x750] sm:$0xff] }
  0xcc   :  { %v537_v8 = vld [vmem:[#allocation2 + $0xe88] sm:$0xff]  ;;  %1719 = vmatpush.msrb.mxu2 %v469_v7  ;;  %1623 = vmatmul.f32.vlgmr.msra.gmra.mxu1 %v3556_v4  ;;  %v122_v4 = vld [vmem:[#allocation2 + $0x190] sm:$0xff] }
  0xcd   :  { %v337_v9 = vld [vmem:[#allocation2 + $0x848] sm:$0xff]  ;;  %1738 = vmatpush.msrb.mxu3 %v537_v8  ;;  %v106_v46 = vld [vmem:[#allocation2 + $0x110] sm:$0xff] }
  0xce   :  { %v401_v10 = vld [vmem:[#allocation2 + $0xa48] sm:$0xff]  ;;  %1680 = vmatpush.msrb.mxu0 %v337_v9  ;;  %v170_v47 = vld [vmem:[#allocation2 + $0x310] sm:$0xff] }
  0xcf   :  { %v465_v11 = vld [vmem:[#allocation2 + $0xc48] sm:$0xff]  ;;  %1700 = vmatpush.msrb.mxu1 %v401_v10  ;;  %v302_v48 = vld [vmem:[#allocation2 + $0x730] sm:$0xff] }
  0xd0   :  { %v533_v12 = vld [vmem:[#allocation2 + $0xe68] sm:$0xff]  ;;  %1720 = vmatpush.msrb.mxu2 %v465_v11  ;;  %v102_v49 = vld [vmem:[#allocation2 + $0xf0] sm:$0xff] }
  0xd1   :  { %v333_v14 = vld [vmem:[#allocation2 + $0x828] sm:$0xff]  ;;  %1739 = vmatpush.msrb.mxu3 %v533_v12  ;;  %v166_v50 = vld [vmem:[#allocation2 + $0x2f0] sm:$0xff] }
  0xd2   :  { %v397_v15 = vld [vmem:[#allocation2 + $0xa28] sm:$0xff]  ;;  %1681 = vmatpush.msrb.mxu0 %v333_v14  ;;  %v230_v51 = vld [vmem:[#allocation2 + $0x4f0] sm:$0xff] }
  0xd3   :  { %v461_v16 = vld [vmem:[#allocation2 + $0xc28] sm:$0xff]  ;;  %1701 = vmatpush.msrb.mxu1 %v397_v15  ;;  %v298_v52 = vld [vmem:[#allocation2 + $0x710] sm:$0xff] }
  0xd4   :  { %v529_v17 = vld [vmem:[#allocation2 + $0xe48] sm:$0xff]  ;;  %1721 = vmatpush.msrb.mxu2 %v461_v16  ;;  %v98_v53 = vld [vmem:[#allocation2 + $0xd0] sm:$0xff] }
  0xd5   :  { %v329_v20 = vld [vmem:[#allocation2 + $0x808] sm:$0xff]  ;;  %1740 = vmatpush.msrb.mxu3 %v529_v17  ;;  %v162_v54 = vld [vmem:[#allocation2 + $0x2d0] sm:$0xff] }
  0xd6   :  { %v393_v21 = vld [vmem:[#allocation2 + $0xa08] sm:$0xff]  ;;  %1682 = vmatpush.msrb.mxu0 %v329_v20  ;;  %v226_v55 = vld [vmem:[#allocation2 + $0x4d0] sm:$0xff] }
  0xd7   :  { %v457_v22 = vld [vmem:[#allocation2 + $0xc08] sm:$0xff]  ;;  %1702 = vmatpush.msrb.mxu1 %v393_v21  ;;  %1683 = vmatmul.f32.vlgmr.msrb.gmra.mxu0 %v3562_v18  ;;  %v110_v18 = vld [vmem:[#allocation2 + $0x130] sm:$0xff] }
  0xd8   :  { %v525_v23 = vld [vmem:[#allocation2 + $0xe28] sm:$0xff]  ;;  %1722 = vmatpush.msrb.mxu2 %v457_v22  ;;  %1747 = vmatpush.msra.mxu0 %v134_v25  ;;  %v294_v56 = vld [vmem:[#allocation2 + $0x6f0] sm:$0xff] }
  0xd9   :  { %v521_v28 = vld [vmem:[#allocation2 + $0xe08] sm:$0xff]  ;;  %1741 = vmatpush.msrb.mxu3 %v525_v23  ;;  %1767 = vmatpush.msra.mxu1 %v198_v26  ;;  %v94_v58 = vld [vmem:[#allocation2 + $0xb0] sm:$0xff] }
  0xda   :  { %1787 = vmatpush.msra.mxu2 %v262_v27  ;;  %1748 = vmatpush.msra.mxu0 %v130_v57  ;;  %v158_v59 = vld [vmem:[#allocation2 + $0x2b0] sm:$0xff] }
  0xdb   :  { %1742 = vmatpush.msrb.mxu3 %v521_v28  ;;  %1768 = vmatpush.msra.mxu1 %v194_v29  ;;  %v222_v60 = vld [vmem:[#allocation2 + $0x4b0] sm:$0xff] }
  0xdc   :  { %1788 = vmatpush.msra.mxu2 %v258_v30  ;;  %1749 = vmatpush.msra.mxu0 %v126_v62  ;;  %v290_v61 = vld [vmem:[#allocation2 + $0x6d0] sm:$0xff] }
  0xdd   :  { %1807 = vmatpush.msra.mxu3 %v326_v31  ;;  %1723 = vmatmul.f32.vlgmr.msrb.gmra.mxu2 %v3560_v13  ;;  %v114_v13 = vld [vmem:[#allocation2 + $0x150] sm:$0xff] }
  0xde   :  { %1769 = vmatpush.msra.mxu1 %v190_v63  ;;  %1789 = vmatpush.msra.mxu2 %v254_v32  ;;  %v90_v0 = vld [vmem:[#allocation2 + $0x90] sm:$0xff] }
  0xdf   :  { %1808 = vmatpush.msra.mxu3 %v322_v33  ;;  %1750 = vmatpush.msra.mxu0 %v122_v4  ;;  %v154_v1 = vld [vmem:[#allocation2 + $0x290] sm:$0xff] }
  0xe0   :  { %1743 = vmatmul.f32.vlgmr.msrb.gmra.mxu3 %v3565_v19  ;;  %1770 = vmatpush.msra.mxu1 %v186_v34  ;;  %v174_v19 = vld [vmem:[#allocation2 + $0x330] sm:$0xff] }
  0xe1   :  { %1790 = vmatpush.msra.mxu2 %v250_v35  ;;  %1809 = vmatpush.msra.mxu3 %v318_v36  ;;  %v218_v2 = vld [vmem:[#allocation2 + $0x490] sm:$0xff] }
  0xe2   :  { %1703 = vmatmul.f32.vlgmr.msrb.gmra.mxu1 %v3568_v24  ;;  %1751 = vmatpush.msra.mxu0 %v118_v37  ;;  %v234_v24 = vld [vmem:[#allocation2 + $0x510] sm:$0xff] }
  0xe3   :  { %1771 = vmatpush.msra.mxu1 %v182_v38  ;;  %1791 = vmatpush.msra.mxu2 %v246_v39  ;;  %v286_v3 = vld [vmem:[#allocation2 + $0x6b0] sm:$0xff] }
  0xe4   :  { %1810 = vmatpush.msra.mxu3 %v314_v40  ;;  %1752 = vmatpush.msra.mxu0 %v114_v13  ;;  %v86_v5 = vld [vmem:[#allocation2 + $0x70] sm:$0xff] }
  0xe5   :  { %1772 = vmatpush.msra.mxu1 %v178_v41  ;;  %1792 = vmatpush.msra.mxu2 %v242_v42  ;;  %v150_v6 = vld [vmem:[#allocation2 + $0x270] sm:$0xff] }
  0xe6   :  { %1811 = vmatpush.msra.mxu3 %v310_v43  ;;  %1753 = vmatpush.msra.mxu0 %v110_v18  ;;  %v214_v7 = vld [vmem:[#allocation2 + $0x470] sm:$0xff] }
  0xe7   :  { %1773 = vmatpush.msra.mxu1 %v174_v19  ;;  %1793 = vmatpush.msra.mxu2 %v238_v44  ;;  %v282_v8 = vld [vmem:[#allocation2 + $0x690] sm:$0xff] }
  0xe8   :  { %1812 = vmatpush.msra.mxu3 %v306_v45  ;;  %1754 = vmatpush.msra.mxu0 %v106_v46  ;;  %v82_v9 = vld [vmem:[#allocation2 + $0x50] sm:$0xff] }
  0xe9   :  { %1774 = vmatpush.msra.mxu1 %v170_v47  ;;  %1794 = vmatpush.msra.mxu2 %v234_v24  ;;  %v146_v10 = vld [vmem:[#allocation2 + $0x250] sm:$0xff] }
  0xea   :  { %1813 = vmatpush.msra.mxu3 %v302_v48  ;;  %1755 = vmatpush.msra.mxu0 %v102_v49  ;;  %v210_v11 = vld [vmem:[#allocation2 + $0x450] sm:$0xff] }
  0xeb   :  { %1775 = vmatpush.msra.mxu1 %v166_v50  ;;  %1795 = vmatpush.msra.mxu2 %v230_v51  ;;  %v278_v12 = vld [vmem:[#allocation2 + $0x670] sm:$0xff] }
  0xec   :  { %1814 = vmatpush.msra.mxu3 %v298_v52  ;;  %1756 = vmatpush.msra.mxu0 %v98_v53  ;;  %v78_v14 = vld [vmem:[#allocation2 + $0x30] sm:$0xff] }
  0xed   :  { %1776 = vmatpush.msra.mxu1 %v162_v54  ;;  %1796 = vmatpush.msra.mxu2 %v226_v55  ;;  %v142_v15 = vld [vmem:[#allocation2 + $0x230] sm:$0xff] }
  0xee   :  { %1815 = vmatpush.msra.mxu3 %v294_v56  ;;  %1757 = vmatpush.msra.mxu0 %v94_v58  ;;  %v206_v16 = vld [vmem:[#allocation2 + $0x430] sm:$0xff] }
  0xef   :  { %1777 = vmatpush.msra.mxu1 %v158_v59  ;;  %1797 = vmatpush.msra.mxu2 %v222_v60  ;;  %v274_v17 = vld [vmem:[#allocation2 + $0x650] sm:$0xff] }
  0xf0   :  { %1816 = vmatpush.msra.mxu3 %v290_v61  ;;  %1758 = vmatpush.msra.mxu0 %v90_v0  ;;  %v74_v20 = vld [vmem:[#allocation2 + $0x10] sm:$0xff] }
  0xf1   :  { %1778 = vmatpush.msra.mxu1 %v154_v1  ;;  %1798 = vmatpush.msra.mxu2 %v218_v2  ;;  %v138_v21 = vld [vmem:[#allocation2 + $0x210] sm:$0xff] }
  0xf2   :  { %1817 = vmatpush.msra.mxu3 %v286_v3  ;;  %1759 = vmatpush.msra.mxu0 %v86_v5  ;;  %v202_v22 = vld [vmem:[#allocation2 + $0x410] sm:$0xff] }
  0xf3   :  { %1779 = vmatpush.msra.mxu1 %v150_v6  ;;  %1799 = vmatpush.msra.mxu2 %v214_v7  ;;  %v270_v23 = vld [vmem:[#allocation2 + $0x630] sm:$0xff] }
  0xf4   :  { %1818 = vmatpush.msra.mxu3 %v282_v8  ;;  %1760 = vmatpush.msra.mxu0 %v82_v9  ;;  %v390_v25 = vld [vmem:[#allocation2 + $0x9f0] sm:$0xff]  ;;  %v3580_v9 = vld.sshfl [vmem:[#allocation1 + $0x10] sm:$0xff pattern:$0x73625140] }
  0xf5   :  { %1780 = vmatpush.msra.mxu1 %v146_v10  ;;  %1800 = vmatpush.msra.mxu2 %v210_v11  ;;  %v454_v26 = vld [vmem:[#allocation2 + $0xbf0] sm:$0xff] }
  0xf6   :  { %1819 = vmatpush.msra.mxu3 %v278_v12  ;;  %1761 = vmatpush.msra.mxu0 %v78_v14  ;;  %v518_v27 = vld [vmem:[#allocation2 + $0xdf0] sm:$0xff]  ;;  %v3583_v14 = vld.sshfl [vmem:[#allocation1] sm:$0xff pattern:$0x73625140] }
  0xf7   :  { %1781 = vmatpush.msra.mxu1 %v142_v15  ;;  %1801 = vmatpush.msra.mxu2 %v206_v16  ;;  %v266_v28 = vld [vmem:[#allocation2 + $0x610] sm:$0xff] }
  0xf8   :  { %1820 = vmatpush.msra.mxu3 %v274_v17  ;;  %1762 = vmatpush.msra.mxu0 %v74_v20  ;;  %v386_v57 = vld [vmem:[#allocation2 + $0x9d0] sm:$0xff] }
  0xf9   :  { %1782 = vmatpush.msra.mxu1 %v138_v21  ;;  %1802 = vmatpush.msra.mxu2 %v202_v22  ;;  %v450_v29 = vld [vmem:[#allocation2 + $0xbd0] sm:$0xff] }
  0xfa   :  { %1821 = vmatpush.msra.mxu3 %v270_v23  ;;  %1827 = vmatpush.msrb.mxu0 %v390_v25  ;;  %v514_v30 = vld [vmem:[#allocation2 + $0xdd0] sm:$0xff]  ;;  %v3589_v23 = vld.sshfl [vmem:[#allocation1 + $0x8] sm:$0xff pattern:$0x73625140] }
  0xfb   :  { %1847 = vmatpush.msrb.mxu1 %v454_v26  ;;  %v582_v31 = vld [vmem:[#allocation2 + $0xff0] sm:$0xff]  ;;  %1867 = vmatpush.msrb.mxu2 %v518_v27 }
  0xfc   :  { %1822 = vmatpush.msra.mxu3 %v266_v28  ;;  %v382_v62 = vld [vmem:[#allocation2 + $0x9b0] sm:$0xff]  ;;  %1828 = vmatpush.msrb.mxu0 %v386_v57  ;;  %v135_v57 = vld [vmem:[#allocation2 + $0x1f8] sm:$0xff] }
  0xfd   :  { %v446_v63 = vld [vmem:[#allocation2 + $0xbb0] sm:$0xff]  ;;  %1848 = vmatpush.msrb.mxu1 %v450_v29  ;;  %1868 = vmatpush.msrb.mxu2 %v514_v30  ;;  %v199_v29 = vld [vmem:[#allocation2 + $0x3f8] sm:$0xff] }
  0xfe   :  { %v510_v32 = vld [vmem:[#allocation2 + $0xdb0] sm:$0xff]  ;;  %1887 = vmatpush.msrb.mxu3 %v582_v31  ;;  %1829 = vmatpush.msrb.mxu0 %v382_v62  ;;  %v263_v30 = vld [vmem:[#allocation2 + $0x5f8] sm:$0xff]  ;;  %v3592_v62 = vld.sshfl [vmem:[#allocation1 + $0x30] sm:$0xff pattern:$0x73625140] }
  0xff   :  { %v578_v33 = vld [vmem:[#allocation2 + $0xfd0] sm:$0xff]  ;;  %1849 = vmatpush.msrb.mxu1 %v446_v63  ;;  %1869 = vmatpush.msrb.mxu2 %v510_v32  ;;  %v131_v63 = vld [vmem:[#allocation2 + $0x1d8] sm:$0xff] }
 0x100   :  { %v378_v4 = vld [vmem:[#allocation2 + $0x990] sm:$0xff]  ;;  %1888 = vmatpush.msrb.mxu3 %v578_v33  ;;  %1803 = vmatmul.f32.vlgmr.msra.gmra.mxu2 %v3580_v9  ;;  %v195_v32 = vld [vmem:[#allocation2 + $0x3d8] sm:$0xff] }
 0x101   :  { %v442_v34 = vld [vmem:[#allocation2 + $0xb90] sm:$0xff]  ;;  %1830 = vmatpush.msrb.mxu0 %v378_v4  ;;  %1783 = vmatmul.f32.vlgmr.msra.gmra.mxu1 %v3589_v23  ;;  %v259_v33 = vld [vmem:[#allocation2 + $0x5d8] sm:$0xff] }
 0x102   :  { %v506_v35 = vld [vmem:[#allocation2 + $0xd90] sm:$0xff]  ;;  %1850 = vmatpush.msrb.mxu1 %v442_v34  ;;  %1763 = vmatmul.f32.vlgmr.msra.gmra.mxu0 %v3583_v14  ;;  %v3595_v4 = vld.sshfl [vmem:[#allocation1 + $0x20] sm:$0xff pattern:$0x73625140] }
 0x103   :  { %v574_v36 = vld [vmem:[#allocation2 + $0xfb0] sm:$0xff]  ;;  %1870 = vmatpush.msrb.mxu2 %v506_v35  ;;  %v327_v34 = vld [vmem:[#allocation2 + $0x7f8] sm:$0xff] }
 0x104   :  { %v374_v37 = vld [vmem:[#allocation2 + $0x970] sm:$0xff]  ;;  %1889 = vmatpush.msrb.mxu3 %v574_v36  ;;  %v127_v36 = vld [vmem:[#allocation2 + $0x1b8] sm:$0xff] }
 0x105   :  { %v438_v38 = vld [vmem:[#allocation2 + $0xb70] sm:$0xff]  ;;  %1831 = vmatpush.msrb.mxu0 %v374_v37  ;;  %v191_v37 = vld [vmem:[#allocation2 + $0x3b8] sm:$0xff] }
 0x106   :  { %v502_v39 = vld [vmem:[#allocation2 + $0xd70] sm:$0xff]  ;;  %1851 = vmatpush.msrb.mxu1 %v438_v38  ;;  %v255_v38 = vld [vmem:[#allocation2 + $0x5b8] sm:$0xff] }
 0x107   :  { %v570_v40 = vld [vmem:[#allocation2 + $0xf90] sm:$0xff]  ;;  %1871 = vmatpush.msrb.mxu2 %v502_v39  ;;  %v323_v39 = vld [vmem:[#allocation2 + $0x7d8] sm:$0xff] }
 0x108   :  { %v370_v13 = vld [vmem:[#allocation2 + $0x950] sm:$0xff]  ;;  %1890 = vmatpush.msrb.mxu3 %v570_v40  ;;  %v3601_v40 = vld.sshfl [vmem:[#allocation1 + $0x28] sm:$0xff pattern:$0x73625140] }
 0x109   :  { %v434_v41 = vld [vmem:[#allocation2 + $0xb50] sm:$0xff]  ;;  %1832 = vmatpush.msrb.mxu0 %v370_v13  ;;  %v123_v13 = vld [vmem:[#allocation2 + $0x198] sm:$0xff] }
 0x10a   :  { %v498_v42 = vld [vmem:[#allocation2 + $0xd50] sm:$0xff]  ;;  %1852 = vmatpush.msrb.mxu1 %v434_v41  ;;  %v187_v41 = vld [vmem:[#allocation2 + $0x398] sm:$0xff] }
 0x10b   :  { %v566_v43 = vld [vmem:[#allocation2 + $0xf70] sm:$0xff]  ;;  %1872 = vmatpush.msrb.mxu2 %v498_v42  ;;  %v251_v42 = vld [vmem:[#allocation2 + $0x598] sm:$0xff] }
 0x10c   :  { %v366_v18 = vld [vmem:[#allocation2 + $0x930] sm:$0xff]  ;;  %1891 = vmatpush.msrb.mxu3 %v566_v43  ;;  %v319_v43 = vld [vmem:[#allocation2 + $0x7b8] sm:$0xff] }
 0x10d   :  { %v430_v19 = vld [vmem:[#allocation2 + $0xb30] sm:$0xff]  ;;  %1833 = vmatpush.msrb.mxu0 %v366_v18  ;;  %v119_v18 = vld [vmem:[#allocation2 + $0x178] sm:$0xff] }
 0x10e   :  { %v494_v44 = vld [vmem:[#allocation2 + $0xd30] sm:$0xff]  ;;  %1853 = vmatpush.msrb.mxu1 %v430_v19  ;;  %v183_v19 = vld [vmem:[#allocation2 + $0x378] sm:$0xff] }
 0x10f   :  { %v562_v45 = vld [vmem:[#allocation2 + $0xf50] sm:$0xff]  ;;  %1873 = vmatpush.msrb.mxu2 %v494_v44  ;;  %v247_v44 = vld [vmem:[#allocation2 + $0x578] sm:$0xff] }
 0x110   :  { %v362_v46 = vld [vmem:[#allocation2 + $0x910] sm:$0xff]  ;;  %1892 = vmatpush.msrb.mxu3 %v562_v45  ;;  %v315_v45 = vld [vmem:[#allocation2 + $0x798] sm:$0xff] }
 0x111   :  { %v426_v47 = vld [vmem:[#allocation2 + $0xb10] sm:$0xff]  ;;  %1834 = vmatpush.msrb.mxu0 %v362_v46  ;;  %v115_v46 = vld [vmem:[#allocation2 + $0x158] sm:$0xff] }
 0x112   :  { %v490_v24 = vld [vmem:[#allocation2 + $0xd10] sm:$0xff]  ;;  %1854 = vmatpush.msrb.mxu1 %v426_v47  ;;  %v179_v47 = vld [vmem:[#allocation2 + $0x358] sm:$0xff] }
 0x113   :  { %v558_v48 = vld [vmem:[#allocation2 + $0xf30] sm:$0xff]  ;;  %1874 = vmatpush.msrb.mxu2 %v490_v24  ;;  %v243_v24 = vld [vmem:[#allocation2 + $0x558] sm:$0xff] }
 0x114   :  { %v358_v49 = vld [vmem:[#allocation2 + $0x8f0] sm:$0xff]  ;;  %1893 = vmatpush.msrb.mxu3 %v558_v48  ;;  %v311_v48 = vld [vmem:[#allocation2 + $0x778] sm:$0xff] }
 0x115   :  { %v422_v50 = vld [vmem:[#allocation2 + $0xaf0] sm:$0xff]  ;;  %1835 = vmatpush.msrb.mxu0 %v358_v49  ;;  %v111_v49 = vld [vmem:[#allocation2 + $0x138] sm:$0xff] }
 0x116   :  { %v486_v51 = vld [vmem:[#allocation2 + $0xcf0] sm:$0xff]  ;;  %1855 = vmatpush.msrb.mxu1 %v422_v50  ;;  %v175_v50 = vld [vmem:[#allocation2 + $0x338] sm:$0xff] }
 0x117   :  { %v554_v52 = vld [vmem:[#allocation2 + $0xf10] sm:$0xff]  ;;  %1875 = vmatpush.msrb.mxu2 %v486_v51  ;;  %v239_v51 = vld [vmem:[#allocation2 + $0x538] sm:$0xff] }
 0x118   :  { %v354_v53 = vld [vmem:[#allocation2 + $0x8d0] sm:$0xff]  ;;  %1894 = vmatpush.msrb.mxu3 %v554_v52  ;;  %v307_v52 = vld [vmem:[#allocation2 + $0x758] sm:$0xff] }
 0x119   :  { %v418_v54 = vld [vmem:[#allocation2 + $0xad0] sm:$0xff]  ;;  %1836 = vmatpush.msrb.mxu0 %v354_v53  ;;  %v107_v53 = vld [vmem:[#allocation2 + $0x118] sm:$0xff] }
 0x11a   :  { %v482_v55 = vld [vmem:[#allocation2 + $0xcd0] sm:$0xff]  ;;  %1856 = vmatpush.msrb.mxu1 %v418_v54  ;;  %v171_v54 = vld [vmem:[#allocation2 + $0x318] sm:$0xff] }
 0x11b   :  { %v550_v56 = vld [vmem:[#allocation2 + $0xef0] sm:$0xff]  ;;  %1876 = vmatpush.msrb.mxu2 %v482_v55  ;;  %v235_v55 = vld [vmem:[#allocation2 + $0x518] sm:$0xff] }
 0x11c   :  { %v350_v58 = vld [vmem:[#allocation2 + $0x8b0] sm:$0xff]  ;;  %1895 = vmatpush.msrb.mxu3 %v550_v56  ;;  %v303_v56 = vld [vmem:[#allocation2 + $0x738] sm:$0xff] }
 0x11d   :  { %v414_v59 = vld [vmem:[#allocation2 + $0xab0] sm:$0xff]  ;;  %1837 = vmatpush.msrb.mxu0 %v350_v58  ;;  %v103_v58 = vld [vmem:[#allocation2 + $0xf8] sm:$0xff] }
 0x11e   :  { %v478_v60 = vld [vmem:[#allocation2 + $0xcb0] sm:$0xff]  ;;  %1857 = vmatpush.msrb.mxu1 %v414_v59  ;;  %v167_v59 = vld [vmem:[#allocation2 + $0x2f8] sm:$0xff] }
 0x11f   :  { %v546_v61 = vld [vmem:[#allocation2 + $0xed0] sm:$0xff]  ;;  %1877 = vmatpush.msrb.mxu2 %v478_v60  ;;  %v231_v60 = vld [vmem:[#allocation2 + $0x4f8] sm:$0xff] }
 0x120   :  { %v346_v0 = vld [vmem:[#allocation2 + $0x890] sm:$0xff]  ;;  %1896 = vmatpush.msrb.mxu3 %v546_v61  ;;  %v299_v61 = vld [vmem:[#allocation2 + $0x718] sm:$0xff] }
 0x121   :  { %v410_v1 = vld [vmem:[#allocation2 + $0xa90] sm:$0xff]  ;;  %1838 = vmatpush.msrb.mxu0 %v346_v0  ;;  %v99_v0 = vld [vmem:[#allocation2 + $0xd8] sm:$0xff] }
 0x122   :  { %v474_v2 = vld [vmem:[#allocation2 + $0xc90] sm:$0xff]  ;;  %1858 = vmatpush.msrb.mxu1 %v410_v1  ;;  %v163_v1 = vld [vmem:[#allocation2 + $0x2d8] sm:$0xff] }
 0x123   :  { %v542_v3 = vld [vmem:[#allocation2 + $0xeb0] sm:$0xff]  ;;  %1878 = vmatpush.msrb.mxu2 %v474_v2  ;;  %v227_v2 = vld [vmem:[#allocation2 + $0x4d8] sm:$0xff] }
 0x124   :  { %v342_v5 = vld [vmem:[#allocation2 + $0x870] sm:$0xff]  ;;  %1897 = vmatpush.msrb.mxu3 %v542_v3  ;;  %v295_v3 = vld [vmem:[#allocation2 + $0x6f8] sm:$0xff] }
 0x125   :  { %v406_v6 = vld [vmem:[#allocation2 + $0xa70] sm:$0xff]  ;;  %1839 = vmatpush.msrb.mxu0 %v342_v5  ;;  %v95_v5 = vld [vmem:[#allocation2 + $0xb8] sm:$0xff] }
 0x126   :  { %v470_v7 = vld [vmem:[#allocation2 + $0xc70] sm:$0xff]  ;;  %1859 = vmatpush.msrb.mxu1 %v406_v6  ;;  %v159_v6 = vld [vmem:[#allocation2 + $0x2b8] sm:$0xff] }
 0x127   :  { %v538_v8 = vld [vmem:[#allocation2 + $0xe90] sm:$0xff]  ;;  %1879 = vmatpush.msrb.mxu2 %v470_v7  ;;  %v223_v7 = vld [vmem:[#allocation2 + $0x4b8] sm:$0xff] }
 0x128   :  { %v338_v10 = vld [vmem:[#allocation2 + $0x850] sm:$0xff]  ;;  %1898 = vmatpush.msrb.mxu3 %v538_v8  ;;  %v291_v8 = vld [vmem:[#allocation2 + $0x6d8] sm:$0xff] }
 0x129   :  { %v402_v11 = vld [vmem:[#allocation2 + $0xa50] sm:$0xff]  ;;  %1840 = vmatpush.msrb.mxu0 %v338_v10  ;;  %v91_v10 = vld [vmem:[#allocation2 + $0x98] sm:$0xff] }
 0x12a   :  { %v466_v12 = vld [vmem:[#allocation2 + $0xc50] sm:$0xff]  ;;  %1860 = vmatpush.msrb.mxu1 %v402_v11  ;;  %v155_v11 = vld [vmem:[#allocation2 + $0x298] sm:$0xff] }
 0x12b   :  { %v534_v15 = vld [vmem:[#allocation2 + $0xe70] sm:$0xff]  ;;  %1880 = vmatpush.msrb.mxu2 %v466_v12  ;;  %v219_v12 = vld [vmem:[#allocation2 + $0x498] sm:$0xff] }
 0x12c   :  { %v3586_v16 = vld.sshfl [vmem:[#allocation1 + $0x18] sm:$0xff pattern:$0x73625140]  ;;  %1899 = vmatpush.msrb.mxu3 %v534_v15  ;;  %v287_v15 = vld [vmem:[#allocation2 + $0x6b8] sm:$0xff] }
 0x12d   :  { %1823 = vmatmul.f32.vlgmr.msra.gmra.mxu3 %v3586_v16  ;;  %v334_v17 = vld [vmem:[#allocation2 + $0x830] sm:$0xff] }
 0x12e   :  { %v398_v20 = vld [vmem:[#allocation2 + $0xa30] sm:$0xff]  ;;  %1841 = vmatpush.msrb.mxu0 %v334_v17  ;;  %v87_v17 = vld [vmem:[#allocation2 + $0x78] sm:$0xff] }
 0x12f   :  { %v462_v21 = vld [vmem:[#allocation2 + $0xc30] sm:$0xff]  ;;  %1861 = vmatpush.msrb.mxu1 %v398_v20  ;;  %v151_v20 = vld [vmem:[#allocation2 + $0x278] sm:$0xff] }
 0x130   :  { %v530_v22 = vld [vmem:[#allocation2 + $0xe50] sm:$0xff]  ;;  %1881 = vmatpush.msrb.mxu2 %v462_v21  ;;  %v215_v21 = vld [vmem:[#allocation2 + $0x478] sm:$0xff] }
 0x131   :  { %v330_v25 = vld [vmem:[#allocation2 + $0x810] sm:$0xff]  ;;  %1900 = vmatpush.msrb.mxu3 %v530_v22  ;;  %v283_v22 = vld [vmem:[#allocation2 + $0x698] sm:$0xff] }
 0x132   :  { %v394_v26 = vld [vmem:[#allocation2 + $0xa10] sm:$0xff]  ;;  %1842 = vmatpush.msrb.mxu0 %v330_v25  ;;  %v83_v25 = vld [vmem:[#allocation2 + $0x58] sm:$0xff] }
 0x133   :  { %v458_v27 = vld [vmem:[#allocation2 + $0xc10] sm:$0xff]  ;;  %1862 = vmatpush.msrb.mxu1 %v394_v26  ;;  %1843 = vmatmul.f32.vlgmr.msrb.gmra.mxu0 %v3595_v4  ;;  %v147_v26 = vld [vmem:[#allocation2 + $0x258] sm:$0xff] }
 0x134   :  { %v526_v28 = vld [vmem:[#allocation2 + $0xe30] sm:$0xff]  ;;  %1882 = vmatpush.msrb.mxu2 %v458_v27  ;;  %1907 = vmatpush.msra.mxu0 %v135_v57  ;;  %v211_v27 = vld [vmem:[#allocation2 + $0x458] sm:$0xff] }
 0x135   :  { %1901 = vmatpush.msrb.mxu3 %v526_v28  ;;  %v522_v31 = vld [vmem:[#allocation2 + $0xe10] sm:$0xff]  ;;  %1883 = vmatmul.f32.vlgmr.msrb.gmra.mxu2 %v3592_v62  ;;  %v279_v28 = vld [vmem:[#allocation2 + $0x678] sm:$0xff] }
 0x136   :  { %1927 = vmatpush.msra.mxu1 %v199_v29  ;;  %1947 = vmatpush.msra.mxu2 %v263_v30  ;;  %v3598_v35 = vld.sshfl [vmem:[#allocation1 + $0x38] sm:$0xff pattern:$0x73625140]  ;;  %v79_v57 = vld [vmem:[#allocation2 + $0x38] sm:$0xff] }
 0x137   :  { %1902 = vmatpush.msrb.mxu3 %v522_v31  ;;  %1908 = vmatpush.msra.mxu0 %v131_v63  ;;  %v143_v29 = vld [vmem:[#allocation2 + $0x238] sm:$0xff] }
 0x138   :  { %1903 = vmatmul.f32.vlgmr.msrb.gmra.mxu3 %v3598_v35  ;;  %1928 = vmatpush.msra.mxu1 %v195_v32  ;;  %v207_v30 = vld [vmem:[#allocation2 + $0x438] sm:$0xff] }
 0x139   :  { %1948 = vmatpush.msra.mxu2 %v259_v33  ;;  %1967 = vmatpush.msra.mxu3 %v327_v34  ;;  %v275_v31 = vld [vmem:[#allocation2 + $0x658] sm:$0xff] }
 0x13a   :  { %1863 = vmatmul.f32.vlgmr.msrb.gmra.mxu1 %v3601_v40  ;;  %1909 = vmatpush.msra.mxu0 %v127_v36  ;;  %v75_v63 = vld [vmem:[#allocation2 + $0x18] sm:$0xff] }
 0x13b   :  { %1929 = vmatpush.msra.mxu1 %v191_v37  ;;  %1949 = vmatpush.msra.mxu2 %v255_v38  ;;  %v139_v32 = vld [vmem:[#allocation2 + $0x218] sm:$0xff] }
 0x13c   :  { %1968 = vmatpush.msra.mxu3 %v323_v39  ;;  %1910 = vmatpush.msra.mxu0 %v123_v13  ;;  %v203_v33 = vld [vmem:[#allocation2 + $0x418] sm:$0xff] }
 0x13d   :  { %1930 = vmatpush.msra.mxu1 %v187_v41  ;;  %1950 = vmatpush.msra.mxu2 %v251_v42  ;;  %v271_v34 = vld [vmem:[#allocation2 + $0x638] sm:$0xff] }
 0x13e   :  { %1969 = vmatpush.msra.mxu3 %v319_v43  ;;  %1911 = vmatpush.msra.mxu0 %v119_v18  ;;  %v391_v36 = vld [vmem:[#allocation2 + $0x9f8] sm:$0xff] }
 0x13f   :  { %1931 = vmatpush.msra.mxu1 %v183_v19  ;;  %1951 = vmatpush.msra.mxu2 %v247_v44  ;;  %v455_v37 = vld [vmem:[#allocation2 + $0xbf8] sm:$0xff] }
 0x140   :  { %1970 = vmatpush.msra.mxu3 %v315_v45  ;;  %1912 = vmatpush.msra.mxu0 %v115_v46  ;;  %v519_v38 = vld [vmem:[#allocation2 + $0xdf8] sm:$0xff] }
 0x141   :  { %1932 = vmatpush.msra.mxu1 %v179_v47  ;;  %1952 = vmatpush.msra.mxu2 %v243_v24  ;;  %v267_v39 = vld [vmem:[#allocation2 + $0x618] sm:$0xff] }
 0x142   :  { %1971 = vmatpush.msra.mxu3 %v311_v48  ;;  %1913 = vmatpush.msra.mxu0 %v111_v49  ;;  %v387_v13 = vld [vmem:[#allocation2 + $0x9d8] sm:$0xff] }
 0x143   :  { %1933 = vmatpush.msra.mxu1 %v175_v50  ;;  %1953 = vmatpush.msra.mxu2 %v239_v51  ;;  %v451_v41 = vld [vmem:[#allocation2 + $0xbd8] sm:$0xff] }
 0x144   :  { %1972 = vmatpush.msra.mxu3 %v307_v52  ;;  %1914 = vmatpush.msra.mxu0 %v107_v53  ;;  %v515_v42 = vld [vmem:[#allocation2 + $0xdd8] sm:$0xff] }
 0x145   :  { %1934 = vmatpush.msra.mxu1 %v171_v54  ;;  %1954 = vmatpush.msra.mxu2 %v235_v55  ;;  %v583_v43 = vld [vmem:[#allocation2 + $0xff8] sm:$0xff] }
 0x146   :  { %1973 = vmatpush.msra.mxu3 %v303_v56  ;;  %1915 = vmatpush.msra.mxu0 %v103_v58  ;;  %v383_v18 = vld [vmem:[#allocation2 + $0x9b8] sm:$0xff] }
 0x147   :  { %1935 = vmatpush.msra.mxu1 %v167_v59  ;;  %1955 = vmatpush.msra.mxu2 %v231_v60  ;;  %v447_v19 = vld [vmem:[#allocation2 + $0xbb8] sm:$0xff] }
 0x148   :  { %1974 = vmatpush.msra.mxu3 %v299_v61  ;;  %1916 = vmatpush.msra.mxu0 %v99_v0  ;;  %v511_v44 = vld [vmem:[#allocation2 + $0xdb8] sm:$0xff] }
 0x149   :  { %1936 = vmatpush.msra.mxu1 %v163_v1  ;;  %1956 = vmatpush.msra.mxu2 %v227_v2  ;;  %v579_v45 = vld [vmem:[#allocation2 + $0xfd8] sm:$0xff] }
 0x14a   :  { %1975 = vmatpush.msra.mxu3 %v295_v3  ;;  %1917 = vmatpush.msra.mxu0 %v95_v5  ;;  %v379_v46 = vld [vmem:[#allocation2 + $0x998] sm:$0xff]  ;;  %v3604_v5 = vpop.f32.mrf.mxu1 }
 0x14b   :  { %1937 = vmatpush.msra.mxu1 %v159_v6  ;;  %1957 = vmatpush.msra.mxu2 %v223_v7  ;;  %v443_v47 = vld [vmem:[#allocation2 + $0xb98] sm:$0xff] }
 0x14c   :  { %1976 = vmatpush.msra.mxu3 %v291_v8  ;;  %1918 = vmatpush.msra.mxu0 %v91_v10  ;;  %v507_v24 = vld [vmem:[#allocation2 + $0xd98] sm:$0xff] }
 0x14d   :  { %1938 = vmatpush.msra.mxu1 %v155_v11  ;;  %1958 = vmatpush.msra.mxu2 %v219_v12  ;;  %v575_v48 = vld [vmem:[#allocation2 + $0xfb8] sm:$0xff]  ;;  %v3606_v11 = vpop.f32.mrf.mxu0 }
 0x14e   :  { %1977 = vmatpush.msra.mxu3 %v287_v15  ;;  %1919 = vmatpush.msra.mxu0 %v87_v17  ;;  %v375_v49 = vld [vmem:[#allocation2 + $0x978] sm:$0xff] }
 0x14f   :  { %1939 = vmatpush.msra.mxu1 %v151_v20  ;;  %1959 = vmatpush.msra.mxu2 %v215_v21  ;;  %v439_v50 = vld [vmem:[#allocation2 + $0xb78] sm:$0xff]  ;;  %v3608_v21 = vpop.f32.mrf.mxu2 }
 0x150   :  { %1978 = vmatpush.msra.mxu3 %v283_v22  ;;  %1920 = vmatpush.msra.mxu0 %v83_v25  ;;  %v503_v51 = vld [vmem:[#allocation2 + $0xd78] sm:$0xff] }
 0x151   :  { %1940 = vmatpush.msra.mxu1 %v147_v26  ;;  %1960 = vmatpush.msra.mxu2 %v211_v27  ;;  %v571_v52 = vld [vmem:[#allocation2 + $0xf98] sm:$0xff] }
 0x152   :  { %1979 = vmatpush.msra.mxu3 %v279_v28  ;;  %1921 = vmatpush.msra.mxu0 %v79_v57  ;;  %v371_v53 = vld [vmem:[#allocation2 + $0x958] sm:$0xff] }
 0x153   :  { %1941 = vmatpush.msra.mxu1 %v143_v29  ;;  %1961 = vmatpush.msra.mxu2 %v207_v30  ;;  %v435_v54 = vld [vmem:[#allocation2 + $0xb58] sm:$0xff]  ;;  %v3610_v30 = vpop.f32.mrf.mxu3 }
 0x154   :  { %1980 = vmatpush.msra.mxu3 %v275_v31  ;;  %1922 = vmatpush.msra.mxu0 %v75_v63  ;;  %v499_v55 = vld [vmem:[#allocation2 + $0xd58] sm:$0xff] }
 0x155   :  { %1942 = vmatpush.msra.mxu1 %v139_v32  ;;  %1962 = vmatpush.msra.mxu2 %v203_v33  ;;  %v567_v56 = vld [vmem:[#allocation2 + $0xf78] sm:$0xff]  ;;  %v3613_v32 = vpop.f32.mrf.mxu1 }
 0x156   :  { %1981 = vmatpush.msra.mxu3 %v271_v34  ;;  %1987 = vmatpush.msrb.mxu0 %v391_v36  ;;  %v367_v58 = vld [vmem:[#allocation2 + $0x938] sm:$0xff] }
 0x157   :  { %2007 = vmatpush.msrb.mxu1 %v455_v37  ;;  %2027 = vmatpush.msrb.mxu2 %v519_v38  ;;  %v431_v59 = vld [vmem:[#allocation2 + $0xb38] sm:$0xff]  ;;  %v3616_v37 = vpop.f32.mrf.mxu0 }
 0x158   :  { %1982 = vmatpush.msra.mxu3 %v267_v39  ;;  %1988 = vmatpush.msrb.mxu0 %v387_v13  ;;  %v495_v60 = vld [vmem:[#allocation2 + $0xd38] sm:$0xff] }
 0x159   :  { %2008 = vmatpush.msrb.mxu1 %v451_v41  ;;  %2028 = vmatpush.msrb.mxu2 %v515_v42  ;;  %v563_v61 = vld [vmem:[#allocation2 + $0xf58] sm:$0xff]  ;;  %v3619_v41 = vpop.f32.mrf.mxu2 }
 0x15a   :  { %2047 = vmatpush.msrb.mxu3 %v583_v43  ;;  %1989 = vmatpush.msrb.mxu0 %v383_v18  ;;  %v363_v0 = vld [vmem:[#allocation2 + $0x918] sm:$0xff] }
 0x15b   :  { %2009 = vmatpush.msrb.mxu1 %v447_v19  ;;  %2029 = vmatpush.msrb.mxu2 %v511_v44  ;;  %v427_v1 = vld [vmem:[#allocation2 + $0xb18] sm:$0xff] }
 0x15c   :  { %2048 = vmatpush.msrb.mxu3 %v579_v45  ;;  %1990 = vmatpush.msrb.mxu0 %v379_v46  ;;  %v491_v2 = vld [vmem:[#allocation2 + $0xd18] sm:$0xff]  ;;  %v3622_v46 = vpop.f32.mrf.mxu3 }
 0x15d   :  { %2010 = vmatpush.msrb.mxu1 %v443_v47  ;;  %2030 = vmatpush.msrb.mxu2 %v507_v24  ;;  %v559_v3 = vld [vmem:[#allocation2 + $0xf38] sm:$0xff]  ;;  %v1624_v47 = vpop.f32.mrf.mxu1  ;;  %v774_v24 = vld [vmem:[#allocation4 + $0x9b0] sm:$0xff] }
 0x15e   :  { %2049 = vmatpush.msrb.mxu3 %v575_v48  ;;  %1991 = vmatpush.msrb.mxu0 %v375_v49  ;;  %v359_v6 = vld [vmem:[#allocation2 + $0x8f8] sm:$0xff]  ;;  %v1465_v48 = vadd.f32 %v3604_v5, %v3606_v11  ;;  %v800_v5 = vld [vmem:[#allocation4 + $0xdc0] sm:$0xff]  ;;  %v730_v11 = vld [vmem:[#allocation4 + $0x2d0] sm:$0xff] }
 0x15f   :  { %2011 = vmatpush.msrb.mxu1 %v439_v50  ;;  %2031 = vmatpush.msrb.mxu2 %v503_v51  ;;  %v423_v7 = vld [vmem:[#allocation2 + $0xaf8] sm:$0xff]  ;;  %v1604_v49 = vpop.f32.mrf.mxu0 }
 0x160   :  { %2050 = vmatpush.msrb.mxu3 %v571_v52  ;;  %1992 = vmatpush.msrb.mxu0 %v371_v53  ;;  %v487_v8 = vld [vmem:[#allocation2 + $0xcf8] sm:$0xff]  ;;  %v1625_v51 = vadd.f32 %v1624_v47, %v1604_v49  ;;  %v740_v52 = vld [vmem:[#allocation4 + $0x460] sm:$0xff]  ;;  %v782_v47 = vld [vmem:[#allocation4 + $0xaf0] sm:$0xff] }
 0x161   :  { %2012 = vmatpush.msrb.mxu1 %v435_v54  ;;  %2032 = vmatpush.msrb.mxu2 %v499_v55  ;;  %v555_v10 = vld [vmem:[#allocation2 + $0xf18] sm:$0xff]  ;;  %v772_v53 = vld [vmem:[#allocation4 + $0x960] sm:$0xff]  ;;  %v1644_v54 = vpop.f32.mrf.mxu2  ;;  %v806_v55 = vld [vmem:[#allocation4 + $0xeb0] sm:$0xff] }
 0x162   :  { %2051 = vmatpush.msrb.mxu3 %v567_v56  ;;  %1993 = vmatpush.msrb.mxu0 %v367_v58  ;;  %v355_v12 = vld [vmem:[#allocation2 + $0x8d8] sm:$0xff]  ;;  %v738_v56 = vld [vmem:[#allocation4 + $0x410] sm:$0xff]  ;;  %v1485_v58 = vadd.f32 %v3608_v21, %v1465_v48  ;;  %v728_v21 = vld [vmem:[#allocation4 + $0x280] sm:$0xff] }
 0x163   :  { %2013 = vmatpush.msrb.mxu1 %v431_v59  ;;  %2033 = vmatpush.msrb.mxu2 %v495_v60  ;;  %v419_v15 = vld [vmem:[#allocation2 + $0xad8] sm:$0xff]  ;;  %v770_v59 = vld [vmem:[#allocation4 + $0x910] sm:$0xff]  ;;  %v736_v60 = vld [vmem:[#allocation4 + $0x3c0] sm:$0xff] }
 0x164   :  { %2052 = vmatpush.msrb.mxu3 %v563_v61  ;;  %1994 = vmatpush.msrb.mxu0 %v363_v0  ;;  %v483_v17 = vld [vmem:[#allocation2 + $0xcd8] sm:$0xff]  ;;  %v1664_v61 = vpop.f32.mrf.mxu3  ;;  %v768_v0 = vld [vmem:[#allocation4 + $0x8c0] sm:$0xff]  ;;  %v746_v48 = vld [vmem:[#allocation4 + $0x550] sm:$0xff] }
 0x165   :  { %2014 = vmatpush.msrb.mxu1 %v427_v1  ;;  %2034 = vmatpush.msrb.mxu2 %v491_v2  ;;  %v551_v20 = vld [vmem:[#allocation2 + $0xef8] sm:$0xff]  ;;  %v802_v1 = vld [vmem:[#allocation4 + $0xe10] sm:$0xff]  ;;  %v780_v49 = vld [vmem:[#allocation4 + $0xaa0] sm:$0xff] }
 0x166   :  { %2053 = vmatpush.msrb.mxu3 %v559_v3  ;;  %1995 = vmatpush.msrb.mxu0 %v359_v6  ;;  %v351_v22 = vld [vmem:[#allocation2 + $0x8b8] sm:$0xff]  ;;  %v734_v2 = vld [vmem:[#allocation4 + $0x370] sm:$0xff]  ;;  %v732_v6 = vld [vmem:[#allocation4 + $0x320] sm:$0xff] }
 0x167   :  { %2015 = vmatpush.msrb.mxu1 %v423_v7  ;;  %2035 = vmatpush.msrb.mxu2 %v487_v8  ;;  %v415_v25 = vld [vmem:[#allocation2 + $0xab8] sm:$0xff]  ;;  %v766_v3 = vld [vmem:[#allocation4 + $0x870] sm:$0xff]  ;;  %v1684_v7 = vpop.f32.mrf.mxu0  ;;  %v764_v8 = vld [vmem:[#allocation4 + $0x820] sm:$0xff] }
 0x168   :  { %2054 = vmatpush.msrb.mxu3 %v555_v10  ;;  %1996 = vmatpush.msrb.mxu0 %v355_v12  ;;  %v479_v26 = vld [vmem:[#allocation2 + $0xcb8] sm:$0xff]  ;;  %v798_v10 = vld [vmem:[#allocation4 + $0xd70] sm:$0xff] }
 0x169   :  { %2016 = vmatpush.msrb.mxu1 %v419_v15  ;;  %v547_v27 = vld [vmem:[#allocation2 + $0xed8] sm:$0xff]  ;;  %2036 = vmatpush.msrb.mxu2 %v483_v17  ;;  %v762_v15 = vld [vmem:[#allocation4 + $0x7d0] sm:$0xff]  ;;  %v796_v17 = vld [vmem:[#allocation4 + $0xd20] sm:$0xff] }
 0x16a   :  { %2055 = vmatpush.msrb.mxu3 %v551_v20  ;;  %v347_v28 = vld [vmem:[#allocation2 + $0x898] sm:$0xff]  ;;  %1997 = vmatpush.msrb.mxu0 %v351_v22  ;;  %v1704_v22 = vpop.f32.mrf.mxu1 }
 0x16b   :  { %2017 = vmatpush.msrb.mxu1 %v415_v25  ;;  %v411_v57 = vld [vmem:[#allocation2 + $0xa98] sm:$0xff]  ;;  %2037 = vmatpush.msrb.mxu2 %v479_v26  ;;  %v760_v25 = vld [vmem:[#allocation4 + $0x780] sm:$0xff]  ;;  %v794_v26 = vld [vmem:[#allocation4 + $0xcd0] sm:$0xff] }
 0x16c   :  { %v475_v29 = vld [vmem:[#allocation2 + $0xc98] sm:$0xff]  ;;  %2056 = vmatpush.msrb.mxu3 %v547_v27  ;;  %1963 = vmatmul.f32.vlgmr.msra.gmra.mxu2 %v3580_v9  ;;  %v726_v27 = vld [vmem:[#allocation4 + $0x230] sm:$0xff] }
 0x16d   :  { %v543_v31 = vld [vmem:[#allocation2 + $0xeb8] sm:$0xff]  ;;  %1998 = vmatpush.msrb.mxu0 %v347_v28  ;;  %2018 = vmatpush.msrb.mxu1 %v411_v57  ;;  %v758_v57 = vld [vmem:[#allocation4 + $0x730] sm:$0xff] }
 0x16e   :  { %v343_v63 = vld [vmem:[#allocation2 + $0x878] sm:$0xff]  ;;  %2038 = vmatpush.msrb.mxu2 %v475_v29  ;;  %2057 = vmatpush.msrb.mxu3 %v543_v31  ;;  %v792_v29 = vld [vmem:[#allocation4 + $0xc80] sm:$0xff] }
 0x16f   :  { %v407_v33 = vld [vmem:[#allocation2 + $0xa78] sm:$0xff]  ;;  %1923 = vmatmul.f32.vlgmr.msra.gmra.mxu0 %v3583_v14  ;;  %1983 = vmatmul.f32.vlgmr.msra.gmra.mxu3 %v3586_v16  ;;  %v724_v31 = vld [vmem:[#allocation4 + $0x1e0] sm:$0xff] }
 0x170   :  { %v471_v34 = vld [vmem:[#allocation2 + $0xc78] sm:$0xff]  ;;  %1999 = vmatpush.msrb.mxu0 %v343_v63  ;;  %2019 = vmatpush.msrb.mxu1 %v407_v33  ;;  %v1724_v63 = vpop.f32.mrf.mxu2  ;;  %v756_v33 = vld [vmem:[#allocation4 + $0x6e0] sm:$0xff] }
 0x171   :  { %v539_v36 = vld [vmem:[#allocation2 + $0xe98] sm:$0xff]  ;;  %2039 = vmatpush.msrb.mxu2 %v471_v34  ;;  %1943 = vmatmul.f32.vlgmr.msra.gmra.mxu1 %v3589_v23  ;;  %v742_v23 = vld [vmem:[#allocation4 + $0x4b0] sm:$0xff] }
 0x172   :  { %v339_v38 = vld [vmem:[#allocation2 + $0x858] sm:$0xff]  ;;  %2058 = vmatpush.msrb.mxu3 %v539_v36  ;;  %v790_v34 = vld [vmem:[#allocation4 + $0xc30] sm:$0xff] }
 0x173   :  { %v403_v39 = vld [vmem:[#allocation2 + $0xa58] sm:$0xff]  ;;  %2000 = vmatpush.msrb.mxu0 %v339_v38  ;;  %v722_v36 = vld [vmem:[#allocation4 + $0x190] sm:$0xff] }
 0x174   :  { %v467_v9 = vld [vmem:[#allocation2 + $0xc58] sm:$0xff]  ;;  %2020 = vmatpush.msrb.mxu1 %v403_v39  ;;  %v754_v38 = vld [vmem:[#allocation4 + $0x690] sm:$0xff]  ;;  %v788_v39 = vld [vmem:[#allocation4 + $0xbe0] sm:$0xff] }
 0x175   :  { %v535_v13 = vld [vmem:[#allocation2 + $0xe78] sm:$0xff]  ;;  %2040 = vmatpush.msrb.mxu2 %v467_v9  ;;  %v720_v9 = vld [vmem:[#allocation4 + $0x140] sm:$0xff] }
 0x176   :  { %v335_v42 = vld [vmem:[#allocation2 + $0x838] sm:$0xff]  ;;  %2059 = vmatpush.msrb.mxu3 %v535_v13  ;;  %v1744_v13 = vpop.f32.mrf.mxu3 }
 0x177   :  { %v399_v43 = vld [vmem:[#allocation2 + $0xa38] sm:$0xff]  ;;  %2001 = vmatpush.msrb.mxu0 %v335_v42  ;;  %v752_v42 = vld [vmem:[#allocation4 + $0x640] sm:$0xff] }
 0x178   :  { %v463_v14 = vld [vmem:[#allocation2 + $0xc38] sm:$0xff]  ;;  %2021 = vmatpush.msrb.mxu1 %v399_v43  ;;  %v786_v43 = vld [vmem:[#allocation4 + $0xb90] sm:$0xff] }
 0x179   :  { %v531_v18 = vld [vmem:[#allocation2 + $0xe58] sm:$0xff]  ;;  %2041 = vmatpush.msrb.mxu2 %v463_v14  ;;  %v718_v14 = vld [vmem:[#allocation4 + $0xf0] sm:$0xff] }
 0x17a   :  { %v331_v16 = vld [vmem:[#allocation2 + $0x818] sm:$0xff]  ;;  %2060 = vmatpush.msrb.mxu3 %v531_v18 }
 0x17b   :  { %v395_v19 = vld [vmem:[#allocation2 + $0xa18] sm:$0xff]  ;;  %2002 = vmatpush.msrb.mxu0 %v331_v16  ;;  %v750_v16 = vld [vmem:[#allocation4 + $0x5f0] sm:$0xff] }
 0x17c   :  { %v459_v44 = vld [vmem:[#allocation2 + $0xc18] sm:$0xff]  ;;  %2022 = vmatpush.msrb.mxu1 %v395_v19  ;;  %2003 = vmatmul.f32.vlgmr.msrb.gmra.mxu0 %v3595_v4  ;;  %v804_v4 = vld [vmem:[#allocation4 + $0xe60] sm:$0xff] }
 0x17d   :  { %v527_v45 = vld [vmem:[#allocation2 + $0xe38] sm:$0xff]  ;;  %2042 = vmatpush.msrb.mxu2 %v459_v44  ;;  %2079 = vmatpush.msra.mxu0 %v742_v23  ;;  %v784_v19 = vld [vmem:[#allocation4 + $0xb40] sm:$0xff]  ;;  %v714_v23 = vld [vmem:[#allocation4 + $0x50] sm:$0xff] }
 0x17e   :  { %2061 = vmatpush.msrb.mxu3 %v527_v45  ;;  %v523_v50 = vld [vmem:[#allocation2 + $0xe18] sm:$0xff]  ;;  %2043 = vmatmul.f32.vlgmr.msrb.gmra.mxu2 %v3592_v62  ;;  %v1645_v62 = vadd.f32 %v1644_v54, %v1625_v51  ;;  %v716_v44 = vld [vmem:[#allocation4 + $0xa0] sm:$0xff] }
 0x17f   :  { %2099 = vmatpush.msra.mxu1 %v774_v24  ;;  %2080 = vmatpush.msra.mxu0 %v740_v52  ;;  %v748_v45 = vld [vmem:[#allocation4 + $0x5a0] sm:$0xff]  ;;  %v743_v52 = vld [vmem:[#allocation4 + $0x4b8] sm:$0xff] }
 0x180   :  { %2062 = vmatpush.msrb.mxu3 %v523_v50  ;;  %2023 = vmatmul.f32.vlgmr.msrb.gmra.mxu1 %v3601_v40  ;;  %v1505_v40 = vadd.f32 %v3610_v30, %v1485_v58  ;;  %v744_v51 = vld [vmem:[#allocation4 + $0x500] sm:$0xff]  ;;  %v775_v54 = vld [vmem:[#allocation4 + $0x9b8] sm:$0xff]  ;;  %v741_v58 = vld [vmem:[#allocation4 + $0x468] sm:$0xff] }
 0x181   :  { %2063 = vmatmul.f32.vlgmr.msrb.gmra.mxu3 %v3598_v35  ;;  %2100 = vmatpush.msra.mxu1 %v772_v53  ;;  %v1665_v35 = vadd.f32 %v1664_v61, %v1645_v62  ;;  %v739_v62 = vld [vmem:[#allocation4 + $0x418] sm:$0xff] }
 0x182   :  { %2119 = vmatpush.msra.mxu2 %v806_v55  ;;  %2081 = vmatpush.msra.mxu0 %v738_v56  ;;  %v1525_v12 = vadd.f32 %v3616_v37, %v1505_v40  ;;  %v778_v55 = vld [vmem:[#allocation4 + $0xa50] sm:$0xff]  ;;  %v771_v61 = vld [vmem:[#allocation4 + $0x918] sm:$0xff] }
 0x183   :  { %2101 = vmatpush.msra.mxu1 %v770_v59  ;;  %v1685_v20 = vadd.f32 %v1684_v7, %v1665_v35  ;;  %v773_v59 = vld [vmem:[#allocation4 + $0x968] sm:$0xff]  ;;  %v735_v40 = vld [vmem:[#allocation4 + $0x378] sm:$0xff] }
 0x184   :  { %2120 = vmatpush.msra.mxu2 %v804_v4  ;;  %2082 = vmatpush.msra.mxu0 %v736_v60  ;;  %v1545_v28 = vadd.f32 %v3613_v32, %v1525_v12  ;;  %v776_v4 = vld [vmem:[#allocation4 + $0xa00] sm:$0xff]  ;;  %v807_v60 = vld [vmem:[#allocation4 + $0xeb8] sm:$0xff]  ;;  %v733_v35 = vld [vmem:[#allocation4 + $0x328] sm:$0xff] }
 0x185   :  { %2102 = vmatpush.msra.mxu1 %v768_v0  ;;  %v1705_v30 = vadd.f32 %v1704_v22, %v1685_v20  ;;  %v737_v0 = vld [vmem:[#allocation4 + $0x3c8] sm:$0xff]  ;;  %v763_v12 = vld [vmem:[#allocation4 + $0x7d8] sm:$0xff] }
 0x186   :  { %2121 = vmatpush.msra.mxu2 %v802_v1  ;;  %2083 = vmatpush.msra.mxu0 %v734_v2  ;;  %v1565_v37 = vadd.f32 %v3619_v41, %v1545_v28  ;;  %v805_v1 = vld [vmem:[#allocation4 + $0xe68] sm:$0xff]  ;;  %v795_v22 = vld [vmem:[#allocation4 + $0xcd8] sm:$0xff]  ;;  %v836_v28 = vld [vmem:[#allocation4 + $0x1360] sm:$0xff] }
 0x187   :  { %2103 = vmatpush.msra.mxu1 %v766_v3  ;;  %v1725_v32 = vadd.f32 %v1724_v63, %v1705_v30  ;;  %v769_v2 = vld [vmem:[#allocation4 + $0x8c8] sm:$0xff]  ;;  %v803_v3 = vld [vmem:[#allocation4 + $0xe18] sm:$0xff]  ;;  %v834_v30 = vld [vmem:[#allocation4 + $0x1310] sm:$0xff] }
 0x188   :  { %2122 = vmatpush.msra.mxu2 %v800_v5  ;;  %2084 = vmatpush.msra.mxu0 %v732_v6  ;;  %v1585_v18 = vadd.f32 %v3622_v46, %v1565_v37  ;;  %v712_v46 = vld [vmem:[#allocation4] sm:$0xff]  ;;  %v767_v5 = vld [vmem:[#allocation4 + $0x878] sm:$0xff]  ;;  %v801_v6 = vld [vmem:[#allocation4 + $0xdc8] sm:$0xff]  ;;  %v1784_v37 = vpop.f32.mrf.mxu1 }
 0x189   :  { %2104 = vmatpush.msra.mxu1 %v764_v8  ;;  %v1745_v41 = vadd.f32 %v1744_v13, %v1725_v32  ;;  %v765_v7 = vld [vmem:[#allocation4 + $0x828] sm:$0xff]  ;;  %v838_v8 = vld [vmem:[#allocation4 + $0x13b0] sm:$0xff]  ;;  %v791_v63 = vld [vmem:[#allocation4 + $0xc38] sm:$0xff] }
 0x18a   :  { %2123 = vmatpush.msra.mxu2 %v798_v10  ;;  %2085 = vmatpush.msra.mxu0 %v730_v11  ;;  %v2071_v24 = vmul.f32 0.01, %v1585_v18  ;;  %vm2067_vm0 = vcmp.ge.f32.partialorder %v1585_v18, 0.0  ;;  %v731_v10 = vld [vmem:[#allocation4 + $0x2d8] sm:$0xff]  ;;  %v761_v20 = vld [vmem:[#allocation4 + $0x788] sm:$0xff]  ;;  %v830_v13 = vld [vmem:[#allocation4 + $0x1270] sm:$0xff] }
 0x18b   :  { %2105 = vmatpush.msra.mxu1 %v762_v15  ;;  %v2072_v50 = vmul.f32 0.01, %v1745_v41  ;;  %vm2068_vm1 = vcmp.ge.f32.partialorder %v1745_v41, 0.0  ;;  %v799_v11 = vld [vmem:[#allocation4 + $0xd78] sm:$0xff]  ;;  %2139 = vmatpush.msra.mxu3 %v838_v8  ;;  %v729_v15 = vld [vmem:[#allocation4 + $0x288] sm:$0xff]  ;;  %v808_v8 = vld [vmem:[#allocation4 + $0xf00] sm:$0xff] }
 0x18c   :  { %2124 = vmatpush.msra.mxu2 %v796_v17  ;;  %2086 = vmatpush.msra.mxu0 %v728_v21  ;;  %v3636_v53 = vsel %vm2067_vm0, %v1585_v18, %v2071_v24  ;;  %v797_v17 = vld [vmem:[#allocation4 + $0xd28] sm:$0xff]  ;;  %v727_v21 = vld [vmem:[#allocation4 + $0x238] sm:$0xff] }
 0x18d   :  { %2106 = vmatpush.msra.mxu1 %v760_v25  ;;  %v3639_v56 = vsel %vm2068_vm1, %v1745_v41, %v2072_v50  ;;  %v759_v25 = vld [vmem:[#allocation4 + $0x738] sm:$0xff]  ;;  %2140 = vmatpush.msra.mxu3 %v836_v28  ;;  %v817_v28 = vld [vmem:[#allocation4 + $0x1048] sm:$0xff] }
 0x18e   :  { %2125 = vmatpush.msra.mxu2 %v794_v26  ;;  %2087 = vmatpush.msra.mxu0 %v726_v27  ;;  %v725_v26 = vld [vmem:[#allocation4 + $0x1e8] sm:$0xff]  ;;  %v715_v24 = vld [vmem:[#allocation4 + $0x58] sm:$0xff] }
 0x18f   :  { %2107 = vmatpush.msra.mxu1 %v758_v57  ;;  %v793_v27 = vld [vmem:[#allocation4 + $0xc88] sm:$0xff]  ;;  %2141 = vmatpush.msra.mxu3 %v834_v30  ;;  %v811_v30 = vld [vmem:[#allocation4 + $0xf58] sm:$0xff] }
 0x190   :  { %2126 = vmatpush.msra.mxu2 %v792_v29  ;;  %2088 = vmatpush.msra.mxu0 %v724_v31  ;;  %v757_v57 = vld [vmem:[#allocation4 + $0x6e8] sm:$0xff]  ;;  %v1764_v29 = vpop.f32.mrf.mxu0  ;;  %v723_v31 = vld [vmem:[#allocation4 + $0x198] sm:$0xff] }
 0x191   :  { %2108 = vmatpush.msra.mxu1 %v756_v33  ;;  %v755_v33 = vld [vmem:[#allocation4 + $0x698] sm:$0xff]  ;;  %v1785_v32 = vadd.f32 %v1784_v37, %v1764_v29  ;;  %v813_v29 = vld [vmem:[#allocation4 + $0xfa8] sm:$0xff] }
 0x192   :  { %2127 = vmatpush.msra.mxu2 %v790_v34  ;;  %2089 = vmatpush.msra.mxu0 %v722_v36  ;;  %v832_v34 = vld [vmem:[#allocation4 + $0x12c0] sm:$0xff]  ;;  %v721_v36 = vld [vmem:[#allocation4 + $0x148] sm:$0xff] }
 0x193   :  { %2109 = vmatpush.msra.mxu1 %v754_v38  ;;  %v789_v38 = vld [vmem:[#allocation4 + $0xbe8] sm:$0xff]  ;;  %2142 = vmatpush.msra.mxu3 %v832_v34 }
 0x194   :  { %2128 = vmatpush.msra.mxu2 %v788_v39  ;;  %2090 = vmatpush.msra.mxu0 %v720_v9  ;;  %v753_v39 = vld [vmem:[#allocation4 + $0x648] sm:$0xff]  ;;  %v1804_v9 = vpop.f32.mrf.mxu2 }
 0x195   :  { %2110 = vmatpush.msra.mxu1 %v752_v42  ;;  %v719_v42 = vld [vmem:[#allocation4 + $0xf8] sm:$0xff]  ;;  %v1805_v18 = vadd.f32 %v1804_v9, %v1785_v32  ;;  %2143 = vmatpush.msra.mxu3 %v830_v13 }
 0x196   :  { %2129 = vmatpush.msra.mxu2 %v786_v43  ;;  %2091 = vmatpush.msra.mxu0 %v718_v14  ;;  %v787_v43 = vld [vmem:[#allocation4 + $0xb98] sm:$0xff] }
 0x197   :  { %2111 = vmatpush.msra.mxu1 %v750_v16  ;;  %v751_v14 = vld [vmem:[#allocation4 + $0x5f8] sm:$0xff]  ;;  %v828_v16 = vld [vmem:[#allocation4 + $0x1220] sm:$0xff] }
 0x198   :  { %2130 = vmatpush.msra.mxu2 %v784_v19  ;;  %2092 = vmatpush.msra.mxu0 %v716_v44  ;;  %v717_v19 = vld [vmem:[#allocation4 + $0xa8] sm:$0xff] }
 0x199   :  { %2112 = vmatpush.msra.mxu1 %v748_v45  ;;  %v785_v44 = vld [vmem:[#allocation4 + $0xb48] sm:$0xff]  ;;  %2144 = vmatpush.msra.mxu3 %v828_v16 }
 0x19a   :  { %2131 = vmatpush.msra.mxu2 %v782_v47  ;;  %2093 = vmatpush.msra.mxu0 %v714_v23  ;;  %v749_v45 = vld [vmem:[#allocation4 + $0x5a8] sm:$0xff]  ;;  %v826_v23 = vld [vmem:[#allocation4 + $0x11d0] sm:$0xff] }
 0x19b   :  { %2113 = vmatpush.msra.mxu1 %v746_v48  ;;  %v783_v48 = vld [vmem:[#allocation4 + $0xaf8] sm:$0xff]  ;;  %2145 = vmatpush.msra.mxu3 %v826_v23  ;;  %v1365_v23 = vld [vmem:[%s3894_s4 + $0x68] sm:$0xff] }
 0x19c   :  { %2132 = vmatpush.msra.mxu2 %v780_v49  ;;  %2094 = vmatpush.msra.mxu0 %v712_v46  ;;  %v747_v49 = vld [vmem:[#allocation4 + $0x558] sm:$0xff]  ;;  %v824_v46 = vld [vmem:[#allocation4 + $0x1180] sm:$0xff] }
 0x19d   :  { %2114 = vmatpush.msra.mxu1 %v744_v51  ;;  %2095 = vmatmul.f32.vlgmr.msra.gmra.mxu0 %v3636_v53  ;;  %v713_v51 = vld [vmem:[#allocation4 + $0x8] sm:$0xff] }
 0x19e   :  { %2115 = vmatmul.f32.vlgmr.msra.gmra.mxu1 %v3639_v56  ;;  %2159 = vmatpush.msrb.mxu0 %v743_v52 }
 0x19f   :  { %2179 = vmatpush.msrb.mxu1 %v775_v54  ;;  %2133 = vmatpush.msra.mxu2 %v778_v55  ;;  %v781_v54 = vld [vmem:[#allocation4 + $0xaa8] sm:$0xff] }
 0x1a0   :  { %2160 = vmatpush.msrb.mxu0 %v741_v58  ;;  %v745_v55 = vld [vmem:[#allocation4 + $0x508] sm:$0xff]  ;;  %2146 = vmatpush.msra.mxu3 %v824_v46  ;;  %v1363_v46 = vld [vmem:[%s3894_s4 + $0x58] sm:$0xff] }
 0x1a1   :  { %2180 = vmatpush.msrb.mxu1 %v773_v59  ;;  %2134 = vmatpush.msra.mxu2 %v776_v4  ;;  %v779_v59 = vld [vmem:[#allocation4 + $0xa58] sm:$0xff] }
 0x1a2   :  { %2161 = vmatpush.msrb.mxu0 %v739_v62 }
 0x1a3   :  { %2199 = vmatpush.msrb.mxu2 %v807_v60  ;;  %2181 = vmatpush.msrb.mxu1 %v771_v61  ;;  %v822_v60 = vld [vmem:[#allocation4 + $0x1130] sm:$0xff]  ;;  %v777_v61 = vld [vmem:[#allocation4 + $0xa08] sm:$0xff] }
 0x1a4   :  { %2162 = vmatpush.msrb.mxu0 %v737_v0  ;;  %2147 = vmatpush.msra.mxu3 %v822_v60  ;;  %v1375_v60 = vld [vmem:[%s3894_s4 + $0xb8] sm:$0xff] }
 0x1a5   :  { %2200 = vmatpush.msrb.mxu2 %v805_v1  ;;  %2182 = vmatpush.msrb.mxu1 %v769_v2  ;;  %v820_v1 = vld [vmem:[#allocation4 + $0x10e0] sm:$0xff] }
 0x1a6   :  { %2163 = vmatpush.msrb.mxu0 %v735_v40  ;;  %2148 = vmatpush.msra.mxu3 %v820_v1  ;;  %v1356_v1 = vld [vmem:[%s3894_s4 + $0x20] sm:$0xff] }
 0x1a7   :  { %2201 = vmatpush.msrb.mxu2 %v803_v3  ;;  %2183 = vmatpush.msrb.mxu1 %v767_v5  ;;  %v818_v3 = vld [vmem:[#allocation4 + $0x1090] sm:$0xff] }
 0x1a8   :  { %2164 = vmatpush.msrb.mxu0 %v733_v35  ;;  %v816_v35 = vld [vmem:[#allocation4 + $0x1040] sm:$0xff]  ;;  %2149 = vmatpush.msra.mxu3 %v818_v3  ;;  %v1374_v3 = vld [vmem:[%s3894_s4 + $0xb0] sm:$0xff] }
 0x1a9   :  { %2202 = vmatpush.msrb.mxu2 %v801_v6  ;;  %2184 = vmatpush.msrb.mxu1 %v765_v7  ;;  %v814_v7 = vld [vmem:[#allocation4 + $0xff0] sm:$0xff] }
 0x1aa   :  { %2165 = vmatpush.msrb.mxu0 %v731_v10  ;;  %2150 = vmatpush.msra.mxu3 %v816_v35  ;;  %v839_v10 = vld [vmem:[#allocation4 + $0x13b8] sm:$0xff]  ;;  %v1373_v35 = vld [vmem:[%s3894_s4 + $0xa8] sm:$0xff] }
 0x1ab   :  { %2203 = vmatpush.msrb.mxu2 %v799_v11  ;;  %2185 = vmatpush.msrb.mxu1 %v763_v12  ;;  %v837_v11 = vld [vmem:[#allocation4 + $0x1368] sm:$0xff]  ;;  %v835_v12 = vld [vmem:[#allocation4 + $0x1318] sm:$0xff] }
 0x1ac   :  { %2166 = vmatpush.msrb.mxu0 %v729_v15  ;;  %2151 = vmatpush.msra.mxu3 %v814_v7  ;;  %v833_v15 = vld [vmem:[#allocation4 + $0x12c8] sm:$0xff]  ;;  %v1372_v7 = vld [vmem:[%s3894_s4 + $0xa0] sm:$0xff] }
 0x1ad   :  { %2204 = vmatpush.msrb.mxu2 %v797_v17  ;;  %2186 = vmatpush.msrb.mxu1 %v761_v20  ;;  %v831_v17 = vld [vmem:[#allocation4 + $0x1278] sm:$0xff]  ;;  %v829_v20 = vld [vmem:[#allocation4 + $0x1228] sm:$0xff] }
 0x1ae   :  { %2167 = vmatpush.msrb.mxu0 %v727_v21  ;;  %v827_v21 = vld [vmem:[#allocation4 + $0x11d8] sm:$0xff] }
 0x1af   :  { %2205 = vmatpush.msrb.mxu2 %v795_v22  ;;  %2187 = vmatpush.msrb.mxu1 %v759_v25  ;;  %v825_v22 = vld [vmem:[#allocation4 + $0x1188] sm:$0xff]  ;;  %v823_v25 = vld [vmem:[#allocation4 + $0x1138] sm:$0xff] }
 0x1b0   :  { %2168 = vmatpush.msrb.mxu0 %v725_v26  ;;  %v1824_v41 = vpop.f32.mrf.mxu3  ;;  %v1844_v50 = vpop.f32.mrf.mxu0  ;;  %v821_v26 = vld [vmem:[#allocation4 + $0x10e8] sm:$0xff] }
 0x1b1   :  { %2206 = vmatpush.msrb.mxu2 %v793_v27  ;;  %2188 = vmatpush.msrb.mxu1 %v757_v57  ;;  %v1825_v47 = vadd.f32 %v1824_v41, %v1805_v18  ;;  %v819_v27 = vld [vmem:[#allocation4 + $0x1098] sm:$0xff] }
 0x1b2   :  { %2169 = vmatpush.msrb.mxu0 %v723_v31  ;;  %v815_v57 = vld [vmem:[#allocation4 + $0xff8] sm:$0xff]  ;;  %v809_v31 = vld [vmem:[#allocation4 + $0xf08] sm:$0xff] }
 0x1b3   :  { %2207 = vmatpush.msrb.mxu2 %v791_v63  ;;  %2189 = vmatpush.msrb.mxu1 %v755_v33  ;;  %v1845_v52 = vadd.f32 %v1844_v50, %v1825_v47  ;;  %v1383_v47 = vld [vmem:[%s3894_s4 + $0xf8] sm:$0xff]  ;;  %v1380_v50 = vld [vmem:[%s3894_s4 + $0xe0] sm:$0xff] }
 0x1b4   :  { %2170 = vmatpush.msrb.mxu0 %v721_v36 }
 0x1b5   :  { %2208 = vmatpush.msrb.mxu2 %v789_v38  ;;  %2190 = vmatpush.msrb.mxu1 %v753_v39 }
 0x1b6   :  { %2171 = vmatpush.msrb.mxu0 %v719_v42 }
 0x1b7   :  { %2209 = vmatpush.msrb.mxu2 %v787_v43  ;;  %2191 = vmatpush.msrb.mxu1 %v751_v14  ;;  %v1864_v58 = vpop.f32.mrf.mxu1 }
 0x1b8   :  { %2172 = vmatpush.msrb.mxu0 %v717_v19  ;;  %v1865_v4 = vadd.f32 %v1864_v58, %v1845_v52  ;;  %v1884_v62 = vpop.f32.mrf.mxu2  ;;  %v1362_v52 = vld [vmem:[%s3894_s4 + $0x50] sm:$0xff]  ;;  %v1377_v58 = vld [vmem:[%s3894_s4 + $0xc8] sm:$0xff] }
 0x1b9   :  { %2210 = vmatpush.msrb.mxu2 %v785_v44  ;;  %2192 = vmatpush.msrb.mxu1 %v749_v45  ;;  %v1367_v44 = vld [vmem:[%s3894_s4 + $0x78] sm:$0xff]  ;;  %v1366_v45 = vld [vmem:[%s3894_s4 + $0x70] sm:$0xff] }
 0x1ba   :  { %2173 = vmatpush.msrb.mxu0 %v715_v24  ;;  %v1885_v0 = vadd.f32 %v1884_v62, %v1865_v4  ;;  %v1382_v24 = vld [vmem:[%s3894_s4 + $0xf0] sm:$0xff]  ;;  %v1376_v4 = vld [vmem:[%s3894_s4 + $0xc0] sm:$0xff]  ;;  %v1359_v62 = vld [vmem:[%s3894_s4 + $0x38] sm:$0xff] }
 0x1bb   :  { %2211 = vmatpush.msrb.mxu2 %v783_v48  ;;  %2193 = vmatpush.msrb.mxu1 %v747_v49  ;;  %v1904_v2 = vpop.f32.mrf.mxu3  ;;  %v1381_v48 = vld [vmem:[%s3894_s4 + $0xe8] sm:$0xff]  ;;  %v1364_v49 = vld [vmem:[%s3894_s4 + $0x60] sm:$0xff] }
 0x1bc   :  { %2174 = vmatpush.msrb.mxu0 %v713_v51  ;;  %v1905_v40 = vadd.f32 %v1904_v2, %v1885_v0  ;;  %v1379_v51 = vld [vmem:[%s3894_s4 + $0xd8] sm:$0xff]  ;;  %v1357_v0 = vld [vmem:[%s3894_s4 + $0x28] sm:$0xff] }
 0x1bd   :  { %2212 = vmatpush.msrb.mxu2 %v781_v54  ;;  %2194 = vmatpush.msrb.mxu1 %v745_v55  ;;  %v1378_v54 = vld [vmem:[%s3894_s4 + $0xd0] sm:$0xff]  ;;  %v1361_v55 = vld [vmem:[%s3894_s4 + $0x48] sm:$0xff]  ;;  %v1355_v2 = vld [vmem:[%s3894_s4 + $0x18] sm:$0xff] }
 0x1be   :  { %2175 = vmatmul.f32.vlgmr.msrb.gmra.mxu0 %v3636_v53  ;;  %2195 = vmatmul.f32.vlgmr.msrb.gmra.mxu1 %v3639_v56  ;;  %vm2069_vm2 = vcmp.ge.f32.partialorder %v1905_v40, 0.0  ;;  %v2073_v5 = vmul.f32 0.01, %v1905_v40  ;;  %v812_v53 = vld [vmem:[#allocation4 + $0xfa0] sm:$0xff]  ;;  %v810_v56 = vld [vmem:[#allocation4 + $0xf50] sm:$0xff] }
 0x1bf   :  { %2213 = vmatpush.msrb.mxu2 %v779_v59  ;;  %2152 = vmatpush.msra.mxu3 %v812_v53  ;;  %v1360_v59 = vld [vmem:[%s3894_s4 + $0x40] sm:$0xff]  ;;  %v1371_v53 = vld [vmem:[%s3894_s4 + $0x98] sm:$0xff] }
 0x1c0   :  { %v2077_v6 = vsel %vm2069_vm2, %v1905_v40, %v2073_v5  ;;  %2246 = vmatpush.msra.mxu0 %v1367_v44  ;;  %2266 = vmatpush.msra.mxu1 %v1383_v47  ;;  %v1354_v40 = vld [vmem:[%s3894_s4 + $0x10] sm:$0xff]  ;;  %v1353_v5 = vld [vmem:[%s3894_s4 + $0x8] sm:$0xff] }
 0x1c1   :  { %2214 = vmatpush.msrb.mxu2 %v777_v61  ;;  %2153 = vmatpush.msra.mxu3 %v810_v56  ;;  %v1358_v61 = vld [vmem:[%s3894_s4 + $0x30] sm:$0xff]  ;;  %v1386_v44 = vld [vmem:[#allocation6] sm:$0xff] }
 0x1c2   :  { %2135 = vmatmul.f32.vlgmr.msra.gmra.mxu2 %v2077_v6  ;;  %2247 = vmatpush.msra.mxu0 %v1366_v45  ;;  %v1370_v56 = vld [vmem:[%s3894_s4 + $0x90] sm:$0xff]  ;;  %v644_v47 = vld [vmem:[#allocation2 + $0x11e0] sm:$0xff] }
 0x1c3   :  { %2154 = vmatpush.msra.mxu3 %v808_v8  ;;  %2267 = vmatpush.msra.mxu1 %v1382_v24  ;;  %v1369_v8 = vld [vmem:[%s3894_s4 + $0x88] sm:$0xff]  ;;  %v1387_v45 = vld [vmem:[#allocation6 + $0x8] sm:$0xff] }
 0x1c4   :  { %2248 = vmatpush.msra.mxu0 %v1365_v23  ;;  %v708_v23 = vld [vmem:[#allocation2 + $0x13e0] sm:$0xff]  ;;  %v645_v24 = vld [vmem:[#allocation2 + $0x11e8] sm:$0xff] }
 0x1c5   :  { %2219 = vmatpush.msrb.mxu3 %v839_v10  ;;  %2268 = vmatpush.msra.mxu1 %v1381_v48  ;;  %v1368_v10 = vld [vmem:[%s3894_s4 + $0x80] sm:$0xff]  ;;  %v709_v48 = vld [vmem:[#allocation2 + $0x13e8] sm:$0xff] }
 0x1c6   :  { %2249 = vmatpush.msra.mxu0 %v1364_v49  ;;  %v640_v49 = vld [vmem:[#allocation2 + $0x11c0] sm:$0xff] }
 0x1c7   :  { %2220 = vmatpush.msrb.mxu3 %v837_v11  ;;  %2269 = vmatpush.msra.mxu1 %v1380_v50  ;;  %v704_v50 = vld [vmem:[#allocation2 + $0x13c0] sm:$0xff] }
 0x1c8   :  { %2250 = vmatpush.msra.mxu0 %v1363_v46  ;;  %v641_v46 = vld [vmem:[#allocation2 + $0x11c8] sm:$0xff] }
 0x1c9   :  { %2221 = vmatpush.msrb.mxu3 %v835_v12  ;;  %2270 = vmatpush.msra.mxu1 %v1379_v51  ;;  %v705_v51 = vld [vmem:[#allocation2 + $0x13c8] sm:$0xff] }
 0x1ca   :  { %2215 = vmatmul.f32.vlgmr.msrb.gmra.mxu2 %v2077_v6  ;;  %2251 = vmatpush.msra.mxu0 %v1362_v52  ;;  %v1352_v6 = vld [vmem:[%s3894_s4] sm:$0xff]  ;;  %v636_v52 = vld [vmem:[#allocation2 + $0x11a0] sm:$0xff] }
 0x1cb   :  { %2222 = vmatpush.msrb.mxu3 %v833_v15  ;;  %2271 = vmatpush.msra.mxu1 %v1378_v54  ;;  %v700_v54 = vld [vmem:[#allocation2 + $0x13a0] sm:$0xff] }
 0x1cc   :  { %2252 = vmatpush.msra.mxu0 %v1361_v55  ;;  %v637_v55 = vld [vmem:[#allocation2 + $0x11a8] sm:$0xff] }
 0x1cd   :  { %2223 = vmatpush.msrb.mxu3 %v831_v17  ;;  %2272 = vmatpush.msra.mxu1 %v1377_v58  ;;  %v701_v58 = vld [vmem:[#allocation2 + $0x13a8] sm:$0xff] }
 0x1ce   :  { %2253 = vmatpush.msra.mxu0 %v1360_v59  ;;  %v632_v59 = vld [vmem:[#allocation2 + $0x1180] sm:$0xff] }
 0x1cf   :  { %2224 = vmatpush.msrb.mxu3 %v829_v20  ;;  %2273 = vmatpush.msra.mxu1 %v1376_v4  ;;  %v696_v4 = vld [vmem:[#allocation2 + $0x1380] sm:$0xff] }
 0x1d0   :  { %2254 = vmatpush.msra.mxu0 %v1359_v62  ;;  %v633_v62 = vld [vmem:[#allocation2 + $0x1188] sm:$0xff] }
 0x1d1   :  { %2225 = vmatpush.msrb.mxu3 %v827_v21  ;;  %2274 = vmatpush.msra.mxu1 %v1375_v60  ;;  %v697_v60 = vld [vmem:[#allocation2 + $0x1388] sm:$0xff] }
 0x1d2   :  { %2255 = vmatpush.msra.mxu0 %v1358_v61  ;;  %v628_v61 = vld [vmem:[#allocation2 + $0x1160] sm:$0xff] }
 0x1d3   :  { %2226 = vmatpush.msrb.mxu3 %v825_v22  ;;  %2275 = vmatpush.msra.mxu1 %v1374_v3  ;;  %v624_v3 = vld [vmem:[#allocation2 + $0x1140] sm:$0xff] }
 0x1d4   :  { %2256 = vmatpush.msra.mxu0 %v1357_v0  ;;  %v692_v0 = vld [vmem:[#allocation2 + $0x1360] sm:$0xff] }
 0x1d5   :  { %2227 = vmatpush.msrb.mxu3 %v823_v25  ;;  %2276 = vmatpush.msra.mxu1 %v1373_v35 }
 0x1d6   :  { %2257 = vmatpush.msra.mxu0 %v1356_v1  ;;  %v629_v1 = vld [vmem:[#allocation2 + $0x1168] sm:$0xff] }
 0x1d7   :  { %2228 = vmatpush.msrb.mxu3 %v821_v26  ;;  %2277 = vmatpush.msra.mxu1 %v1372_v7  ;;  %v689_v7 = vld [vmem:[#allocation2 + $0x1348] sm:$0xff] }
 0x1d8   :  { %2258 = vmatpush.msra.mxu0 %v1355_v2  ;;  %v693_v2 = vld [vmem:[#allocation2 + $0x1368] sm:$0xff] }
 0x1d9   :  { %2229 = vmatpush.msrb.mxu3 %v819_v27  ;;  %2278 = vmatpush.msra.mxu1 %v1371_v53  ;;  %v620_v53 = vld [vmem:[#allocation2 + $0x1120] sm:$0xff] }
 0x1da   :  { %2259 = vmatpush.msra.mxu0 %v1354_v40  ;;  %v3365_v40 = vld [vmem:[%s3894_s4 + $0x100] ss:$0 sm:$0xff] }
 0x1db   :  { %2230 = vmatpush.msrb.mxu3 %v817_v28  ;;  %2279 = vmatpush.msra.mxu1 %v1370_v56  ;;  %v684_v56 = vld [vmem:[#allocation2 + $0x1320] sm:$0xff] }
 0x1dc   :  { %2260 = vmatpush.msra.mxu0 %v1353_v5  ;;  %v688_v5 = vld [vmem:[#allocation2 + $0x1340] sm:$0xff] }
 0x1dd   :  { %2231 = vmatpush.msrb.mxu3 %v815_v57  ;;  %2280 = vmatpush.msra.mxu1 %v1369_v8  ;;  %v621_v8 = vld [vmem:[#allocation2 + $0x1128] sm:$0xff] }
 0x1de   :  { %2261 = vmatpush.msra.mxu0 %v1352_v6  ;;  %v625_v6 = vld [vmem:[#allocation2 + $0x1148] sm:$0xff] }
 0x1df   :  { %2232 = vmatpush.msrb.mxu3 %v813_v29  ;;  %2281 = vmatpush.msra.mxu1 %v1368_v10  ;;  %v685_v10 = vld [vmem:[#allocation2 + $0x1328] sm:$0xff] }
 0x1e0   :  { %2385 = vmatpush.msrb.mxu0 %v645_v24 }
 0x1e1   :  { %2233 = vmatpush.msrb.mxu3 %v811_v30  ;;  %2405 = vmatpush.msrb.mxu1 %v709_v48  ;;  %v588_v48 = vld [vmem:[#allocation2 + $0x1020] sm:$0xff] }
 0x1e2   :  { %2386 = vmatpush.msrb.mxu0 %v641_v46 }
 0x1e3   :  { %2234 = vmatpush.msrb.mxu3 %v809_v31  ;;  %2406 = vmatpush.msrb.mxu1 %v705_v51  ;;  %v589_v51 = vld [vmem:[#allocation2 + $0x1028] sm:$0xff] }
 0x1e4   :  { %2387 = vmatpush.msrb.mxu0 %v637_v55  ;;  %v584_v55 = vld [vmem:[#allocation2 + $0x1000] sm:$0xff] }
 0x1e5   :  { %2407 = vmatpush.msrb.mxu1 %v701_v58  ;;  %v648_v58 = vld [vmem:[#allocation2 + $0x1200] sm:$0xff] }
 0x1e6   :  { %2388 = vmatpush.msrb.mxu0 %v633_v62  ;;  %v646_v62 = vld [vmem:[#allocation2 + $0x11f0] sm:$0xff] }
 0x1e7   :  { %2408 = vmatpush.msrb.mxu1 %v697_v60  ;;  %v710_v60 = vld [vmem:[#allocation2 + $0x13f0] sm:$0xff] }
 0x1e8   :  { %2389 = vmatpush.msrb.mxu0 %v629_v1  ;;  %v642_v1 = vld [vmem:[#allocation2 + $0x11d0] sm:$0xff] }
 0x1e9   :  { %2409 = vmatpush.msrb.mxu1 %v693_v2  ;;  %v706_v2 = vld [vmem:[#allocation2 + $0x13d0] sm:$0xff] }
 0x1ea   :  { %2390 = vmatpush.msrb.mxu0 %v625_v6  ;;  %v639_v6 = vld [vmem:[#allocation2 + $0x11b8] sm:$0xff] }
 0x1eb   :  { %2410 = vmatpush.msrb.mxu1 %v689_v7  ;;  %v703_v7 = vld [vmem:[#allocation2 + $0x13b8] sm:$0xff] }
 0x1ec   :  { %v1924_v63 = vpop.f32.mrf.mxu0  ;;  %2391 = vmatpush.msrb.mxu0 %v621_v8  ;;  %v635_v8 = vld [vmem:[#allocation2 + $0x1198] sm:$0xff] }
 0x1ed   :  { %2411 = vmatpush.msrb.mxu1 %v685_v10  ;;  %v699_v10 = vld [vmem:[#allocation2 + $0x1398] sm:$0xff] }
 0x1ee   :  { %v1944_v33 = vpop.f32.mrf.mxu1 }
 0x1ef   :  { %v1945_v34 = vadd.f32 %v1944_v33, %v1924_v63  ;;  %v1964_v36 = vpop.f32.mrf.mxu2 }
 0x1f1   :  { %v1965_v37 = vadd.f32 %v1964_v36, %v1945_v34  ;;  %v1400_v36 = vld [vmem:[#allocation6 + $0x70] sm:$0xff] }
 0x1f2   :  { %v1984_v38 = vpop.f32.mrf.mxu3  ;;  %2313 = vmatpush.msra.mxu2 %v1400_v36  ;;  %v668_v36 = vld [vmem:[#allocation2 + $0x12a0] sm:$0xff] }
 0x1f3   :  { %v1985_v39 = vadd.f32 %v1984_v38, %v1965_v37  ;;  %v1401_v37 = vld [vmem:[#allocation6 + $0x78] sm:$0xff]  ;;  %v1398_v38 = vld [vmem:[#allocation6 + $0x60] sm:$0xff] }
 0x1f4   :  { %2314 = vmatpush.msra.mxu2 %v1398_v38  ;;  %v669_v38 = vld [vmem:[#allocation2 + $0x12a8] sm:$0xff] }
 0x1f9   :  { %v2004_v32 = vpop.f32.mrf.mxu0 }
 0x1fa   :  { %v2005_v9 = vadd.f32 %v2004_v32, %v1985_v39  ;;  %v1399_v39 = vld [vmem:[#allocation6 + $0x68] sm:$0xff]  ;;  %v1396_v32 = vld [vmem:[#allocation6 + $0x50] sm:$0xff] }
 0x1fb   :  { %2315 = vmatpush.msra.mxu2 %v1396_v32  ;;  %v600_v32 = vld [vmem:[#allocation2 + $0x1080] sm:$0xff] }
 0x1fd   :  { %v2024_v13 = vpop.f32.mrf.mxu1 }
 0x1fe   :  { %v2025_v42 = vadd.f32 %v2024_v13, %v2005_v9  ;;  %v1397_v9 = vld [vmem:[#allocation6 + $0x58] sm:$0xff]  ;;  %v1394_v13 = vld [vmem:[#allocation6 + $0x40] sm:$0xff] }
 0x1ff   :  { %2316 = vmatpush.msra.mxu2 %v1394_v13  ;;  %v601_v13 = vld [vmem:[#allocation2 + $0x1088] sm:$0xff] }
 0x201   :  { %v2044_v43 = vpop.f32.mrf.mxu2 }
 0x202   :  { %v2045_v14 = vadd.f32 %v2044_v43, %v2025_v42  ;;  %v1395_v42 = vld [vmem:[#allocation6 + $0x48] sm:$0xff]  ;;  %v1392_v43 = vld [vmem:[#allocation6 + $0x30] sm:$0xff] }
 0x203   :  { %2317 = vmatpush.msra.mxu2 %v1392_v43  ;;  %v596_v43 = vld [vmem:[#allocation2 + $0x1060] sm:$0xff] }
 0x204   :  { %v2064_v18 = vpop.f32.mrf.mxu3 }
 0x205   :  { %v2065_v16 = vadd.f32 %v2064_v18, %v2045_v14  ;;  %v1393_v14 = vld [vmem:[#allocation6 + $0x38] sm:$0xff]  ;;  %v1390_v18 = vld [vmem:[#allocation6 + $0x20] sm:$0xff] }
 0x206   :  { %2318 = vmatpush.msra.mxu2 %v1390_v18 }
 0x207   :  { %vm2070_vm3 = vcmp.ge.f32.partialorder %v2065_v16, 0.0  ;;  %v2074_v19 = vmul.f32 0.01, %v2065_v16 }
 0x209   :  { %v2078_v41 = vsel %vm2070_vm3, %v2065_v16, %v2074_v19  ;;  %v1391_v16 = vld [vmem:[#allocation6 + $0x28] sm:$0xff]  ;;  %v1388_v19 = vld [vmem:[#allocation6 + $0x10] sm:$0xff] }
 0x20a   :  { %2155 = vmatmul.f32.vlgmr.msra.gmra.mxu3 %v2078_v41  ;;  %2319 = vmatpush.msra.mxu2 %v1388_v19  ;;  %v661_v19 = vld [vmem:[#allocation2 + $0x1268] sm:$0xff] }
 0x20b   :  { %2333 = vmatpush.msra.mxu3 %v1401_v37  ;;  %v605_v37 = vld [vmem:[#allocation2 + $0x10a8] sm:$0xff] }
 0x20c   :  { %2320 = vmatpush.msra.mxu2 %v1386_v44  ;;  %v592_v44 = vld [vmem:[#allocation2 + $0x1040] sm:$0xff] }
 0x20d   :  { %2334 = vmatpush.msra.mxu3 %v1399_v39  ;;  %v1385_v39 = vld [vmem:[%s3894_s4 + $0x101] sm:$0x1] }
 0x20e   :  { %2345 = vmatpush.msrb.mxu2 %v644_v47  ;;  %v2288_v18 = vperm.slane %v1385_v39, 0  ;;  %v593_v47 = vld [vmem:[#allocation2 + $0x1048] sm:$0xff]  ;;  %v674_v39 = vld [vmem:[#allocation2 + $0x12d0] sm:$0xff] }
 0x20f   :  { %2335 = vmatpush.msra.mxu3 %v1397_v9  ;;  %v664_v9 = vld [vmem:[#allocation2 + $0x1280] sm:$0xff] }
 0x210   :  { %2346 = vmatpush.msrb.mxu2 %v640_v49  ;;  %v652_v49 = vld [vmem:[#allocation2 + $0x1220] sm:$0xff] }
 0x211   :  { %2336 = vmatpush.msra.mxu3 %v1395_v42  ;;  %v665_v42 = vld [vmem:[#allocation2 + $0x1288] sm:$0xff] }
 0x212   :  { %2235 = vmatmul.f32.vlgmr.msrb.gmra.mxu3 %v2078_v41  ;;  %v1389_v41 = vld [vmem:[#allocation6 + $0x18] sm:$0xff]  ;;  %2347 = vmatpush.msrb.mxu2 %v636_v52  ;;  %v653_v52 = vld [vmem:[#allocation2 + $0x1228] sm:$0xff] }
 0x213   :  { %2337 = vmatpush.msra.mxu3 %v1393_v14  ;;  %v660_v14 = vld [vmem:[#allocation2 + $0x1260] sm:$0xff] }
 0x214   :  { %2348 = vmatpush.msrb.mxu2 %v632_v59  ;;  %v585_v59 = vld [vmem:[#allocation2 + $0x1008] sm:$0xff] }
 0x215   :  { %2338 = vmatpush.msra.mxu3 %v1391_v16  ;;  %v597_v16 = vld [vmem:[#allocation2 + $0x1068] sm:$0xff] }
 0x216   :  { %2349 = vmatpush.msrb.mxu2 %v628_v61  ;;  %v647_v61 = vld [vmem:[#allocation2 + $0x11f8] sm:$0xff] }
 0x217   :  { %2339 = vmatpush.msra.mxu3 %v1389_v41  ;;  %v2290_v41 = vld [vmem:[%s3891_s1] sm:$0x3] }
 0x218   :  { %2350 = vmatpush.msrb.mxu2 %v624_v3  ;;  %v707_v3 = vld [vmem:[#allocation2 + $0x13d8] sm:$0xff] }
 0x219   :  { %2340 = vmatpush.msra.mxu3 %v1387_v45  ;;  %v656_v45 = vld [vmem:[#allocation2 + $0x1240] sm:$0xff] }
 0x21a   :  { %v2096_v11 = vpop.f32.mrf.mxu0  ;;  %2351 = vmatpush.msrb.mxu2 %v620_v53  ;;  %v634_v53 = vld [vmem:[#allocation2 + $0x1190] sm:$0xff] }
 0x21b   :  { %v2116_v12 = vpop.f32.mrf.mxu1  ;;  %2365 = vmatpush.msrb.mxu3 %v708_v23  ;;  %v657_v23 = vld [vmem:[#allocation2 + $0x1248] sm:$0xff] }
 0x21c   :  { %v2117_v17 = vadd.f32 %v2116_v12, %v2096_v11  ;;  %v616_v12 = vld [vmem:[#allocation2 + $0x1100] sm:$0xff] }
 0x21d   :  { %2366 = vmatpush.msrb.mxu3 %v704_v50  ;;  %2352 = vmatpush.msrb.mxu2 %v616_v12  ;;  %v694_v12 = vld [vmem:[#allocation2 + $0x1370] sm:$0xff] }
 0x21f   :  { %2367 = vmatpush.msrb.mxu3 %v700_v54 }
 0x221   :  { %2368 = vmatpush.msrb.mxu3 %v696_v4  ;;  %v649_v4 = vld [vmem:[#allocation2 + $0x1208] sm:$0xff] }
 0x223   :  { %2369 = vmatpush.msrb.mxu3 %v692_v0  ;;  %v711_v0 = vld [vmem:[#allocation2 + $0x13f8] sm:$0xff] }
 0x225   :  { %2370 = vmatpush.msrb.mxu3 %v688_v5  ;;  %v638_v5 = vld [vmem:[#allocation2 + $0x11b0] sm:$0xff] }
 0x227   :  { %2371 = vmatpush.msrb.mxu3 %v684_v56  ;;  %v698_v56 = vld [vmem:[#allocation2 + $0x1390] sm:$0xff] }
 0x23b   :  { %v2176_v25 = vpop.f32.mrf.mxu0  ;;  %v2196_v26 = vpop.f32.mrf.mxu1 }
 0x23c   :  { %v2197_v57 = vadd.f32 %v2196_v26, %v2176_v25  ;;  %v612_v25 = vld [vmem:[#allocation2 + $0x10e0] sm:$0xff] }
 0x23d   :  { %v676_v26 = vld [vmem:[#allocation2 + $0x12e0] sm:$0xff]  ;;  %2353 = vmatpush.msrb.mxu2 %v612_v25  ;;  %v691_v25 = vld [vmem:[#allocation2 + $0x1358] sm:$0xff] }
 0x245   :  { %v2136_v15 = vpop.f32.mrf.mxu2 }
 0x246   :  { %v2137_v20 = vadd.f32 %v2136_v15, %v2117_v17  ;;  %v680_v15 = vld [vmem:[#allocation2 + $0x1300] sm:$0xff] }
 0x247   :  { %2372 = vmatpush.msrb.mxu3 %v680_v15  ;;  %v631_v15 = vld [vmem:[#allocation2 + $0x1178] sm:$0xff] }
 0x249   :  { %2373 = vmatpush.msrb.mxu3 %v676_v26  ;;  %v622_v26 = vld [vmem:[#allocation2 + $0x1130] sm:$0xff] }
 0x24d   :  { %v2216_v28 = vpop.f32.mrf.mxu2 }
 0x24e   :  { %v2217_v30 = vadd.f32 %v2216_v28, %v2197_v57  ;;  %v677_v28 = vld [vmem:[#allocation2 + $0x12e8] sm:$0xff] }
 0x28d   :  { %v2156_v21 = vpop.f32.mrf.mxu3 }
 0x28e   :  { %v2157_v22 = vadd.f32 %v2156_v21, %v2137_v20  ;;  %v617_v20 = vld [vmem:[#allocation2 + $0x1108] sm:$0xff] }
 0x28f   :  { %v681_v21 = vld [vmem:[#allocation2 + $0x1308] sm:$0xff]  ;;  %2392 = vmatpush.msrb.mxu0 %v617_v20  ;;  %v626_v20 = vld [vmem:[#allocation2 + $0x1150] sm:$0xff] }
 0x290   :  { %vm2239_vm4 = vcmp.ge.f32.partialorder %v2157_v22, 0.0  ;;  %v2241_v27 = vmul.f32 0.01, %v2157_v22  ;;  %2412 = vmatpush.msrb.mxu1 %v681_v21  ;;  %v690_v21 = vld [vmem:[#allocation2 + $0x1350] sm:$0xff] }
 0x292   :  { %v2243_v29 = vsel %vm2239_vm4, %v2157_v22, %v2241_v27  ;;  %v613_v27 = vld [vmem:[#allocation2 + $0x10e8] sm:$0xff]  ;;  %2413 = vmatpush.msrb.mxu1 %v677_v28  ;;  %v623_v28 = vld [vmem:[#allocation2 + $0x1138] sm:$0xff] }
 0x293   :  { %2262 = vmatmul.f32.vlgmr.msra.gmra.mxu0 %v2243_v29  ;;  %v608_v29 = vld [vmem:[#allocation2 + $0x10c0] sm:$0xff] }
 0x294   :  { %2393 = vmatpush.msrb.mxu0 %v613_v27  ;;  %2354 = vmatpush.msrb.mxu2 %v608_v29  ;;  %v686_v27 = vld [vmem:[#allocation2 + $0x1330] sm:$0xff] }
 0x295   :  { %v2236_v31 = vpop.f32.mrf.mxu3  ;;  %v618_v29 = vld [vmem:[#allocation2 + $0x1110] sm:$0xff] }
 0x296   :  { %v2237_v63 = vadd.f32 %v2236_v31, %v2217_v30  ;;  %v672_v30 = vld [vmem:[#allocation2 + $0x12c0] sm:$0xff]  ;;  %v609_v31 = vld [vmem:[#allocation2 + $0x10c8] sm:$0xff] }
 0x297   :  { %2374 = vmatpush.msrb.mxu3 %v672_v30  ;;  %2394 = vmatpush.msrb.mxu0 %v609_v31  ;;  %v682_v30 = vld [vmem:[#allocation2 + $0x1310] sm:$0xff]  ;;  %v619_v31 = vld [vmem:[#allocation2 + $0x1118] sm:$0xff] }
 0x298   :  { %vm2240_vm5 = vcmp.ge.f32.partialorder %v2237_v63, 0.0  ;;  %v2242_v33 = vmul.f32 0.01, %v2237_v63 }
 0x299   :  { %2375 = vmatpush.msrb.mxu3 %v668_v36  ;;  %2395 = vmatpush.msrb.mxu0 %v605_v37  ;;  %v615_v36 = vld [vmem:[#allocation2 + $0x10f8] sm:$0xff] }
 0x29a   :  { %v2244_v34 = vsel %vm2240_vm5, %v2237_v63, %v2242_v33  ;;  %v673_v63 = vld [vmem:[#allocation2 + $0x12c8] sm:$0xff]  ;;  %v679_v37 = vld [vmem:[#allocation2 + $0x12f8] sm:$0xff] }
 0x29b   :  { %2282 = vmatmul.f32.vlgmr.msra.gmra.mxu1 %v2244_v34  ;;  %v604_v34 = vld [vmem:[#allocation2 + $0x10a0] sm:$0xff]  ;;  %2376 = vmatpush.msrb.mxu3 %v664_v9  ;;  %v675_v9 = vld [vmem:[#allocation2 + $0x12d8] sm:$0xff] }
 0x29c   :  { %2414 = vmatpush.msrb.mxu1 %v673_v63  ;;  %2355 = vmatpush.msrb.mxu2 %v604_v34  ;;  %v683_v63 = vld [vmem:[#allocation2 + $0x1318] sm:$0xff]  ;;  %v678_v34 = vld [vmem:[#allocation2 + $0x12f0] sm:$0xff] }
 0x29d   :  { %2396 = vmatpush.msrb.mxu0 %v601_v13  ;;  %2377 = vmatpush.msrb.mxu3 %v660_v14  ;;  %v606_v13 = vld [vmem:[#allocation2 + $0x10b0] sm:$0xff]  ;;  %v671_v14 = vld [vmem:[#allocation2 + $0x12b8] sm:$0xff] }
 0x29e   :  { %2415 = vmatpush.msrb.mxu1 %v669_v38  ;;  %2356 = vmatpush.msrb.mxu2 %v600_v32  ;;  %v610_v38 = vld [vmem:[#allocation2 + $0x10d0] sm:$0xff]  ;;  %v611_v32 = vld [vmem:[#allocation2 + $0x10d8] sm:$0xff] }
 0x29f   :  { %2397 = vmatpush.msrb.mxu0 %v597_v16  ;;  %2378 = vmatpush.msrb.mxu3 %v656_v45  ;;  %v666_v16 = vld [vmem:[#allocation2 + $0x1290] sm:$0xff] }
 0x2a0   :  { %2416 = vmatpush.msrb.mxu1 %v665_v42  ;;  %2357 = vmatpush.msrb.mxu2 %v596_v43  ;;  %v670_v42 = vld [vmem:[#allocation2 + $0x12b0] sm:$0xff]  ;;  %v607_v43 = vld [vmem:[#allocation2 + $0x10b8] sm:$0xff] }
 0x2a1   :  { %2398 = vmatpush.msrb.mxu0 %v593_v47  ;;  %2379 = vmatpush.msrb.mxu3 %v652_v49  ;;  %v662_v45 = vld [vmem:[#allocation2 + $0x1270] sm:$0xff]  ;;  %v599_v47 = vld [vmem:[#allocation2 + $0x1078] sm:$0xff] }
 0x2a2   :  { %2417 = vmatpush.msrb.mxu1 %v661_v19  ;;  %2358 = vmatpush.msrb.mxu2 %v592_v44  ;;  %v603_v19 = vld [vmem:[#allocation2 + $0x1098] sm:$0xff]  ;;  %v598_v44 = vld [vmem:[#allocation2 + $0x1070] sm:$0xff] }
 0x2a3   :  { %2399 = vmatpush.msrb.mxu0 %v589_v51  ;;  %2380 = vmatpush.msrb.mxu3 %v648_v58  ;;  %v595_v49 = vld [vmem:[#allocation2 + $0x1058] sm:$0xff]  ;;  %v654_v51 = vld [vmem:[#allocation2 + $0x1230] sm:$0xff] }
 0x2a4   :  { %2418 = vmatpush.msrb.mxu1 %v657_v23  ;;  %2359 = vmatpush.msrb.mxu2 %v588_v48  ;;  %v663_v23 = vld [vmem:[#allocation2 + $0x1278] sm:$0xff]  ;;  %v658_v48 = vld [vmem:[#allocation2 + $0x1250] sm:$0xff] }
 0x2a5   :  { %2400 = vmatpush.msrb.mxu0 %v585_v59  ;;  %v650_v58 = vld [vmem:[#allocation2 + $0x1210] sm:$0xff]  ;;  %v587_v59 = vld [vmem:[#allocation2 + $0x1018] sm:$0xff] }
 0x2a6   :  { %2419 = vmatpush.msrb.mxu1 %v653_v52  ;;  %2360 = vmatpush.msrb.mxu2 %v584_v55  ;;  %v591_v52 = vld [vmem:[#allocation2 + $0x1038] sm:$0xff]  ;;  %v586_v55 = vld [vmem:[#allocation2 + $0x1010] sm:$0xff] }
 0x2a7   :  { %2465 = vmatpush.msra.mxu0 %v647_v61 }
 0x2a8   :  { %2420 = vmatpush.msrb.mxu1 %v649_v4  ;;  %v651_v4 = vld [vmem:[#allocation2 + $0x1218] sm:$0xff] }
 0x2aa   :  { %2485 = vmatpush.msra.mxu1 %v711_v0 }
 0x2ac   :  { %2486 = vmatpush.msra.mxu1 %v707_v3  ;;  %v1088_v3 = vld [vmem:[#allocation4 + $0x9c0] sm:$0xff] }
 0x2ae   :  { %2487 = vmatpush.msra.mxu1 %v703_v7  ;;  %v1080_v7 = vld [vmem:[#allocation4 + $0x970] sm:$0xff] }
 0x2b0   :  { %2488 = vmatpush.msra.mxu1 %v699_v10  ;;  %v1072_v10 = vld [vmem:[#allocation4 + $0x920] sm:$0xff] }
 0x310   :  { %v2263_v35 = vpop.f32.mrf.mxu0 }
 0x311   :  { %v2264_v11 = vadd.f32 %v3365_v40, %v2263_v35  ;;  %v643_v40 = vld [vmem:[#allocation2 + $0x11d8] sm:$0xff]  ;;  %v702_v35 = vld [vmem:[#allocation2 + $0x13b0] sm:$0xff] }
 0x312   :  { %2466 = vmatpush.msra.mxu0 %v643_v40 }
 0x314   :  { %2467 = vmatpush.msra.mxu0 %v639_v6  ;;  %v1216_v6 = vld [vmem:[#allocation4 + $0xec0] sm:$0xff] }
 0x316   :  { %2468 = vmatpush.msra.mxu0 %v635_v8  ;;  %v1208_v8 = vld [vmem:[#allocation4 + $0xe70] sm:$0xff] }
 0x318   :  { %v2283_v17 = vpop.f32.mrf.mxu1  ;;  %2469 = vmatpush.msra.mxu0 %v631_v15  ;;  %v1200_v15 = vld [vmem:[#allocation4 + $0xe20] sm:$0xff] }
 0x319   :  { %v2284_v22 = vadd.f32 %v2283_v17, %v2264_v11  ;;  %v630_v11 = vld [vmem:[#allocation2 + $0x1170] sm:$0xff]  ;;  %v695_v17 = vld [vmem:[#allocation2 + $0x1378] sm:$0xff] }
 0x31a   :  { %2489 = vmatpush.msra.mxu1 %v695_v17  ;;  %v1064_v17 = vld [vmem:[#allocation4 + $0x8d0] sm:$0xff] }
 0x31b   :  { %2287 = vst.msk [vmem:[%s3897_s7] sm:$0x3] %vm2286_vm6, %v2284_v22  ;;  %v2291_v57 = vmul.f32 0.5, %v2284_v22  ;;  %v2289_v50 = vmul.f32 %v2288_v18, %v2284_v22  ;;  %v627_v22 = vld [vmem:[#allocation2 + $0x1158] sm:$0xff]  ;;  %v602_v18 = vld [vmem:[#allocation2 + $0x1090] sm:$0xff] }
 0x31c   :  { %2470 = vmatpush.msra.mxu0 %v627_v22  ;;  %2490 = vmatpush.msra.mxu1 %v691_v25  ;;  %v1192_v22 = vld [vmem:[#allocation4 + $0xdd0] sm:$0xff]  ;;  %v1056_v25 = vld [vmem:[#allocation4 + $0x880] sm:$0xff] }
 0x31d   :  { %v2292_v33 = vmul.f32 1.442695, %v2291_v57  ;;  %v687_v57 = vld [vmem:[#allocation2 + $0x1338] sm:$0xff] }
 0x31e   :  { %2471 = vmatpush.msra.mxu0 %v623_v28  ;;  %2491 = vmatpush.msra.mxu1 %v687_v57  ;;  %v1184_v28 = vld [vmem:[#allocation4 + $0xd80] sm:$0xff]  ;;  %v1048_v57 = vld [vmem:[#allocation4 + $0x830] sm:$0xff] }
 0x31f   :  { %3366 = vpow2.f32 %v2292_v33  ;;  %v614_v33 = vld [vmem:[#allocation2 + $0x10f0] sm:$0xff] }
 0x320   :  { %2472 = vmatpush.msra.mxu0 %v619_v31  ;;  %2492 = vmatpush.msra.mxu1 %v683_v63  ;;  %v1176_v31 = vld [vmem:[#allocation4 + $0xd30] sm:$0xff]  ;;  %v1040_v63 = vld [vmem:[#allocation4 + $0x7e0] sm:$0xff] }
 0x322   :  { %2473 = vmatpush.msra.mxu0 %v615_v36  ;;  %2493 = vmatpush.msra.mxu1 %v679_v37  ;;  %v1168_v36 = vld [vmem:[#allocation4 + $0xce0] sm:$0xff]  ;;  %v1032_v37 = vld [vmem:[#allocation4 + $0x790] sm:$0xff] }
 0x324   :  { %2474 = vmatpush.msra.mxu0 %v611_v32  ;;  %2494 = vmatpush.msra.mxu1 %v675_v9  ;;  %v1160_v32 = vld [vmem:[#allocation4 + $0xc90] sm:$0xff]  ;;  %v1024_v9 = vld [vmem:[#allocation4 + $0x740] sm:$0xff] }
 0x325   :  { %v3367_v24 = vpop.eup %3366 }
 0x326   :  { %v2294_v46 = vmul.f32 %v3367_v24, %v2290_v41  ;;  %2475 = vmatpush.msra.mxu0 %v607_v43  ;;  %2495 = vmatpush.msra.mxu1 %v671_v14  ;;  %v667_v41 = vld [vmem:[#allocation2 + $0x1298] sm:$0xff]  ;;  %v594_v24 = vld [vmem:[#allocation2 + $0x1050] sm:$0xff]  ;;  %v1152_v43 = vld [vmem:[#allocation4 + $0xc40] sm:$0xff] }
 0x327   :  { %v1016_v14 = vld [vmem:[#allocation4 + $0x6f0] sm:$0xff] }
 0x328   :  { %v2295_v54 = vadd.f32 %v2294_v46, %v2289_v50  ;;  %2476 = vmatpush.msra.mxu0 %v603_v19  ;;  %2496 = vmatpush.msra.mxu1 %v667_v41  ;;  %v659_v50 = vld [vmem:[#allocation2 + $0x1258] sm:$0xff]  ;;  %v590_v46 = vld [vmem:[#allocation2 + $0x1030] sm:$0xff]  ;;  %v1008_v41 = vld [vmem:[#allocation4 + $0x6a0] sm:$0xff] }
 0x329   :  { %v1144_v19 = vld [vmem:[#allocation4 + $0xbf0] sm:$0xff] }
 0x32a   :  { %3346 = vmatmul.msk.f32.vlgmr.msra.gmra.mxu2 %vm2301_vm7, %v2295_v54  ;;  %3347 = vmatmul.msk.f32.vlgmr.msra.gmra.mxu3 %vm2301_vm7, %v2295_v54  ;;  %v655_v54 = vld [vmem:[#allocation2 + $0x1238] sm:$0xff] }
 0x32b   :  { %2425 = vmatpush.msra.mxu2 %v646_v62  ;;  %2445 = vmatpush.msra.mxu3 %v710_v60  ;;  %v1403_v62 = vld [vmem:[#allocation6 + $0x80] ss:$8 sm:$0x3] }
 0x32c   :  { %2477 = vmatpush.msra.mxu0 %v599_v47  ;;  %2497 = vmatpush.msra.mxu1 %v663_v23  ;;  %v2297_v60 = vperm.slane %v1403_v62, 0  ;;  %v2298_v61 = vperm.slane %v1403_v62, 1  ;;  %v1136_v47 = vld [vmem:[#allocation4 + $0xba0] sm:$0xff]  ;;  %v1000_v23 = vld [vmem:[#allocation4 + $0x650] sm:$0xff] }
 0x32d   :  { %2426 = vmatpush.msra.mxu2 %v642_v1  ;;  %2446 = vmatpush.msra.mxu3 %v706_v2  ;;  %v848_v62 = vld [vmem:[#allocation4 + $0x60] sm:$0xff] }
 0x32e   :  { %2478 = vmatpush.msra.mxu0 %v595_v49  ;;  %2498 = vmatpush.msra.mxu1 %v659_v50  ;;  %v1128_v49 = vld [vmem:[#allocation4 + $0xb50] sm:$0xff]  ;;  %v992_v50 = vld [vmem:[#allocation4 + $0x600] sm:$0xff] }
 0x32f   :  { %2427 = vmatpush.msra.mxu2 %v638_v5  ;;  %2447 = vmatpush.msra.mxu3 %v702_v35  ;;  %v960_v5 = vld [vmem:[#allocation4 + $0x4c0] sm:$0xff] }
 0x330   :  { %2479 = vmatpush.msra.mxu0 %v591_v52  ;;  %2499 = vmatpush.msra.mxu1 %v655_v54  ;;  %v1344_v35 = vld [vmem:[#allocation4 + $0x13c0] sm:$0xff]  ;;  %v984_v54 = vld [vmem:[#allocation4 + $0x5b0] sm:$0xff] }
 0x331   :  { %2428 = vmatpush.msra.mxu2 %v634_v53  ;;  %2448 = vmatpush.msra.mxu3 %v698_v56  ;;  %v952_v53 = vld [vmem:[#allocation4 + $0x470] sm:$0xff]  ;;  %v1120_v52 = vld [vmem:[#allocation4 + $0xb00] sm:$0xff] }
 0x332   :  { %2480 = vmatpush.msra.mxu0 %v587_v59  ;;  %2500 = vmatpush.msra.mxu1 %v651_v4  ;;  %v1336_v56 = vld [vmem:[#allocation4 + $0x1370] sm:$0xff]  ;;  %v976_v4 = vld [vmem:[#allocation4 + $0x560] sm:$0xff] }
 0x333   :  { %2429 = vmatpush.msra.mxu2 %v630_v11  ;;  %2449 = vmatpush.msra.mxu3 %v694_v12  ;;  %v944_v11 = vld [vmem:[#allocation4 + $0x420] sm:$0xff]  ;;  %v1112_v59 = vld [vmem:[#allocation4 + $0xab0] sm:$0xff] }
 0x334   :  { %v1328_v12 = vld [vmem:[#allocation4 + $0x1320] sm:$0xff] }
 0x335   :  { %2430 = vmatpush.msra.mxu2 %v626_v20  ;;  %2450 = vmatpush.msra.mxu3 %v690_v21  ;;  %v936_v20 = vld [vmem:[#allocation4 + $0x3d0] sm:$0xff] }
 0x336   :  { %v1320_v21 = vld [vmem:[#allocation4 + $0x12d0] sm:$0xff] }
 0x337   :  { %2431 = vmatpush.msra.mxu2 %v622_v26  ;;  %2451 = vmatpush.msra.mxu3 %v686_v27  ;;  %v928_v26 = vld [vmem:[#allocation4 + $0x380] sm:$0xff] }
 0x338   :  { %v1312_v27 = vld [vmem:[#allocation4 + $0x1280] sm:$0xff] }
 0x339   :  { %2432 = vmatpush.msra.mxu2 %v618_v29  ;;  %2452 = vmatpush.msra.mxu3 %v682_v30  ;;  %v920_v29 = vld [vmem:[#allocation4 + $0x330] sm:$0xff] }
 0x33a   :  { %v1304_v30 = vld [vmem:[#allocation4 + $0x1230] sm:$0xff] }
 0x33b   :  { %2433 = vmatpush.msra.mxu2 %v614_v33  ;;  %2453 = vmatpush.msra.mxu3 %v678_v34  ;;  %v912_v33 = vld [vmem:[#allocation4 + $0x2e0] sm:$0xff] }
 0x33c   :  { %v1296_v34 = vld [vmem:[#allocation4 + $0x11e0] sm:$0xff] }
 0x33d   :  { %2434 = vmatpush.msra.mxu2 %v610_v38  ;;  %2454 = vmatpush.msra.mxu3 %v674_v39  ;;  %v904_v38 = vld [vmem:[#allocation4 + $0x290] sm:$0xff] }
 0x33e   :  { %v1288_v39 = vld [vmem:[#allocation4 + $0x1190] sm:$0xff] }
 0x33f   :  { %2435 = vmatpush.msra.mxu2 %v606_v13  ;;  %2455 = vmatpush.msra.mxu3 %v670_v42  ;;  %v896_v13 = vld [vmem:[#allocation4 + $0x240] sm:$0xff] }
 0x340   :  { %v1280_v42 = vld [vmem:[#allocation4 + $0x1140] sm:$0xff] }
 0x341   :  { %2436 = vmatpush.msra.mxu2 %v602_v18  ;;  %2456 = vmatpush.msra.mxu3 %v666_v16  ;;  %v888_v18 = vld [vmem:[#allocation4 + $0x1f0] sm:$0xff] }
 0x342   :  { %v1272_v16 = vld [vmem:[#allocation4 + $0x10f0] sm:$0xff] }
 0x343   :  { %2437 = vmatpush.msra.mxu2 %v598_v44  ;;  %2457 = vmatpush.msra.mxu3 %v662_v45  ;;  %v880_v44 = vld [vmem:[#allocation4 + $0x1a0] sm:$0xff] }
 0x344   :  { %v1264_v45 = vld [vmem:[#allocation4 + $0x10a0] sm:$0xff] }
 0x345   :  { %2438 = vmatpush.msra.mxu2 %v594_v24  ;;  %2458 = vmatpush.msra.mxu3 %v658_v48  ;;  %v872_v24 = vld [vmem:[#allocation4 + $0x150] sm:$0xff] }
 0x346   :  { %v1256_v48 = vld [vmem:[#allocation4 + $0x1050] sm:$0xff] }
 0x347   :  { %2439 = vmatpush.msra.mxu2 %v590_v46  ;;  %2459 = vmatpush.msra.mxu3 %v654_v51  ;;  %v864_v46 = vld [vmem:[#allocation4 + $0x100] sm:$0xff] }
 0x348   :  { %v1248_v51 = vld [vmem:[#allocation4 + $0x1000] sm:$0xff] }
 0x349   :  { %2440 = vmatpush.msra.mxu2 %v586_v55  ;;  %2460 = vmatpush.msra.mxu3 %v650_v58  ;;  %v856_v55 = vld [vmem:[#allocation4 + $0xb0] sm:$0xff] }
 0x34a   :  { %v1240_v58 = vld [vmem:[#allocation4 + $0xfb0] sm:$0xff] }
 0x3ad   :  { %v2322_v0 = vpop.f32.mrf.mxu2  ;;  %v2342_v1 = vpop.f32.mrf.mxu3 }
 0x3ae   :  { %v2323_v2 = vadd.f32 %v2322_v0, %v2297_v60  ;;  %v2343_v40 = vadd.f32 %v2342_v1, %v2298_v61  ;;  %v1232_v60 = vld [vmem:[#allocation4 + $0xf60] sm:$0xff]  ;;  %v968_v0 = vld [vmem:[#allocation4 + $0x510] sm:$0xff] }
 0x3af   :  { %v1104_v61 = vld [vmem:[#allocation4 + $0xa60] sm:$0xff]  ;;  %v840_v1 = vld [vmem:[#allocation4 + $0x10] sm:$0xff] }
 0x3b0   :  { %2361 = vmatmul.f32.vlgmr.msrb.gmra.mxu2 %v2323_v2  ;;  %2381 = vmatmul.f32.vlgmr.msrb.gmra.mxu3 %v2343_v40 }
 0x3b1   :  { %2401 = vmatmul.f32.vlgmr.msrb.gmra.mxu0 %v2323_v2  ;;  %2421 = vmatmul.f32.vlgmr.msrb.gmra.mxu1 %v2343_v40 }
 0x3b2   :  { %2537 = vmatpush.msrb.mxu3 %v1088_v3  ;;  %2517 = vmatpush.msrb.mxu2 %v960_v5  ;;  %v1224_v3 = vld [vmem:[#allocation4 + $0xf10] sm:$0xff] }
 0x3b3   :  { %2577 = vmatpush.msrb.mxu1 %v1344_v35  ;;  %2557 = vmatpush.msrb.mxu0 %v1216_v6  ;;  %v1096_v5 = vld [vmem:[#allocation4 + $0xa10] sm:$0xff]  ;;  %v1081_v35 = vld [vmem:[#allocation4 + $0x978] sm:$0xff] }
 0x3b4   :  { %2538 = vmatpush.msrb.mxu3 %v1080_v7  ;;  %2518 = vmatpush.msrb.mxu2 %v952_v53  ;;  %v953_v6 = vld [vmem:[#allocation4 + $0x478] sm:$0xff]  ;;  %v1345_v7 = vld [vmem:[#allocation4 + $0x13c8] sm:$0xff] }
 0x3b5   :  { %2578 = vmatpush.msrb.mxu1 %v1336_v56  ;;  %2558 = vmatpush.msrb.mxu0 %v1208_v8  ;;  %v1217_v53 = vld [vmem:[#allocation4 + $0xec8] sm:$0xff] }
 0x3b6   :  { %2539 = vmatpush.msrb.mxu3 %v1072_v10  ;;  %2519 = vmatpush.msrb.mxu2 %v944_v11  ;;  %v1073_v56 = vld [vmem:[#allocation4 + $0x928] sm:$0xff]  ;;  %v1337_v10 = vld [vmem:[#allocation4 + $0x1378] sm:$0xff] }
 0x3b7   :  { %2579 = vmatpush.msrb.mxu1 %v1328_v12  ;;  %2559 = vmatpush.msrb.mxu0 %v1200_v15  ;;  %v945_v8 = vld [vmem:[#allocation4 + $0x428] sm:$0xff]  ;;  %v1209_v11 = vld [vmem:[#allocation4 + $0xe78] sm:$0xff] }
 0x3b8   :  { %2441 = vmatmul.f32.vlgmr.msra.gmra.mxu2 %v2323_v2  ;;  %2461 = vmatmul.f32.vlgmr.msra.gmra.mxu3 %v2343_v40  ;;  %v1065_v12 = vld [vmem:[#allocation4 + $0x8d8] sm:$0xff] }
 0x3b9   :  { %2481 = vmatmul.f32.vlgmr.msra.gmra.mxu0 %v2323_v2  ;;  %2501 = vmatmul.f32.vlgmr.msra.gmra.mxu1 %v2343_v40  ;;  %v1089_v2 = vld [vmem:[#allocation4 + $0x9c8] sm:$0xff]  ;;  %v937_v15 = vld [vmem:[#allocation4 + $0x3d8] sm:$0xff] }
 0x3ba   :  { %2540 = vmatpush.msrb.mxu3 %v1064_v17  ;;  %2520 = vmatpush.msrb.mxu2 %v936_v20  ;;  %v961_v40 = vld [vmem:[#allocation4 + $0x4c8] sm:$0xff] }
 0x3bb   :  { %2580 = vmatpush.msrb.mxu1 %v1320_v21  ;;  %2560 = vmatpush.msrb.mxu0 %v1192_v22  ;;  %v1329_v17 = vld [vmem:[#allocation4 + $0x1328] sm:$0xff] }
 0x3bc   :  { %2541 = vmatpush.msrb.mxu3 %v1056_v25  ;;  %2521 = vmatpush.msrb.mxu2 %v928_v26  ;;  %v1201_v20 = vld [vmem:[#allocation4 + $0xe28] sm:$0xff]  ;;  %v1321_v25 = vld [vmem:[#allocation4 + $0x12d8] sm:$0xff] }
 0x3bd   :  { %2581 = vmatpush.msrb.mxu1 %v1312_v27  ;;  %2561 = vmatpush.msrb.mxu0 %v1184_v28  ;;  %v1057_v21 = vld [vmem:[#allocation4 + $0x888] sm:$0xff]  ;;  %v1193_v26 = vld [vmem:[#allocation4 + $0xdd8] sm:$0xff] }
 0x3be   :  { %2542 = vmatpush.msrb.mxu3 %v1048_v57  ;;  %2522 = vmatpush.msrb.mxu2 %v920_v29  ;;  %v929_v22 = vld [vmem:[#allocation4 + $0x388] sm:$0xff]  ;;  %v1049_v27 = vld [vmem:[#allocation4 + $0x838] sm:$0xff] }
 0x3bf   :  { %2582 = vmatpush.msrb.mxu1 %v1304_v30  ;;  %2562 = vmatpush.msrb.mxu0 %v1176_v31  ;;  %v921_v28 = vld [vmem:[#allocation4 + $0x338] sm:$0xff]  ;;  %v1313_v57 = vld [vmem:[#allocation4 + $0x1288] sm:$0xff] }
 0x3c0   :  { %2543 = vmatpush.msrb.mxu3 %v1040_v63  ;;  %2523 = vmatpush.msrb.mxu2 %v912_v33  ;;  %v1185_v29 = vld [vmem:[#allocation4 + $0xd88] sm:$0xff]  ;;  %v1305_v63 = vld [vmem:[#allocation4 + $0x1238] sm:$0xff] }
 0x3c1   :  { %2583 = vmatpush.msrb.mxu1 %v1296_v34  ;;  %2563 = vmatpush.msrb.mxu0 %v1168_v36  ;;  %v1041_v30 = vld [vmem:[#allocation4 + $0x7e8] sm:$0xff]  ;;  %v1177_v33 = vld [vmem:[#allocation4 + $0xd38] sm:$0xff] }
 0x3c2   :  { %2544 = vmatpush.msrb.mxu3 %v1032_v37  ;;  %2524 = vmatpush.msrb.mxu2 %v904_v38  ;;  %v913_v31 = vld [vmem:[#allocation4 + $0x2e8] sm:$0xff]  ;;  %v1033_v34 = vld [vmem:[#allocation4 + $0x798] sm:$0xff] }
 0x3c3   :  { %2584 = vmatpush.msrb.mxu1 %v1288_v39  ;;  %2564 = vmatpush.msrb.mxu0 %v1160_v32  ;;  %v905_v36 = vld [vmem:[#allocation4 + $0x298] sm:$0xff]  ;;  %v1297_v37 = vld [vmem:[#allocation4 + $0x11e8] sm:$0xff] }
 0x3c4   :  { %2545 = vmatpush.msrb.mxu3 %v1024_v9  ;;  %2525 = vmatpush.msrb.mxu2 %v896_v13  ;;  %v1025_v38 = vld [vmem:[#allocation4 + $0x748] sm:$0xff]  ;;  %v1289_v32 = vld [vmem:[#allocation4 + $0x1198] sm:$0xff] }
 0x3c5   :  { %2585 = vmatpush.msrb.mxu1 %v1280_v42  ;;  %2565 = vmatpush.msrb.mxu0 %v1152_v43  ;;  %v897_v39 = vld [vmem:[#allocation4 + $0x248] sm:$0xff]  ;;  %v1017_v9 = vld [vmem:[#allocation4 + $0x6f8] sm:$0xff] }
 0x3c6   :  { %2546 = vmatpush.msrb.mxu3 %v1016_v14  ;;  %2526 = vmatpush.msrb.mxu2 %v888_v18  ;;  %v889_v13 = vld [vmem:[#allocation4 + $0x1f8] sm:$0xff]  ;;  %v1281_v42 = vld [vmem:[#allocation4 + $0x1148] sm:$0xff] }
 0x3c7   :  { %2586 = vmatpush.msrb.mxu1 %v1272_v16  ;;  %2566 = vmatpush.msrb.mxu0 %v1144_v19  ;;  %v1009_v43 = vld [vmem:[#allocation4 + $0x6a8] sm:$0xff]  ;;  %v1001_v14 = vld [vmem:[#allocation4 + $0x658] sm:$0xff] }
 0x3c8   :  { %2547 = vmatpush.msrb.mxu3 %v1008_v41  ;;  %2527 = vmatpush.msrb.mxu2 %v880_v44  ;;  %v993_v18 = vld [vmem:[#allocation4 + $0x608] sm:$0xff]  ;;  %v985_v19 = vld [vmem:[#allocation4 + $0x5b8] sm:$0xff] }
 0x3c9   :  { %2587 = vmatpush.msrb.mxu1 %v1264_v45  ;;  %2567 = vmatpush.msrb.mxu0 %v1136_v47  ;;  %v881_v16 = vld [vmem:[#allocation4 + $0x1a8] sm:$0xff]  ;;  %v1273_v44 = vld [vmem:[#allocation4 + $0x10f8] sm:$0xff] }
 0x3ca   :  { %2548 = vmatpush.msrb.mxu3 %v1000_v23  ;;  %2528 = vmatpush.msrb.mxu2 %v872_v24  ;;  %v1169_v41 = vld [vmem:[#allocation4 + $0xce8] sm:$0xff]  ;;  %v873_v45 = vld [vmem:[#allocation4 + $0x158] sm:$0xff] }
 0x3cb   :  { %2588 = vmatpush.msrb.mxu1 %v1256_v48  ;;  %2568 = vmatpush.msrb.mxu0 %v1128_v49  ;;  %v977_v47 = vld [vmem:[#allocation4 + $0x568] sm:$0xff]  ;;  %v1161_v23 = vld [vmem:[#allocation4 + $0xc98] sm:$0xff] }
 0x3cc   :  { %2549 = vmatpush.msrb.mxu3 %v992_v50  ;;  %2529 = vmatpush.msrb.mxu2 %v864_v46  ;;  %v1265_v24 = vld [vmem:[#allocation4 + $0x10a8] sm:$0xff]  ;;  %v969_v49 = vld [vmem:[#allocation4 + $0x518] sm:$0xff] }
 0x3cd   :  { %2589 = vmatpush.msrb.mxu1 %v1248_v51  ;;  %2569 = vmatpush.msrb.mxu0 %v1120_v52  ;;  %v865_v48 = vld [vmem:[#allocation4 + $0x108] sm:$0xff]  ;;  %v1257_v46 = vld [vmem:[#allocation4 + $0x1058] sm:$0xff] }
 0x3ce   :  { %2550 = vmatpush.msrb.mxu3 %v984_v54  ;;  %2530 = vmatpush.msrb.mxu2 %v856_v55  ;;  %v1153_v50 = vld [vmem:[#allocation4 + $0xc48] sm:$0xff]  ;;  %v857_v51 = vld [vmem:[#allocation4 + $0xb8] sm:$0xff] }
 0x3cf   :  { %2590 = vmatpush.msrb.mxu1 %v1240_v58  ;;  %2570 = vmatpush.msrb.mxu0 %v1112_v59  ;;  %v1145_v52 = vld [vmem:[#allocation4 + $0xbf8] sm:$0xff]  ;;  %v1249_v54 = vld [vmem:[#allocation4 + $0x1008] sm:$0xff] }
 0x3d0   :  { %2551 = vmatpush.msrb.mxu3 %v976_v4  ;;  %2531 = vmatpush.msrb.mxu2 %v848_v62  ;;  %v849_v55 = vld [vmem:[#allocation4 + $0x68] sm:$0xff]  ;;  %v1241_v59 = vld [vmem:[#allocation4 + $0xfb8] sm:$0xff] }
 0x3d1   :  { %2591 = vmatpush.msrb.mxu1 %v1232_v60  ;;  %2571 = vmatpush.msrb.mxu0 %v1104_v61  ;;  %v1137_v58 = vld [vmem:[#allocation4 + $0xba8] sm:$0xff]  ;;  %v841_v4 = vld [vmem:[#allocation4 + $0x18] sm:$0xff] }
 0x3d2   :  { %2552 = vmatpush.msrb.mxu3 %v968_v0  ;;  %2532 = vmatpush.msrb.mxu2 %v840_v1  ;;  %v1129_v62 = vld [vmem:[#allocation4 + $0xb58] sm:$0xff]  ;;  %v1233_v60 = vld [vmem:[#allocation4 + $0xf68] sm:$0xff] }
 0x3d3   :  { %2592 = vmatpush.msrb.mxu1 %v1224_v3  ;;  %2572 = vmatpush.msrb.mxu0 %v1096_v5  ;;  %v1121_v61 = vld [vmem:[#allocation4 + $0xb08] sm:$0xff]  ;;  %v1225_v0 = vld [vmem:[#allocation4 + $0xf18] sm:$0xff] }
 0x3d4   :  { %2617 = vmatpush.msra.mxu3 %v1089_v2  ;;  %2597 = vmatpush.msra.mxu2 %v961_v40  ;;  %v1113_v1 = vld [vmem:[#allocation4 + $0xab8] sm:$0xff]  ;;  %v1105_v2 = vld [vmem:[#allocation4 + $0xa68] sm:$0xff] }
 0x3d5   :  { %2657 = vmatpush.msra.mxu1 %v1345_v7  ;;  %2637 = vmatpush.msra.mxu0 %v1217_v53  ;;  %v1097_v40 = vld [vmem:[#allocation4 + $0xa18] sm:$0xff]  ;;  %v1090_v7 = vld [vmem:[#allocation4 + $0x9d0] sm:$0xff] }
 0x3d6   :  { %2618 = vmatpush.msra.mxu3 %v1081_v35  ;;  %2598 = vmatpush.msra.mxu2 %v953_v6 }
 0x3d7   :  { %2658 = vmatpush.msra.mxu1 %v1337_v10  ;;  %2638 = vmatpush.msra.mxu0 %v1209_v11  ;;  %v1082_v11 = vld [vmem:[#allocation4 + $0x980] sm:$0xff] }
 0x3d8   :  { %2619 = vmatpush.msra.mxu3 %v1073_v56  ;;  %2599 = vmatpush.msra.mxu2 %v945_v8 }
 0x3d9   :  { %2659 = vmatpush.msra.mxu1 %v1329_v17  ;;  %2639 = vmatpush.msra.mxu0 %v1201_v20  ;;  %v1074_v20 = vld [vmem:[#allocation4 + $0x930] sm:$0xff] }
 0x3da   :  { %2620 = vmatpush.msra.mxu3 %v1065_v12  ;;  %2600 = vmatpush.msra.mxu2 %v937_v15 }
 0x3db   :  { %2660 = vmatpush.msra.mxu1 %v1321_v25  ;;  %2640 = vmatpush.msra.mxu0 %v1193_v26  ;;  %v1066_v26 = vld [vmem:[#allocation4 + $0x8e0] sm:$0xff] }
 0x3dc   :  { %2621 = vmatpush.msra.mxu3 %v1057_v21  ;;  %2601 = vmatpush.msra.mxu2 %v929_v22  ;;  %v962_v22 = vld [vmem:[#allocation4 + $0x4d0] sm:$0xff] }
 0x3dd   :  { %2661 = vmatpush.msra.mxu1 %v1313_v57  ;;  %2641 = vmatpush.msra.mxu0 %v1185_v29  ;;  %v1058_v57 = vld [vmem:[#allocation4 + $0x890] sm:$0xff] }
 0x3de   :  { %2622 = vmatpush.msra.mxu3 %v1049_v27  ;;  %2602 = vmatpush.msra.mxu2 %v921_v28  ;;  %v954_v28 = vld [vmem:[#allocation4 + $0x480] sm:$0xff] }
 0x3df   :  { %2662 = vmatpush.msra.mxu1 %v1305_v63  ;;  %2642 = vmatpush.msra.mxu0 %v1177_v33  ;;  %v1346_v63 = vld [vmem:[#allocation4 + $0x13d0] sm:$0xff] }
 0x3e0   :  { %2623 = vmatpush.msra.mxu3 %v1041_v30  ;;  %2603 = vmatpush.msra.mxu2 %v913_v31 }
 0x3e1   :  { %2663 = vmatpush.msra.mxu1 %v1297_v37  ;;  %2643 = vmatpush.msra.mxu0 %v1169_v41  ;;  %v1338_v37 = vld [vmem:[#allocation4 + $0x1380] sm:$0xff] }
 0x3e2   :  { %2624 = vmatpush.msra.mxu3 %v1033_v34  ;;  %2604 = vmatpush.msra.mxu2 %v905_v36  ;;  %v946_v34 = vld [vmem:[#allocation4 + $0x430] sm:$0xff]  ;;  %v1050_v36 = vld [vmem:[#allocation4 + $0x840] sm:$0xff] }
 0x3e3   :  { %2664 = vmatpush.msra.mxu1 %v1289_v32  ;;  %2644 = vmatpush.msra.mxu0 %v1161_v23  ;;  %v1042_v32 = vld [vmem:[#allocation4 + $0x7f0] sm:$0xff]  ;;  %v1210_v41 = vld [vmem:[#allocation4 + $0xe80] sm:$0xff] }
 0x3e4   :  { %2625 = vmatpush.msra.mxu3 %v1025_v38  ;;  %2605 = vmatpush.msra.mxu2 %v897_v39  ;;  %v938_v39 = vld [vmem:[#allocation4 + $0x3e0] sm:$0xff]  ;;  %v1202_v23 = vld [vmem:[#allocation4 + $0xe30] sm:$0xff] }
 0x3e5   :  { %2665 = vmatpush.msra.mxu1 %v1281_v42  ;;  %2645 = vmatpush.msra.mxu0 %v1153_v50  ;;  %v1034_v42 = vld [vmem:[#allocation4 + $0x7a0] sm:$0xff] }
 0x3e6   :  { %2626 = vmatpush.msra.mxu3 %v1017_v9  ;;  %2606 = vmatpush.msra.mxu2 %v889_v13  ;;  %v1330_v9 = vld [vmem:[#allocation4 + $0x1330] sm:$0xff]  ;;  %v1194_v50 = vld [vmem:[#allocation4 + $0xde0] sm:$0xff] }
 0x3e7   :  { %2666 = vmatpush.msra.mxu1 %v1273_v44  ;;  %2646 = vmatpush.msra.mxu0 %v1145_v52  ;;  %v1314_v44 = vld [vmem:[#allocation4 + $0x1290] sm:$0xff]  ;;  %v1002_v52 = vld [vmem:[#allocation4 + $0x660] sm:$0xff] }
 0x3e8   :  { %2627 = vmatpush.msra.mxu3 %v1009_v43  ;;  %2607 = vmatpush.msra.mxu2 %v881_v16  ;;  %v930_v43 = vld [vmem:[#allocation4 + $0x390] sm:$0xff] }
 0x3e9   :  { %2667 = vmatpush.msra.mxu1 %v1265_v24  ;;  %2647 = vmatpush.msra.mxu0 %v1137_v58  ;;  %v1026_v16 = vld [vmem:[#allocation4 + $0x750] sm:$0xff]  ;;  %v1306_v24 = vld [vmem:[#allocation4 + $0x1240] sm:$0xff] }
 0x3ea   :  { %2628 = vmatpush.msra.mxu3 %v1001_v14  ;;  %2608 = vmatpush.msra.mxu2 %v873_v45  ;;  %v1218_v14 = vld [vmem:[#allocation4 + $0xed0] sm:$0xff]  ;;  %v890_v58 = vld [vmem:[#allocation4 + $0x200] sm:$0xff] }
 0x3eb   :  { %2668 = vmatpush.msra.mxu1 %v1257_v46  ;;  %2648 = vmatpush.msra.mxu0 %v1129_v62  ;;  %v914_v45 = vld [vmem:[#allocation4 + $0x2f0] sm:$0xff] }
 0x3ec   :  { %2629 = vmatpush.msra.mxu3 %v993_v18  ;;  %2609 = vmatpush.msra.mxu2 %v865_v48  ;;  %v1322_v18 = vld [vmem:[#allocation4 + $0x12e0] sm:$0xff]  ;;  %v1298_v46 = vld [vmem:[#allocation4 + $0x11f0] sm:$0xff] }
 0x3ed   :  { %2669 = vmatpush.msra.mxu1 %v1249_v54  ;;  %2649 = vmatpush.msra.mxu0 %v1121_v61  ;;  %v906_v48 = vld [vmem:[#allocation4 + $0x2a0] sm:$0xff]  ;;  %v1186_v54 = vld [vmem:[#allocation4 + $0xd90] sm:$0xff] }
 0x3ee   :  { %2630 = vmatpush.msra.mxu3 %v985_v19  ;;  %2610 = vmatpush.msra.mxu2 %v857_v51  ;;  %v922_v19 = vld [vmem:[#allocation4 + $0x340] sm:$0xff]  ;;  %v898_v51 = vld [vmem:[#allocation4 + $0x250] sm:$0xff] }
 0x3ef   :  { %2670 = vmatpush.msra.mxu1 %v1241_v59  ;;  %2650 = vmatpush.msra.mxu0 %v1113_v1  ;;  %v994_v59 = vld [vmem:[#allocation4 + $0x610] sm:$0xff]  ;;  %v986_v61 = vld [vmem:[#allocation4 + $0x5c0] sm:$0xff] }
 0x3f0   :  { %2631 = vmatpush.msra.mxu3 %v977_v47  ;;  %2611 = vmatpush.msra.mxu2 %v849_v55  ;;  %v1018_v47 = vld [vmem:[#allocation4 + $0x700] sm:$0xff]  ;;  %v1282_v62 = vld [vmem:[#allocation4 + $0x1150] sm:$0xff] }
 0x3f1   :  { %2671 = vmatpush.msra.mxu1 %v1233_v60  ;;  %2651 = vmatpush.msra.mxu0 %v1105_v2  ;;  %v1290_v55 = vld [vmem:[#allocation4 + $0x11a0] sm:$0xff]  ;;  %v882_v60 = vld [vmem:[#allocation4 + $0x1b0] sm:$0xff] }
 0x3f2   :  { %2632 = vmatpush.msra.mxu3 %v969_v49  ;;  %2612 = vmatpush.msra.mxu2 %v841_v4  ;;  %v1010_v49 = vld [vmem:[#allocation4 + $0x6b0] sm:$0xff]  ;;  %v1178_v4 = vld [vmem:[#allocation4 + $0xd40] sm:$0xff] }
 0x3f3   :  { %2672 = vmatpush.msra.mxu1 %v1225_v0  ;;  %2652 = vmatpush.msra.mxu0 %v1097_v40  ;;  %v1170_v0 = vld [vmem:[#allocation4 + $0xcf0] sm:$0xff]  ;;  %v1274_v1 = vld [vmem:[#allocation4 + $0x1100] sm:$0xff] }
 0x3f4   :  { %v874_v2 = vld [vmem:[#allocation4 + $0x160] sm:$0xff]  ;;  %v978_v40 = vld [vmem:[#allocation4 + $0x570] sm:$0xff] }
 0x42e   :  { %v2402_v3 = vpop.f32.mrf.mxu0  ;;  %v2422_v5 = vpop.f32.mrf.mxu1 }
 0x42f   :  { %v2423_v35 = vadd.f32 %v2422_v5, %v2402_v3  ;;  %v1162_v3 = vld [vmem:[#allocation4 + $0xca0] sm:$0xff]  ;;  %v1266_v5 = vld [vmem:[#allocation4 + $0x10b0] sm:$0xff] }
 0x431   :  { %vm2506_vm8 = vcmp.ge.f32.partialorder %v2423_v35, 0.0  ;;  %v2510_v6 = vmul.f32 0.01, %v2423_v35 }
 0x433   :  { %v3752_v53 = vsel %vm2506_vm8, %v2423_v35, %v2510_v6  ;;  %v2362_v56 = vpop.f32.mrf.mxu2  ;;  %v2382_v8 = vpop.f32.mrf.mxu3  ;;  %v866_v35 = vld [vmem:[#allocation4 + $0x110] sm:$0xff]  ;;  %v970_v6 = vld [vmem:[#allocation4 + $0x520] sm:$0xff] }
 0x434   :  { %v2383_v10 = vadd.f32 %v2382_v8, %v2362_v56  ;;  %2553 = vmatmul.f32.vlgmr.msrb.gmra.mxu3 %v3752_v53  ;;  %v1258_v56 = vld [vmem:[#allocation4 + $0x1060] sm:$0xff]  ;;  %v1091_v8 = vld [vmem:[#allocation4 + $0x9d8] sm:$0xff] }
 0x435   :  { %2697 = vmatpush.msrb.mxu3 %v1090_v7  ;;  %v1154_v7 = vld [vmem:[#allocation4 + $0xc50] sm:$0xff] }
 0x436   :  { %vm2505_vm9 = vcmp.ge.f32.partialorder %v2383_v10, 0.0  ;;  %v2509_v12 = vmul.f32 0.01, %v2383_v10  ;;  %v2482_v15 = vpop.f32.mrf.mxu0  ;;  %v2502_v17 = vpop.f32.mrf.mxu1 }
 0x437   :  { %v2503_v21 = vadd.f32 %v2502_v17, %v2482_v15  ;;  %2698 = vmatpush.msrb.mxu3 %v1082_v11  ;;  %v1146_v11 = vld [vmem:[#allocation4 + $0xc00] sm:$0xff]  ;;  %v1083_v15 = vld [vmem:[#allocation4 + $0x988] sm:$0xff]  ;;  %v850_v17 = vld [vmem:[#allocation4 + $0x70] sm:$0xff] }
 0x438   :  { %v3755_v25 = vsel %vm2505_vm9, %v2383_v10, %v2509_v12  ;;  %v858_v10 = vld [vmem:[#allocation4 + $0xc0] sm:$0xff]  ;;  %v1250_v12 = vld [vmem:[#allocation4 + $0x1010] sm:$0xff] }
 0x439   :  { %vm2508_vm10 = vcmp.ge.f32.partialorder %v2503_v21, 0.0  ;;  %v2512_v27 = vmul.f32 0.01, %v2503_v21  ;;  %2699 = vmatpush.msrb.mxu3 %v1074_v20  ;;  %2533 = vmatmul.f32.vlgmr.msrb.gmra.mxu2 %v3755_v25  ;;  %v1138_v20 = vld [vmem:[#allocation4 + $0xbb0] sm:$0xff] }
 0x43a   :  { %2677 = vmatpush.msrb.mxu2 %v962_v22  ;;  %v1075_v22 = vld [vmem:[#allocation4 + $0x938] sm:$0xff] }
 0x43b   :  { %v3758_v29 = vsel %vm2508_vm10, %v2503_v21, %v2512_v27  ;;  %2700 = vmatpush.msrb.mxu3 %v1066_v26  ;;  %v2442_v30 = vpop.f32.mrf.mxu2  ;;  %v2462_v31 = vpop.f32.mrf.mxu3  ;;  %v1242_v21 = vld [vmem:[#allocation4 + $0xfc0] sm:$0xff] }
 0x43c   :  { %v2463_v33 = vadd.f32 %v2462_v31, %v2442_v30  ;;  %2593 = vmatmul.f32.vlgmr.msrb.gmra.mxu1 %v3758_v29  ;;  %2633 = vmatmul.f32.vlgmr.msra.gmra.mxu3 %v3752_v53  ;;  %v842_v26 = vld [vmem:[#allocation4 + $0x20] sm:$0xff]  ;;  %v963_v30 = vld [vmem:[#allocation4 + $0x4d8] sm:$0xff]  ;;  %v1122_v31 = vld [vmem:[#allocation4 + $0xb10] sm:$0xff] }
 0x43d   :  { %2678 = vmatpush.msrb.mxu2 %v954_v28  ;;  %2701 = vmatpush.msrb.mxu3 %v1058_v57  ;;  %v1130_v27 = vld [vmem:[#allocation4 + $0xb60] sm:$0xff]  ;;  %v1234_v28 = vld [vmem:[#allocation4 + $0xf70] sm:$0xff]  ;;  %v1067_v57 = vld [vmem:[#allocation4 + $0x8e8] sm:$0xff] }
 0x43e   :  { %vm2507_vm11 = vcmp.ge.f32.partialorder %v2463_v33, 0.0  ;;  %v2511_v38 = vmul.f32 0.01, %v2463_v33  ;;  %2737 = vmatpush.msrb.mxu1 %v1346_v63  ;;  %v1226_v63 = vld [vmem:[#allocation4 + $0xf20] sm:$0xff] }
 0x43f   :  { %2679 = vmatpush.msrb.mxu2 %v946_v34  ;;  %2702 = vmatpush.msrb.mxu3 %v1050_v36  ;;  %v955_v34 = vld [vmem:[#allocation4 + $0x488] sm:$0xff]  ;;  %v1347_v36 = vld [vmem:[#allocation4 + $0x13d8] sm:$0xff] }
 0x440   :  { %v3762_v13 = vsel %vm2507_vm11, %v2463_v33, %v2511_v38  ;;  %2738 = vmatpush.msrb.mxu1 %v1338_v37  ;;  %v1059_v33 = vld [vmem:[#allocation4 + $0x898] sm:$0xff]  ;;  %v1114_v37 = vld [vmem:[#allocation4 + $0xac0] sm:$0xff]  ;;  %vm3323_vm11 = vcmask 1041408  }
 0x441   :  { %2680 = vmatpush.msrb.mxu2 %v938_v39  ;;  %2703 = vmatpush.msrb.mxu3 %v1042_v32  ;;  %v947_v38 = vld [vmem:[#allocation4 + $0x438] sm:$0xff]  ;;  %v1051_v39 = vld [vmem:[#allocation4 + $0x848] sm:$0xff] }
 0x442   :  { %2739 = vmatpush.msrb.mxu1 %v1330_v9  ;;  %2573 = vmatmul.f32.vlgmr.msrb.gmra.mxu0 %v3762_v13  ;;  %v1339_v32 = vld [vmem:[#allocation4 + $0x1388] sm:$0xff]  ;;  %v1106_v9 = vld [vmem:[#allocation4 + $0xa70] sm:$0xff] }
 0x443   :  { %2613 = vmatmul.f32.vlgmr.msra.gmra.mxu2 %v3755_v25  ;;  %2704 = vmatpush.msrb.mxu3 %v1034_v42  ;;  %v939_v42 = vld [vmem:[#allocation4 + $0x3e8] sm:$0xff] }
 0x444   :  { %2681 = vmatpush.msrb.mxu2 %v930_v43  ;;  %2717 = vmatpush.msrb.mxu0 %v1218_v14  ;;  %v1043_v43 = vld [vmem:[#allocation4 + $0x7f8] sm:$0xff] }
 0x445   :  { %2740 = vmatpush.msrb.mxu1 %v1322_v18  ;;  %2705 = vmatpush.msrb.mxu3 %v1026_v16  ;;  %v1331_v14 = vld [vmem:[#allocation4 + $0x1338] sm:$0xff]  ;;  %v1098_v18 = vld [vmem:[#allocation4 + $0xa20] sm:$0xff] }
 0x446   :  { %2673 = vmatmul.f32.vlgmr.msra.gmra.mxu1 %v3758_v29  ;;  %2682 = vmatpush.msrb.mxu2 %v922_v19  ;;  %v931_v16 = vld [vmem:[#allocation4 + $0x398] sm:$0xff]  ;;  %v1035_v19 = vld [vmem:[#allocation4 + $0x7a8] sm:$0xff] }
 0x447   :  { %2718 = vmatpush.msrb.mxu0 %v1210_v41  ;;  %2741 = vmatpush.msrb.mxu1 %v1314_v44  ;;  %v1219_v41 = vld [vmem:[#allocation4 + $0xed8] sm:$0xff]  ;;  %v1323_v44 = vld [vmem:[#allocation4 + $0x12e8] sm:$0xff] }
 0x448   :  { %2683 = vmatpush.msrb.mxu2 %v914_v45  ;;  %2706 = vmatpush.msrb.mxu3 %v1018_v47  ;;  %v923_v45 = vld [vmem:[#allocation4 + $0x348] sm:$0xff]  ;;  %v1027_v47 = vld [vmem:[#allocation4 + $0x758] sm:$0xff] }
 0x449   :  { %2719 = vmatpush.msrb.mxu0 %v1202_v23  ;;  %2742 = vmatpush.msrb.mxu1 %v1306_v24  ;;  %v1211_v23 = vld [vmem:[#allocation4 + $0xe88] sm:$0xff]  ;;  %v1315_v24 = vld [vmem:[#allocation4 + $0x1298] sm:$0xff] }
 0x44a   :  { %2684 = vmatpush.msrb.mxu2 %v906_v48  ;;  %2707 = vmatpush.msrb.mxu3 %v1010_v49  ;;  %v915_v48 = vld [vmem:[#allocation4 + $0x2f8] sm:$0xff]  ;;  %v1019_v49 = vld [vmem:[#allocation4 + $0x708] sm:$0xff] }
 0x44b   :  { %2720 = vmatpush.msrb.mxu0 %v1194_v50  ;;  %2743 = vmatpush.msrb.mxu1 %v1298_v46  ;;  %v1203_v50 = vld [vmem:[#allocation4 + $0xe38] sm:$0xff]  ;;  %v1307_v46 = vld [vmem:[#allocation4 + $0x1248] sm:$0xff] }
 0x44c   :  { %2653 = vmatmul.f32.vlgmr.msra.gmra.mxu0 %v3762_v13  ;;  %2685 = vmatpush.msrb.mxu2 %v898_v51  ;;  %v907_v51 = vld [vmem:[#allocation4 + $0x2a8] sm:$0xff] }
 0x44d   :  { %2708 = vmatpush.msrb.mxu3 %v1002_v52  ;;  %2721 = vmatpush.msrb.mxu0 %v1186_v54  ;;  %v1011_v52 = vld [vmem:[#allocation4 + $0x6b8] sm:$0xff]  ;;  %v1195_v54 = vld [vmem:[#allocation4 + $0xde8] sm:$0xff] }
 0x44e   :  { %2744 = vmatpush.msrb.mxu1 %v1290_v55  ;;  %2686 = vmatpush.msrb.mxu2 %v890_v58  ;;  %v1299_v55 = vld [vmem:[#allocation4 + $0x11f8] sm:$0xff] }
 0x44f   :  { %2709 = vmatpush.msrb.mxu3 %v994_v59  ;;  %2722 = vmatpush.msrb.mxu0 %v1178_v4  ;;  %v899_v58 = vld [vmem:[#allocation4 + $0x258] sm:$0xff]  ;;  %v1003_v59 = vld [vmem:[#allocation4 + $0x668] sm:$0xff] }
 0x450   :  { %2745 = vmatpush.msrb.mxu1 %v1282_v62  ;;  %2687 = vmatpush.msrb.mxu2 %v882_v60  ;;  %v1187_v4 = vld [vmem:[#allocation4 + $0xd98] sm:$0xff]  ;;  %v1291_v62 = vld [vmem:[#allocation4 + $0x11a8] sm:$0xff] }
 0x451   :  { %2710 = vmatpush.msrb.mxu3 %v986_v61  ;;  %2723 = vmatpush.msrb.mxu0 %v1170_v0  ;;  %v891_v60 = vld [vmem:[#allocation4 + $0x208] sm:$0xff]  ;;  %v995_v61 = vld [vmem:[#allocation4 + $0x618] sm:$0xff] }
 0x452   :  { %2746 = vmatpush.msrb.mxu1 %v1274_v1  ;;  %2688 = vmatpush.msrb.mxu2 %v874_v2  ;;  %v1179_v0 = vld [vmem:[#allocation4 + $0xd48] sm:$0xff]  ;;  %v1283_v1 = vld [vmem:[#allocation4 + $0x1158] sm:$0xff] }
 0x453   :  { %2711 = vmatpush.msrb.mxu3 %v978_v40  ;;  %2724 = vmatpush.msrb.mxu0 %v1162_v3  ;;  %v883_v2 = vld [vmem:[#allocation4 + $0x1b8] sm:$0xff]  ;;  %v987_v40 = vld [vmem:[#allocation4 + $0x5c8] sm:$0xff] }
 0x454   :  { %2747 = vmatpush.msrb.mxu1 %v1266_v5  ;;  %2689 = vmatpush.msrb.mxu2 %v866_v35  ;;  %v1171_v3 = vld [vmem:[#allocation4 + $0xcf8] sm:$0xff]  ;;  %v1275_v5 = vld [vmem:[#allocation4 + $0x1108] sm:$0xff] }
 0x455   :  { %2712 = vmatpush.msrb.mxu3 %v970_v6  ;;  %2725 = vmatpush.msrb.mxu0 %v1154_v7  ;;  %v875_v35 = vld [vmem:[#allocation4 + $0x168] sm:$0xff]  ;;  %v979_v6 = vld [vmem:[#allocation4 + $0x578] sm:$0xff] }
 0x456   :  { %2748 = vmatpush.msrb.mxu1 %v1258_v56  ;;  %2713 = vmatmul.f32.vlgmr.msrb.gmra.mxu3 %v3752_v53  ;;  %v1163_v7 = vld [vmem:[#allocation4 + $0xca8] sm:$0xff]  ;;  %v1267_v56 = vld [vmem:[#allocation4 + $0x10b8] sm:$0xff] }
 0x457   :  { %2777 = vmatpush.msra.mxu3 %v1091_v8  ;;  %2690 = vmatpush.msrb.mxu2 %v858_v10  ;;  %v867_v8 = vld [vmem:[#allocation4 + $0x118] sm:$0xff]  ;;  %v971_v10 = vld [vmem:[#allocation4 + $0x528] sm:$0xff] }
 0x458   :  { %2726 = vmatpush.msrb.mxu0 %v1146_v11  ;;  %2749 = vmatpush.msrb.mxu1 %v1250_v12  ;;  %v1155_v11 = vld [vmem:[#allocation4 + $0xc58] sm:$0xff]  ;;  %v1259_v12 = vld [vmem:[#allocation4 + $0x1068] sm:$0xff] }
 0x459   :  { %2778 = vmatpush.msra.mxu3 %v1083_v15  ;;  %2691 = vmatpush.msrb.mxu2 %v850_v17  ;;  %v1092_v15 = vld [vmem:[#allocation4 + $0x9e0] sm:$0xff]  ;;  %v859_v17 = vld [vmem:[#allocation4 + $0xc8] sm:$0xff] }
 0x45a   :  { %2727 = vmatpush.msrb.mxu0 %v1138_v20  ;;  %2750 = vmatpush.msrb.mxu1 %v1242_v21  ;;  %v1147_v20 = vld [vmem:[#allocation4 + $0xc08] sm:$0xff]  ;;  %v1251_v21 = vld [vmem:[#allocation4 + $0x1018] sm:$0xff] }
 0x45b   :  { %2779 = vmatpush.msra.mxu3 %v1075_v22  ;;  %2692 = vmatpush.msrb.mxu2 %v842_v26  ;;  %v1084_v22 = vld [vmem:[#allocation4 + $0x990] sm:$0xff]  ;;  %v851_v26 = vld [vmem:[#allocation4 + $0x78] sm:$0xff] }
 0x45c   :  { %2728 = vmatpush.msrb.mxu0 %v1130_v27  ;;  %2751 = vmatpush.msrb.mxu1 %v1234_v28  ;;  %v1139_v27 = vld [vmem:[#allocation4 + $0xbb8] sm:$0xff]  ;;  %v1243_v28 = vld [vmem:[#allocation4 + $0xfc8] sm:$0xff] }
 0x45d   :  { %2693 = vmatmul.f32.vlgmr.msrb.gmra.mxu2 %v3755_v25  ;;  %2780 = vmatpush.msra.mxu3 %v1067_v57  ;;  %v1076_v57 = vld [vmem:[#allocation4 + $0x940] sm:$0xff] }
 0x45e   :  { %2757 = vmatpush.msra.mxu2 %v963_v30  ;;  %2729 = vmatpush.msrb.mxu0 %v1122_v31  ;;  %v843_v30 = vld [vmem:[#allocation4 + $0x28] sm:$0xff] }
 0x45f   :  { %2752 = vmatpush.msrb.mxu1 %v1226_v63  ;;  %2781 = vmatpush.msra.mxu3 %v1059_v33  ;;  %v1131_v31 = vld [vmem:[#allocation4 + $0xb68] sm:$0xff]  ;;  %v1235_v63 = vld [vmem:[#allocation4 + $0xf78] sm:$0xff]  ;;  %v1068_v33 = vld [vmem:[#allocation4 + $0x8f0] sm:$0xff] }
 0x460   :  { %2753 = vmatmul.f32.vlgmr.msrb.gmra.mxu1 %v3758_v29  ;;  %2758 = vmatpush.msra.mxu2 %v955_v34  ;;  %v964_v34 = vld [vmem:[#allocation4 + $0x4e0] sm:$0xff] }
 0x461   :  { %2817 = vmatpush.msra.mxu1 %v1347_v36  ;;  %2730 = vmatpush.msrb.mxu0 %v1114_v37  ;;  %v1123_v36 = vld [vmem:[#allocation4 + $0xb18] sm:$0xff]  ;;  %v1227_v37 = vld [vmem:[#allocation4 + $0xf28] sm:$0xff] }
 0x462   :  { %2759 = vmatpush.msra.mxu2 %v947_v38  ;;  %2782 = vmatpush.msra.mxu3 %v1051_v39  ;;  %v1060_v38 = vld [vmem:[#allocation4 + $0x8a0] sm:$0xff]  ;;  %v956_v39 = vld [vmem:[#allocation4 + $0x490] sm:$0xff] }
 0x463   :  { %2818 = vmatpush.msra.mxu1 %v1339_v32  ;;  %2731 = vmatpush.msrb.mxu0 %v1106_v9  ;;  %v1348_v32 = vld [vmem:[#allocation4 + $0x13e0] sm:$0xff]  ;;  %v1115_v9 = vld [vmem:[#allocation4 + $0xac8] sm:$0xff] }
 0x464   :  { %2760 = vmatpush.msra.mxu2 %v939_v42  ;;  %2783 = vmatpush.msra.mxu3 %v1043_v43  ;;  %v948_v42 = vld [vmem:[#allocation4 + $0x440] sm:$0xff]  ;;  %v1052_v43 = vld [vmem:[#allocation4 + $0x850] sm:$0xff] }
 0x465   :  { %2819 = vmatpush.msra.mxu1 %v1331_v14  ;;  %2732 = vmatpush.msrb.mxu0 %v1098_v18  ;;  %v1340_v14 = vld [vmem:[#allocation4 + $0x1390] sm:$0xff]  ;;  %v1107_v18 = vld [vmem:[#allocation4 + $0xa78] sm:$0xff] }
 0x466   :  { %2733 = vmatmul.f32.vlgmr.msrb.gmra.mxu0 %v3762_v13  ;;  %2761 = vmatpush.msra.mxu2 %v931_v16  ;;  %v940_v16 = vld [vmem:[#allocation4 + $0x3f0] sm:$0xff] }
 0x467   :  { %2784 = vmatpush.msra.mxu3 %v1035_v19  ;;  %2797 = vmatpush.msra.mxu0 %v1219_v41  ;;  %v1044_v19 = vld [vmem:[#allocation4 + $0x800] sm:$0xff] }
 0x468   :  { %2820 = vmatpush.msra.mxu1 %v1323_v44  ;;  %2762 = vmatpush.msra.mxu2 %v923_v45  ;;  %v1332_v41 = vld [vmem:[#allocation4 + $0x1340] sm:$0xff]  ;;  %v1099_v44 = vld [vmem:[#allocation4 + $0xa28] sm:$0xff] }
 0x469   :  { %2785 = vmatpush.msra.mxu3 %v1027_v47  ;;  %2798 = vmatpush.msra.mxu0 %v1211_v23  ;;  %v932_v45 = vld [vmem:[#allocation4 + $0x3a0] sm:$0xff]  ;;  %v1036_v47 = vld [vmem:[#allocation4 + $0x7b0] sm:$0xff] }
 0x46a   :  { %2821 = vmatpush.msra.mxu1 %v1315_v24  ;;  %2763 = vmatpush.msra.mxu2 %v915_v48  ;;  %v1220_v23 = vld [vmem:[#allocation4 + $0xee0] sm:$0xff]  ;;  %v1324_v24 = vld [vmem:[#allocation4 + $0x12f0] sm:$0xff] }
 0x46b   :  { %2786 = vmatpush.msra.mxu3 %v1019_v49  ;;  %2799 = vmatpush.msra.mxu0 %v1203_v50  ;;  %v924_v48 = vld [vmem:[#allocation4 + $0x350] sm:$0xff]  ;;  %v1028_v49 = vld [vmem:[#allocation4 + $0x760] sm:$0xff] }
 0x46c   :  { %2822 = vmatpush.msra.mxu1 %v1307_v46  ;;  %2764 = vmatpush.msra.mxu2 %v907_v51  ;;  %v1212_v50 = vld [vmem:[#allocation4 + $0xe90] sm:$0xff]  ;;  %v1316_v46 = vld [vmem:[#allocation4 + $0x12a0] sm:$0xff] }
 0x46d   :  { %2787 = vmatpush.msra.mxu3 %v1011_v52  ;;  %2800 = vmatpush.msra.mxu0 %v1195_v54  ;;  %v916_v51 = vld [vmem:[#allocation4 + $0x300] sm:$0xff]  ;;  %v1020_v52 = vld [vmem:[#allocation4 + $0x710] sm:$0xff] }
 0x46e   :  { %2823 = vmatpush.msra.mxu1 %v1299_v55  ;;  %2765 = vmatpush.msra.mxu2 %v899_v58  ;;  %v1204_v54 = vld [vmem:[#allocation4 + $0xe40] sm:$0xff]  ;;  %v1308_v55 = vld [vmem:[#allocation4 + $0x1250] sm:$0xff] }
 0x46f   :  { %2788 = vmatpush.msra.mxu3 %v1003_v59  ;;  %2801 = vmatpush.msra.mxu0 %v1187_v4  ;;  %v908_v58 = vld [vmem:[#allocation4 + $0x2b0] sm:$0xff]  ;;  %v1012_v59 = vld [vmem:[#allocation4 + $0x6c0] sm:$0xff] }
 0x470   :  { %2824 = vmatpush.msra.mxu1 %v1291_v62  ;;  %2766 = vmatpush.msra.mxu2 %v891_v60  ;;  %v1196_v4 = vld [vmem:[#allocation4 + $0xdf0] sm:$0xff]  ;;  %v1300_v62 = vld [vmem:[#allocation4 + $0x1200] sm:$0xff] }
 0x471   :  { %2789 = vmatpush.msra.mxu3 %v995_v61  ;;  %2802 = vmatpush.msra.mxu0 %v1179_v0  ;;  %v900_v60 = vld [vmem:[#allocation4 + $0x260] sm:$0xff]  ;;  %v1004_v61 = vld [vmem:[#allocation4 + $0x670] sm:$0xff] }
 0x472   :  { %2825 = vmatpush.msra.mxu1 %v1283_v1  ;;  %2767 = vmatpush.msra.mxu2 %v883_v2  ;;  %v1188_v0 = vld [vmem:[#allocation4 + $0xda0] sm:$0xff]  ;;  %v1292_v1 = vld [vmem:[#allocation4 + $0x11b0] sm:$0xff] }
 0x473   :  { %2790 = vmatpush.msra.mxu3 %v987_v40  ;;  %2803 = vmatpush.msra.mxu0 %v1171_v3  ;;  %v892_v2 = vld [vmem:[#allocation4 + $0x210] sm:$0xff]  ;;  %v996_v40 = vld [vmem:[#allocation4 + $0x620] sm:$0xff] }
 0x474   :  { %2826 = vmatpush.msra.mxu1 %v1275_v5  ;;  %2768 = vmatpush.msra.mxu2 %v875_v35  ;;  %v1180_v3 = vld [vmem:[#allocation4 + $0xd50] sm:$0xff]  ;;  %v1284_v5 = vld [vmem:[#allocation4 + $0x1160] sm:$0xff] }
 0x475   :  { %2791 = vmatpush.msra.mxu3 %v979_v6  ;;  %2804 = vmatpush.msra.mxu0 %v1163_v7  ;;  %v884_v35 = vld [vmem:[#allocation4 + $0x1c0] sm:$0xff]  ;;  %v988_v6 = vld [vmem:[#allocation4 + $0x5d0] sm:$0xff] }
 0x476   :  { %2827 = vmatpush.msra.mxu1 %v1267_v56  ;;  %2769 = vmatpush.msra.mxu2 %v867_v8  ;;  %v1172_v7 = vld [vmem:[#allocation4 + $0xd00] sm:$0xff]  ;;  %v1276_v56 = vld [vmem:[#allocation4 + $0x1110] sm:$0xff] }
 0x477   :  { %2792 = vmatpush.msra.mxu3 %v971_v10  ;;  %2805 = vmatpush.msra.mxu0 %v1155_v11  ;;  %v876_v8 = vld [vmem:[#allocation4 + $0x170] sm:$0xff]  ;;  %v980_v10 = vld [vmem:[#allocation4 + $0x580] sm:$0xff] }
 0x478   :  { %2828 = vmatpush.msra.mxu1 %v1259_v12  ;;  %2793 = vmatmul.f32.vlgmr.msra.gmra.mxu3 %v3752_v53  ;;  %v1164_v11 = vld [vmem:[#allocation4 + $0xcb0] sm:$0xff]  ;;  %v1268_v12 = vld [vmem:[#allocation4 + $0x10c0] sm:$0xff] }
 0x479   :  { %2857 = vmatpush.msrb.mxu3 %v1092_v15  ;;  %2770 = vmatpush.msra.mxu2 %v859_v17  ;;  %v868_v15 = vld [vmem:[#allocation4 + $0x120] sm:$0xff]  ;;  %v972_v17 = vld [vmem:[#allocation4 + $0x530] sm:$0xff] }
 0x47a   :  { %2806 = vmatpush.msra.mxu0 %v1147_v20  ;;  %2829 = vmatpush.msra.mxu1 %v1251_v21  ;;  %v1156_v20 = vld [vmem:[#allocation4 + $0xc60] sm:$0xff]  ;;  %v1260_v21 = vld [vmem:[#allocation4 + $0x1070] sm:$0xff] }
 0x47b   :  { %2858 = vmatpush.msrb.mxu3 %v1084_v22  ;;  %2771 = vmatpush.msra.mxu2 %v851_v26  ;;  %v1093_v22 = vld [vmem:[#allocation4 + $0x9e8] sm:$0xff]  ;;  %v860_v26 = vld [vmem:[#allocation4 + $0xd0] sm:$0xff] }
 0x47c   :  { %2807 = vmatpush.msra.mxu0 %v1139_v27  ;;  %2830 = vmatpush.msra.mxu1 %v1243_v28  ;;  %v1148_v27 = vld [vmem:[#allocation4 + $0xc10] sm:$0xff]  ;;  %v1252_v28 = vld [vmem:[#allocation4 + $0x1020] sm:$0xff] }
 0x47d   :  { %2859 = vmatpush.msrb.mxu3 %v1076_v57  ;;  %2772 = vmatpush.msra.mxu2 %v843_v30  ;;  %v1085_v57 = vld [vmem:[#allocation4 + $0x998] sm:$0xff]  ;;  %v852_v30 = vld [vmem:[#allocation4 + $0x80] sm:$0xff] }
 0x47e   :  { %2808 = vmatpush.msra.mxu0 %v1131_v31  ;;  %2831 = vmatpush.msra.mxu1 %v1235_v63  ;;  %v1140_v31 = vld [vmem:[#allocation4 + $0xbc0] sm:$0xff]  ;;  %v1244_v63 = vld [vmem:[#allocation4 + $0xfd0] sm:$0xff] }
 0x47f   :  { %2773 = vmatmul.f32.vlgmr.msra.gmra.mxu2 %v3755_v25  ;;  %2860 = vmatpush.msrb.mxu3 %v1068_v33  ;;  %v1077_v33 = vld [vmem:[#allocation4 + $0x948] sm:$0xff] }
 0x480   :  { %2837 = vmatpush.msrb.mxu2 %v964_v34  ;;  %2809 = vmatpush.msra.mxu0 %v1123_v36  ;;  %v844_v34 = vld [vmem:[#allocation4 + $0x30] sm:$0xff] }
 0x481   :  { %2832 = vmatpush.msra.mxu1 %v1227_v37  ;;  %2861 = vmatpush.msrb.mxu3 %v1060_v38  ;;  %v1132_v36 = vld [vmem:[#allocation4 + $0xb70] sm:$0xff]  ;;  %v1236_v37 = vld [vmem:[#allocation4 + $0xf80] sm:$0xff]  ;;  %v1069_v38 = vld [vmem:[#allocation4 + $0x8f8] sm:$0xff] }
 0x482   :  { %2833 = vmatmul.f32.vlgmr.msra.gmra.mxu1 %v3758_v29  ;;  %2838 = vmatpush.msrb.mxu2 %v956_v39  ;;  %v965_v39 = vld [vmem:[#allocation4 + $0x4e8] sm:$0xff] }
 0x483   :  { %2897 = vmatpush.msrb.mxu1 %v1348_v32  ;;  %2810 = vmatpush.msra.mxu0 %v1115_v9  ;;  %v1124_v32 = vld [vmem:[#allocation4 + $0xb20] sm:$0xff]  ;;  %v1228_v9 = vld [vmem:[#allocation4 + $0xf30] sm:$0xff] }
 0x484   :  { %2839 = vmatpush.msrb.mxu2 %v948_v42  ;;  %2862 = vmatpush.msrb.mxu3 %v1052_v43  ;;  %v1061_v42 = vld [vmem:[#allocation4 + $0x8a8] sm:$0xff]  ;;  %v957_v43 = vld [vmem:[#allocation4 + $0x498] sm:$0xff] }
 0x485   :  { %2898 = vmatpush.msrb.mxu1 %v1340_v14  ;;  %2811 = vmatpush.msra.mxu0 %v1107_v18  ;;  %v1349_v14 = vld [vmem:[#allocation4 + $0x13e8] sm:$0xff]  ;;  %v1116_v18 = vld [vmem:[#allocation4 + $0xad0] sm:$0xff] }
 0x486   :  { %2840 = vmatpush.msrb.mxu2 %v940_v16  ;;  %2863 = vmatpush.msrb.mxu3 %v1044_v19  ;;  %v949_v16 = vld [vmem:[#allocation4 + $0x448] sm:$0xff]  ;;  %v1053_v19 = vld [vmem:[#allocation4 + $0x858] sm:$0xff] }
 0x487   :  { %2899 = vmatpush.msrb.mxu1 %v1332_v41  ;;  %2812 = vmatpush.msra.mxu0 %v1099_v44  ;;  %v1341_v41 = vld [vmem:[#allocation4 + $0x1398] sm:$0xff]  ;;  %v1108_v44 = vld [vmem:[#allocation4 + $0xa80] sm:$0xff] }
 0x488   :  { %2813 = vmatmul.f32.vlgmr.msra.gmra.mxu0 %v3762_v13  ;;  %2841 = vmatpush.msrb.mxu2 %v932_v45  ;;  %v941_v45 = vld [vmem:[#allocation4 + $0x3f8] sm:$0xff] }
 0x489   :  { %2864 = vmatpush.msrb.mxu3 %v1036_v47  ;;  %2877 = vmatpush.msrb.mxu0 %v1220_v23  ;;  %v1045_v47 = vld [vmem:[#allocation4 + $0x808] sm:$0xff] }
 0x48a   :  { %2900 = vmatpush.msrb.mxu1 %v1324_v24  ;;  %2842 = vmatpush.msrb.mxu2 %v924_v48  ;;  %v1333_v23 = vld [vmem:[#allocation4 + $0x1348] sm:$0xff]  ;;  %v1100_v24 = vld [vmem:[#allocation4 + $0xa30] sm:$0xff] }
 0x48b   :  { %2865 = vmatpush.msrb.mxu3 %v1028_v49  ;;  %2878 = vmatpush.msrb.mxu0 %v1212_v50  ;;  %v933_v48 = vld [vmem:[#allocation4 + $0x3a8] sm:$0xff]  ;;  %v1037_v49 = vld [vmem:[#allocation4 + $0x7b8] sm:$0xff] }
 0x48c   :  { %2901 = vmatpush.msrb.mxu1 %v1316_v46  ;;  %2843 = vmatpush.msrb.mxu2 %v916_v51  ;;  %v1221_v50 = vld [vmem:[#allocation4 + $0xee8] sm:$0xff]  ;;  %v1325_v46 = vld [vmem:[#allocation4 + $0x12f8] sm:$0xff] }
 0x48d   :  { %2866 = vmatpush.msrb.mxu3 %v1020_v52  ;;  %2879 = vmatpush.msrb.mxu0 %v1204_v54  ;;  %v925_v51 = vld [vmem:[#allocation4 + $0x358] sm:$0xff]  ;;  %v1029_v52 = vld [vmem:[#allocation4 + $0x768] sm:$0xff] }
 0x48e   :  { %2902 = vmatpush.msrb.mxu1 %v1308_v55  ;;  %2844 = vmatpush.msrb.mxu2 %v908_v58  ;;  %v1213_v54 = vld [vmem:[#allocation4 + $0xe98] sm:$0xff]  ;;  %v1317_v55 = vld [vmem:[#allocation4 + $0x12a8] sm:$0xff] }
 0x48f   :  { %2867 = vmatpush.msrb.mxu3 %v1012_v59  ;;  %2880 = vmatpush.msrb.mxu0 %v1196_v4  ;;  %v917_v58 = vld [vmem:[#allocation4 + $0x308] sm:$0xff]  ;;  %v1021_v59 = vld [vmem:[#allocation4 + $0x718] sm:$0xff] }
 0x490   :  { %2903 = vmatpush.msrb.mxu1 %v1300_v62  ;;  %2845 = vmatpush.msrb.mxu2 %v900_v60  ;;  %v1205_v4 = vld [vmem:[#allocation4 + $0xe48] sm:$0xff]  ;;  %v1309_v62 = vld [vmem:[#allocation4 + $0x1258] sm:$0xff] }
 0x491   :  { %2868 = vmatpush.msrb.mxu3 %v1004_v61  ;;  %2881 = vmatpush.msrb.mxu0 %v1188_v0  ;;  %v909_v60 = vld [vmem:[#allocation4 + $0x2b8] sm:$0xff]  ;;  %v1013_v61 = vld [vmem:[#allocation4 + $0x6c8] sm:$0xff] }
 0x492   :  { %2904 = vmatpush.msrb.mxu1 %v1292_v1  ;;  %2846 = vmatpush.msrb.mxu2 %v892_v2  ;;  %v1197_v0 = vld [vmem:[#allocation4 + $0xdf8] sm:$0xff]  ;;  %v1301_v1 = vld [vmem:[#allocation4 + $0x1208] sm:$0xff] }
 0x493   :  { %2869 = vmatpush.msrb.mxu3 %v996_v40  ;;  %2882 = vmatpush.msrb.mxu0 %v1180_v3  ;;  %v901_v2 = vld [vmem:[#allocation4 + $0x268] sm:$0xff]  ;;  %v1005_v40 = vld [vmem:[#allocation4 + $0x678] sm:$0xff] }
 0x494   :  { %2905 = vmatpush.msrb.mxu1 %v1284_v5  ;;  %2847 = vmatpush.msrb.mxu2 %v884_v35  ;;  %v1189_v3 = vld [vmem:[#allocation4 + $0xda8] sm:$0xff]  ;;  %v1293_v5 = vld [vmem:[#allocation4 + $0x11b8] sm:$0xff] }
 0x495   :  { %2870 = vmatpush.msrb.mxu3 %v988_v6  ;;  %2883 = vmatpush.msrb.mxu0 %v1172_v7  ;;  %v893_v35 = vld [vmem:[#allocation4 + $0x218] sm:$0xff]  ;;  %v997_v6 = vld [vmem:[#allocation4 + $0x628] sm:$0xff] }
 0x496   :  { %2906 = vmatpush.msrb.mxu1 %v1276_v56  ;;  %2848 = vmatpush.msrb.mxu2 %v876_v8  ;;  %v1181_v7 = vld [vmem:[#allocation4 + $0xd58] sm:$0xff]  ;;  %v1285_v56 = vld [vmem:[#allocation4 + $0x1168] sm:$0xff] }
 0x497   :  { %2871 = vmatpush.msrb.mxu3 %v980_v10  ;;  %2884 = vmatpush.msrb.mxu0 %v1164_v11  ;;  %v885_v8 = vld [vmem:[#allocation4 + $0x1c8] sm:$0xff]  ;;  %v989_v10 = vld [vmem:[#allocation4 + $0x5d8] sm:$0xff] }
 0x498   :  { %2907 = vmatpush.msrb.mxu1 %v1268_v12  ;;  %2849 = vmatpush.msrb.mxu2 %v868_v15  ;;  %v1173_v11 = vld [vmem:[#allocation4 + $0xd08] sm:$0xff]  ;;  %v1277_v12 = vld [vmem:[#allocation4 + $0x1118] sm:$0xff] }
 0x499   :  { %2872 = vmatpush.msrb.mxu3 %v972_v17  ;;  %2885 = vmatpush.msrb.mxu0 %v1156_v20  ;;  %v877_v15 = vld [vmem:[#allocation4 + $0x178] sm:$0xff]  ;;  %v981_v17 = vld [vmem:[#allocation4 + $0x588] sm:$0xff] }
 0x49a   :  { %2908 = vmatpush.msrb.mxu1 %v1260_v21  ;;  %2873 = vmatmul.f32.vlgmr.msrb.gmra.mxu3 %v3752_v53  ;;  %v1165_v20 = vld [vmem:[#allocation4 + $0xcb8] sm:$0xff]  ;;  %v1269_v21 = vld [vmem:[#allocation4 + $0x10c8] sm:$0xff] }
 0x49b   :  { %2937 = vmatpush.msra.mxu3 %v1093_v22  ;;  %2850 = vmatpush.msrb.mxu2 %v860_v26  ;;  %v869_v22 = vld [vmem:[#allocation4 + $0x128] sm:$0xff]  ;;  %v973_v26 = vld [vmem:[#allocation4 + $0x538] sm:$0xff] }
 0x49c   :  { %2886 = vmatpush.msrb.mxu0 %v1148_v27  ;;  %2909 = vmatpush.msrb.mxu1 %v1252_v28  ;;  %v1157_v27 = vld [vmem:[#allocation4 + $0xc68] sm:$0xff]  ;;  %v1261_v28 = vld [vmem:[#allocation4 + $0x1078] sm:$0xff] }
 0x49d   :  { %2938 = vmatpush.msra.mxu3 %v1085_v57  ;;  %2851 = vmatpush.msrb.mxu2 %v852_v30  ;;  %v1094_v57 = vld [vmem:[#allocation4 + $0x9f0] sm:$0xff]  ;;  %v861_v30 = vld [vmem:[#allocation4 + $0xd8] sm:$0xff] }
 0x49e   :  { %2887 = vmatpush.msrb.mxu0 %v1140_v31  ;;  %2910 = vmatpush.msrb.mxu1 %v1244_v63  ;;  %v1149_v31 = vld [vmem:[#allocation4 + $0xc18] sm:$0xff]  ;;  %v1253_v63 = vld [vmem:[#allocation4 + $0x1028] sm:$0xff] }
 0x49f   :  { %2939 = vmatpush.msra.mxu3 %v1077_v33  ;;  %2852 = vmatpush.msrb.mxu2 %v844_v34  ;;  %v1086_v33 = vld [vmem:[#allocation4 + $0x9a0] sm:$0xff]  ;;  %v853_v34 = vld [vmem:[#allocation4 + $0x88] sm:$0xff] }
 0x4a0   :  { %2888 = vmatpush.msrb.mxu0 %v1132_v36  ;;  %2911 = vmatpush.msrb.mxu1 %v1236_v37  ;;  %v1141_v36 = vld [vmem:[#allocation4 + $0xbc8] sm:$0xff]  ;;  %v1245_v37 = vld [vmem:[#allocation4 + $0xfd8] sm:$0xff] }
 0x4a1   :  { %2853 = vmatmul.f32.vlgmr.msrb.gmra.mxu2 %v3755_v25  ;;  %2940 = vmatpush.msra.mxu3 %v1069_v38  ;;  %v1078_v38 = vld [vmem:[#allocation4 + $0x950] sm:$0xff] }
 0x4a2   :  { %2917 = vmatpush.msra.mxu2 %v965_v39  ;;  %2889 = vmatpush.msrb.mxu0 %v1124_v32  ;;  %v845_v39 = vld [vmem:[#allocation4 + $0x38] sm:$0xff] }
 0x4a3   :  { %2912 = vmatpush.msrb.mxu1 %v1228_v9  ;;  %2941 = vmatpush.msra.mxu3 %v1061_v42  ;;  %v1133_v32 = vld [vmem:[#allocation4 + $0xb78] sm:$0xff]  ;;  %v1237_v9 = vld [vmem:[#allocation4 + $0xf88] sm:$0xff]  ;;  %v1070_v42 = vld [vmem:[#allocation4 + $0x900] sm:$0xff] }
 0x4a4   :  { %2913 = vmatmul.f32.vlgmr.msrb.gmra.mxu1 %v3758_v29  ;;  %2918 = vmatpush.msra.mxu2 %v957_v43  ;;  %v966_v43 = vld [vmem:[#allocation4 + $0x4f0] sm:$0xff] }
 0x4a5   :  { %2977 = vmatpush.msra.mxu1 %v1349_v14  ;;  %2890 = vmatpush.msrb.mxu0 %v1116_v18  ;;  %v1125_v14 = vld [vmem:[#allocation4 + $0xb28] sm:$0xff]  ;;  %v1229_v18 = vld [vmem:[#allocation4 + $0xf38] sm:$0xff] }
 0x4a6   :  { %2919 = vmatpush.msra.mxu2 %v949_v16  ;;  %2942 = vmatpush.msra.mxu3 %v1053_v19  ;;  %v1062_v16 = vld [vmem:[#allocation4 + $0x8b0] sm:$0xff]  ;;  %v958_v19 = vld [vmem:[#allocation4 + $0x4a0] sm:$0xff] }
 0x4a7   :  { %2978 = vmatpush.msra.mxu1 %v1341_v41  ;;  %2891 = vmatpush.msrb.mxu0 %v1108_v44  ;;  %v1350_v41 = vld [vmem:[#allocation4 + $0x13f0] sm:$0xff]  ;;  %v1117_v44 = vld [vmem:[#allocation4 + $0xad8] sm:$0xff] }
 0x4a8   :  { %2920 = vmatpush.msra.mxu2 %v941_v45  ;;  %2943 = vmatpush.msra.mxu3 %v1045_v47  ;;  %v950_v45 = vld [vmem:[#allocation4 + $0x450] sm:$0xff]  ;;  %v1054_v47 = vld [vmem:[#allocation4 + $0x860] sm:$0xff] }
 0x4a9   :  { %2979 = vmatpush.msra.mxu1 %v1333_v23  ;;  %2892 = vmatpush.msrb.mxu0 %v1100_v24  ;;  %v1342_v23 = vld [vmem:[#allocation4 + $0x13a0] sm:$0xff]  ;;  %v1109_v24 = vld [vmem:[#allocation4 + $0xa88] sm:$0xff] }
 0x4aa   :  { %2893 = vmatmul.f32.vlgmr.msrb.gmra.mxu0 %v3762_v13  ;;  %2921 = vmatpush.msra.mxu2 %v933_v48  ;;  %v942_v48 = vld [vmem:[#allocation4 + $0x400] sm:$0xff] }
 0x4ab   :  { %2944 = vmatpush.msra.mxu3 %v1037_v49  ;;  %2957 = vmatpush.msra.mxu0 %v1221_v50  ;;  %v1046_v49 = vld [vmem:[#allocation4 + $0x810] sm:$0xff] }
 0x4ac   :  { %2980 = vmatpush.msra.mxu1 %v1325_v46  ;;  %2922 = vmatpush.msra.mxu2 %v925_v51  ;;  %v1334_v50 = vld [vmem:[#allocation4 + $0x1350] sm:$0xff]  ;;  %v1101_v46 = vld [vmem:[#allocation4 + $0xa38] sm:$0xff] }
 0x4ad   :  { %2945 = vmatpush.msra.mxu3 %v1029_v52  ;;  %2958 = vmatpush.msra.mxu0 %v1213_v54  ;;  %v934_v51 = vld [vmem:[#allocation4 + $0x3b0] sm:$0xff]  ;;  %v1038_v52 = vld [vmem:[#allocation4 + $0x7c0] sm:$0xff] }
 0x4ae   :  { %2981 = vmatpush.msra.mxu1 %v1317_v55  ;;  %2923 = vmatpush.msra.mxu2 %v917_v58  ;;  %v1222_v54 = vld [vmem:[#allocation4 + $0xef0] sm:$0xff]  ;;  %v1326_v55 = vld [vmem:[#allocation4 + $0x1300] sm:$0xff] }
 0x4af   :  { %2946 = vmatpush.msra.mxu3 %v1021_v59  ;;  %2959 = vmatpush.msra.mxu0 %v1205_v4  ;;  %v926_v58 = vld [vmem:[#allocation4 + $0x360] sm:$0xff]  ;;  %v1030_v59 = vld [vmem:[#allocation4 + $0x770] sm:$0xff] }
 0x4b0   :  { %2982 = vmatpush.msra.mxu1 %v1309_v62  ;;  %2924 = vmatpush.msra.mxu2 %v909_v60  ;;  %v1214_v4 = vld [vmem:[#allocation4 + $0xea0] sm:$0xff]  ;;  %v1318_v62 = vld [vmem:[#allocation4 + $0x12b0] sm:$0xff] }
 0x4b1   :  { %2947 = vmatpush.msra.mxu3 %v1013_v61  ;;  %2960 = vmatpush.msra.mxu0 %v1197_v0  ;;  %v918_v60 = vld [vmem:[#allocation4 + $0x310] sm:$0xff]  ;;  %v1022_v61 = vld [vmem:[#allocation4 + $0x720] sm:$0xff] }
 0x4b2   :  { %2983 = vmatpush.msra.mxu1 %v1301_v1  ;;  %2925 = vmatpush.msra.mxu2 %v901_v2  ;;  %v1206_v0 = vld [vmem:[#allocation4 + $0xe50] sm:$0xff]  ;;  %v1310_v1 = vld [vmem:[#allocation4 + $0x1260] sm:$0xff] }
 0x4b3   :  { %2948 = vmatpush.msra.mxu3 %v1005_v40  ;;  %2961 = vmatpush.msra.mxu0 %v1189_v3  ;;  %v910_v2 = vld [vmem:[#allocation4 + $0x2c0] sm:$0xff]  ;;  %v1014_v40 = vld [vmem:[#allocation4 + $0x6d0] sm:$0xff] }
 0x4b4   :  { %2984 = vmatpush.msra.mxu1 %v1293_v5  ;;  %2926 = vmatpush.msra.mxu2 %v893_v35  ;;  %v1198_v3 = vld [vmem:[#allocation4 + $0xe00] sm:$0xff]  ;;  %v1302_v5 = vld [vmem:[#allocation4 + $0x1210] sm:$0xff] }
 0x4b5   :  { %2949 = vmatpush.msra.mxu3 %v997_v6  ;;  %2962 = vmatpush.msra.mxu0 %v1181_v7  ;;  %v902_v35 = vld [vmem:[#allocation4 + $0x270] sm:$0xff]  ;;  %v1006_v6 = vld [vmem:[#allocation4 + $0x680] sm:$0xff] }
 0x4b6   :  { %2985 = vmatpush.msra.mxu1 %v1285_v56  ;;  %2927 = vmatpush.msra.mxu2 %v885_v8  ;;  %v1190_v7 = vld [vmem:[#allocation4 + $0xdb0] sm:$0xff]  ;;  %v1294_v56 = vld [vmem:[#allocation4 + $0x11c0] sm:$0xff] }
 0x4b7   :  { %2950 = vmatpush.msra.mxu3 %v989_v10  ;;  %2963 = vmatpush.msra.mxu0 %v1173_v11  ;;  %v894_v8 = vld [vmem:[#allocation4 + $0x220] sm:$0xff]  ;;  %v998_v10 = vld [vmem:[#allocation4 + $0x630] sm:$0xff] }
 0x4b8   :  { %2986 = vmatpush.msra.mxu1 %v1277_v12  ;;  %2928 = vmatpush.msra.mxu2 %v877_v15  ;;  %v1182_v11 = vld [vmem:[#allocation4 + $0xd60] sm:$0xff]  ;;  %v1286_v15 = vld [vmem:[#allocation4 + $0x1170] sm:$0xff] }
 0x4b9   :  { %2951 = vmatpush.msra.mxu3 %v981_v17  ;;  %2964 = vmatpush.msra.mxu0 %v1165_v20  ;;  %v886_v17 = vld [vmem:[#allocation4 + $0x1d0] sm:$0xff]  ;;  %v990_v20 = vld [vmem:[#allocation4 + $0x5e0] sm:$0xff] }
 0x4ba   :  { %2987 = vmatpush.msra.mxu1 %v1269_v21  ;;  %2929 = vmatpush.msra.mxu2 %v869_v22  ;;  %v1174_v21 = vld [vmem:[#allocation4 + $0xd10] sm:$0xff]  ;;  %v3786_v22 = vpop.f32.mrf.mxu3 }
 0x4bb   :  { %2952 = vmatpush.msra.mxu3 %v973_v26  ;;  %2965 = vmatpush.msra.mxu0 %v1157_v27  ;;  %v1278_v26 = vld [vmem:[#allocation4 + $0x1120] sm:$0xff] }
 0x4bc   :  { %2988 = vmatpush.msra.mxu1 %v1261_v28  ;;  %2953 = vmatmul.f32.vlgmr.msra.gmra.mxu3 %v3752_v53  ;;  %v3784_v12 = vpop.f32.mrf.mxu2  ;;  %v878_v27 = vld [vmem:[#allocation4 + $0x180] sm:$0xff]  ;;  %v982_v28 = vld [vmem:[#allocation4 + $0x590] sm:$0xff] }
 0x4bd   :  { %3017 = vmatpush.msrb.mxu3 %v1094_v57  ;;  %2930 = vmatpush.msra.mxu2 %v861_v30  ;;  %v1166_v57 = vld [vmem:[#allocation4 + $0xcc0] sm:$0xff] }
 0x4be   :  { %2966 = vmatpush.msra.mxu0 %v1149_v31  ;;  %2989 = vmatpush.msra.mxu1 %v1253_v63  ;;  %v1270_v31 = vld [vmem:[#allocation4 + $0x10d0] sm:$0xff] }
 0x4bf   :  { %3018 = vmatpush.msrb.mxu3 %v1086_v33  ;;  %2931 = vmatpush.msra.mxu2 %v853_v34  ;;  %v3788_v30 = vpop.f32.mrf.mxu0  ;;  %v870_v63 = vld [vmem:[#allocation4 + $0x130] sm:$0xff]  ;;  %v974_v33 = vld [vmem:[#allocation4 + $0x540] sm:$0xff] }
 0x4c0   :  { %2967 = vmatpush.msra.mxu0 %v1141_v36  ;;  %2990 = vmatpush.msra.mxu1 %v1245_v37  ;;  %v1158_v34 = vld [vmem:[#allocation4 + $0xc70] sm:$0xff]  ;;  %v1262_v36 = vld [vmem:[#allocation4 + $0x1080] sm:$0xff]  ;;  %v1095_v37 = vld [vmem:[#allocation4 + $0x9f8] sm:$0xff] }
 0x4c1   :  { %3019 = vmatpush.msrb.mxu3 %v1078_v38  ;;  %2932 = vmatpush.msra.mxu2 %v845_v39  ;;  %v862_v38 = vld [vmem:[#allocation4 + $0xe0] sm:$0xff] }
 0x4c2   :  { %2968 = vmatpush.msra.mxu0 %v1133_v32  ;;  %2991 = vmatpush.msra.mxu1 %v1237_v9  ;;  %v1150_v39 = vld [vmem:[#allocation4 + $0xc20] sm:$0xff]  ;;  %v1254_v32 = vld [vmem:[#allocation4 + $0x1030] sm:$0xff]  ;;  %v1087_v9 = vld [vmem:[#allocation4 + $0x9a8] sm:$0xff] }
 0x4c3   :  { %2933 = vmatmul.f32.vlgmr.msra.gmra.mxu2 %v3755_v25  ;;  %3020 = vmatpush.msrb.mxu3 %v1070_v42  ;;  %v854_v42 = vld [vmem:[#allocation4 + $0x90] sm:$0xff] }
 0x4c4   :  { %2997 = vmatpush.msrb.mxu2 %v966_v43  ;;  %2969 = vmatpush.msra.mxu0 %v1125_v14  ;;  %v3791_v43 = vpop.f32.mrf.mxu1 }
 0x4c5   :  { %2992 = vmatpush.msra.mxu1 %v1229_v18  ;;  %3021 = vmatpush.msrb.mxu3 %v1062_v16  ;;  %v1142_v18 = vld [vmem:[#allocation4 + $0xbd0] sm:$0xff]  ;;  %v1246_v16 = vld [vmem:[#allocation4 + $0xfe0] sm:$0xff] }
 0x4c6   :  { %2993 = vmatmul.f32.vlgmr.msra.gmra.mxu1 %v3758_v29  ;;  %2998 = vmatpush.msrb.mxu2 %v958_v19  ;;  %v2614_v14 = vpop.f32.mrf.mxu2  ;;  %v1079_v19 = vld [vmem:[#allocation4 + $0x958] sm:$0xff] }
 0x4c7   :  { %3057 = vmatpush.msrb.mxu1 %v1350_v41  ;;  %2970 = vmatpush.msra.mxu0 %v1117_v44  ;;  %v846_v41 = vld [vmem:[#allocation4 + $0x40] sm:$0xff]  ;;  %v2634_v44 = vpop.f32.mrf.mxu3 }
 0x4c8   :  { %2999 = vmatpush.msrb.mxu2 %v950_v45  ;;  %3022 = vmatpush.msrb.mxu3 %v1054_v47  ;;  %v1134_v45 = vld [vmem:[#allocation4 + $0xb80] sm:$0xff]  ;;  %v1238_v47 = vld [vmem:[#allocation4 + $0xf90] sm:$0xff] }
 0x4c9   :  { %3058 = vmatpush.msrb.mxu1 %v1342_v23  ;;  %2971 = vmatpush.msra.mxu0 %v1109_v24  ;;  %v1071_v23 = vld [vmem:[#allocation4 + $0x908] sm:$0xff]  ;;  %v2654_v24 = vpop.f32.mrf.mxu0 }
 0x4ca   :  { %3000 = vmatpush.msrb.mxu2 %v942_v48  ;;  %3023 = vmatpush.msrb.mxu3 %v1046_v49  ;;  %v967_v48 = vld [vmem:[#allocation4 + $0x4f8] sm:$0xff]  ;;  %v1126_v49 = vld [vmem:[#allocation4 + $0xb30] sm:$0xff] }
 0x4cb   :  { %3059 = vmatpush.msrb.mxu1 %v1334_v50  ;;  %2972 = vmatpush.msra.mxu0 %v1101_v46  ;;  %v1230_v50 = vld [vmem:[#allocation4 + $0xf40] sm:$0xff]  ;;  %v1063_v46 = vld [vmem:[#allocation4 + $0x8b8] sm:$0xff] }
 0x4cc   :  { %2973 = vmatmul.f32.vlgmr.msra.gmra.mxu0 %v3762_v13  ;;  %3001 = vmatpush.msrb.mxu2 %v934_v51  ;;  %v959_v51 = vld [vmem:[#allocation4 + $0x4a8] sm:$0xff] }
 0x4cd   :  { %3024 = vmatpush.msrb.mxu3 %v1038_v52  ;;  %3037 = vmatpush.msrb.mxu0 %v1222_v54  ;;  %v1351_v52 = vld [vmem:[#allocation4 + $0x13f8] sm:$0xff]  ;;  %v1118_v54 = vld [vmem:[#allocation4 + $0xae0] sm:$0xff] }
 0x4ce   :  { %3060 = vmatpush.msrb.mxu1 %v1326_v55  ;;  %3002 = vmatpush.msrb.mxu2 %v926_v58  ;;  %v951_v55 = vld [vmem:[#allocation4 + $0x458] sm:$0xff]  ;;  %v1055_v58 = vld [vmem:[#allocation4 + $0x868] sm:$0xff] }
 0x4cf   :  { %3025 = vmatpush.msrb.mxu3 %v1030_v59  ;;  %3038 = vmatpush.msrb.mxu0 %v1214_v4  ;;  %v2635_v4 = vadd.f32 %v2634_v44, %v2614_v14  ;;  %v1295_v14 = vld [vmem:[#allocation4 + $0x11c8] sm:$0xff]  ;;  %v1287_v44 = vld [vmem:[#allocation4 + $0x1178] sm:$0xff] }
 0x4d0   :  { %3061 = vmatpush.msrb.mxu1 %v1318_v62  ;;  %3003 = vmatpush.msrb.mxu2 %v918_v60  ;;  %v1343_v62 = vld [vmem:[#allocation4 + $0x13a8] sm:$0xff]  ;;  %v1110_v60 = vld [vmem:[#allocation4 + $0xa90] sm:$0xff] }
 0x4d1   :  { %3026 = vmatpush.msrb.mxu3 %v1022_v61  ;;  %3039 = vmatpush.msrb.mxu0 %v1206_v0  ;;  %v2674_v61 = vpop.f32.mrf.mxu1 }
 0x4d2   :  { %3062 = vmatpush.msrb.mxu1 %v1310_v1  ;;  %3004 = vmatpush.msrb.mxu2 %v910_v2  ;;  %v943_v1 = vld [vmem:[#allocation4 + $0x408] sm:$0xff]  ;;  %v1047_v2 = vld [vmem:[#allocation4 + $0x818] sm:$0xff] }
 0x4d3   :  { %3027 = vmatpush.msrb.mxu3 %v1014_v40  ;;  %3040 = vmatpush.msrb.mxu0 %v1198_v3  ;;  %v1335_v40 = vld [vmem:[#allocation4 + $0x1358] sm:$0xff] }
 0x4d4   :  { %3063 = vmatpush.msrb.mxu1 %v1302_v5  ;;  %3005 = vmatpush.msrb.mxu2 %v902_v35  ;;  %v1102_v5 = vld [vmem:[#allocation4 + $0xa40] sm:$0xff]  ;;  %v935_v35 = vld [vmem:[#allocation4 + $0x3b8] sm:$0xff] }
 0x4d5   :  { %3028 = vmatpush.msrb.mxu3 %v1006_v6  ;;  %3041 = vmatpush.msrb.mxu0 %v1190_v7  ;;  %v2655_v7 = vadd.f32 %v2654_v24, %v2635_v4  ;;  %v1151_v4 = vld [vmem:[#allocation4 + $0xc28] sm:$0xff] }
 0x4d6   :  { %3064 = vmatpush.msrb.mxu1 %v1294_v56  ;;  %3006 = vmatpush.msrb.mxu2 %v894_v8  ;;  %v1039_v56 = vld [vmem:[#allocation4 + $0x7c8] sm:$0xff]  ;;  %v1223_v8 = vld [vmem:[#allocation4 + $0xef8] sm:$0xff] }
 0x4d7   :  { %3029 = vmatpush.msrb.mxu3 %v998_v10  ;;  %3042 = vmatpush.msrb.mxu0 %v1182_v11  ;;  %v2555_v10 = vadd.f32 %v3786_v22, %v3784_v12  ;;  %v1327_v11 = vld [vmem:[#allocation4 + $0x1308] sm:$0xff] }
 0x4d8   :  { %3065 = vmatpush.msrb.mxu1 %v1286_v15  ;;  %3007 = vmatpush.msrb.mxu2 %v886_v17  ;;  %v927_v15 = vld [vmem:[#allocation4 + $0x368] sm:$0xff] }
 0x4d9   :  { %3030 = vmatpush.msrb.mxu3 %v990_v20  ;;  %3043 = vmatpush.msrb.mxu0 %v1174_v21  ;;  %v2714_v0 = vpop.f32.mrf.mxu3  ;;  %v1031_v20 = vld [vmem:[#allocation4 + $0x778] sm:$0xff]  ;;  %v1215_v21 = vld [vmem:[#allocation4 + $0xea8] sm:$0xff]  ;;  %v2575_v12 = vadd.f32 %v3788_v30, %v2555_v10 }
 0x4da   :  { %3066 = vmatpush.msrb.mxu1 %v1278_v26  ;;  %3008 = vmatpush.msrb.mxu2 %v878_v27  ;;  %v1319_v26 = vld [vmem:[#allocation4 + $0x12b8] sm:$0xff]  ;;  %v1231_v10 = vld [vmem:[#allocation4 + $0xf48] sm:$0xff] }
 0x4db   :  { %3031 = vmatpush.msrb.mxu3 %v982_v28  ;;  %3044 = vmatpush.msrb.mxu0 %v1166_v57  ;;  %v919_v27 = vld [vmem:[#allocation4 + $0x318] sm:$0xff]  ;;  %v2675_v28 = vadd.f32 %v2674_v61, %v2655_v7  ;;  %v1023_v57 = vld [vmem:[#allocation4 + $0x728] sm:$0xff]  ;;  %v2595_v30 = vadd.f32 %v3791_v43, %v2575_v12 }
 0x4dc   :  { %3067 = vmatpush.msrb.mxu1 %v1270_v31  ;;  %3009 = vmatpush.msrb.mxu2 %v870_v63  ;;  %v1207_v31 = vld [vmem:[#allocation4 + $0xe58] sm:$0xff]  ;;  %v1311_v63 = vld [vmem:[#allocation4 + $0x1268] sm:$0xff] }
 0x4dd   :  { %3032 = vmatpush.msrb.mxu3 %v974_v33  ;;  %3045 = vmatpush.msrb.mxu0 %v1158_v34  ;;  %v2754_v22 = vpop.f32.mrf.mxu1  ;;  %v911_v33 = vld [vmem:[#allocation4 + $0x2c8] sm:$0xff]  ;;  %v3348_v24 = vmul.f32 -1.442695, %v2595_v30  ;;  %v855_v61 = vld [vmem:[#allocation4 + $0x98] sm:$0xff] }
 0x4de   :  { %3068 = vmatpush.msrb.mxu1 %v1262_v36  ;;  %3033 = vmatmul.f32.vlgmr.msrb.gmra.mxu3 %v3752_v53  ;;  %v1015_v36 = vld [vmem:[#allocation4 + $0x6d8] sm:$0xff]  ;;  %v1279_v43 = vld [vmem:[#allocation4 + $0x1128] sm:$0xff] }
 0x4df   :  { %3097 = vmatpush.msra.mxu3 %v1095_v37  ;;  %3010 = vmatpush.msrb.mxu2 %v862_v38  ;;  %v1199_v37 = vld [vmem:[#allocation4 + $0xe08] sm:$0xff]  ;;  %v1303_v38 = vld [vmem:[#allocation4 + $0x1218] sm:$0xff] }
 0x4e0   :  { %3046 = vmatpush.msrb.mxu0 %v1150_v39  ;;  %3069 = vmatpush.msrb.mxu1 %v1254_v32  ;;  %v2694_v59 = vpop.f32.mrf.mxu2  ;;  %v903_v39 = vld [vmem:[#allocation4 + $0x278] sm:$0xff]  ;;  %v3349_v32 = vmul.f32 -1.442695, %v2675_v28  ;;  %v1103_v28 = vld [vmem:[#allocation4 + $0xa48] sm:$0xff] }
 0x4e1   :  { %3098 = vmatpush.msra.mxu3 %v1087_v9  ;;  %3011 = vmatpush.msrb.mxu2 %v854_v42  ;;  %v2715_v3 = vadd.f32 %v2714_v0, %v2694_v59  ;;  %v1007_v9 = vld [vmem:[#allocation4 + $0x688] sm:$0xff]  ;;  %v1191_v42 = vld [vmem:[#allocation4 + $0xdb8] sm:$0xff] }
 0x4e2   :  { %3047 = vmatpush.msrb.mxu0 %v1142_v18  ;;  %3070 = vmatpush.msrb.mxu1 %v1246_v16  ;;  %v895_v18 = vld [vmem:[#allocation4 + $0x228] sm:$0xff]  ;;  %3368 = vpow2.f32 %v3349_v32  ;;  %v1143_v0 = vld [vmem:[#allocation4 + $0xbd8] sm:$0xff] }
 0x4e3   :  { %3099 = vmatpush.msra.mxu3 %v1079_v19  ;;  %3012 = vmatpush.msrb.mxu2 %v846_v41  ;;  %v2734_v6 = vpop.f32.mrf.mxu0  ;;  %v999_v19 = vld [vmem:[#allocation4 + $0x638] sm:$0xff]  ;;  %v1183_v41 = vld [vmem:[#allocation4 + $0xd68] sm:$0xff] }
 0x4e4   :  { %3048 = vmatpush.msrb.mxu0 %v1134_v45  ;;  %3071 = vmatpush.msrb.mxu1 %v1238_v47  ;;  %v2735_v17 = vadd.f32 %v2734_v6, %v2715_v3  ;;  %v887_v45 = vld [vmem:[#allocation4 + $0x1d8] sm:$0xff]  ;;  %v991_v47 = vld [vmem:[#allocation4 + $0x5e8] sm:$0xff] }
 0x4e5   :  { %3013 = vmatmul.f32.vlgmr.msrb.gmra.mxu2 %v3755_v25  ;;  %3100 = vmatpush.msra.mxu3 %v1071_v23  ;;  %v1175_v23 = vld [vmem:[#allocation4 + $0xd18] sm:$0xff]  ;;  %v863_v59 = vld [vmem:[#allocation4 + $0xe8] sm:$0xff] }
 0x4e6   :  { %3077 = vmatpush.msra.mxu2 %v967_v48  ;;  %3049 = vmatpush.msrb.mxu0 %v1126_v49  ;;  %v2755_v34 = vadd.f32 %v2754_v22, %v2735_v17  ;;  %v879_v48 = vld [vmem:[#allocation4 + $0x188] sm:$0xff]  ;;  %v983_v49 = vld [vmem:[#allocation4 + $0x598] sm:$0xff] }
 0x4e7   :  { %3072 = vmatpush.msrb.mxu1 %v1230_v50  ;;  %3101 = vmatpush.msra.mxu3 %v1063_v46  ;;  %v1167_v50 = vld [vmem:[#allocation4 + $0xcc8] sm:$0xff]  ;;  %v1271_v46 = vld [vmem:[#allocation4 + $0x10d8] sm:$0xff] }
 0x4e8   :  { %3073 = vmatmul.f32.vlgmr.msrb.gmra.mxu1 %v3758_v29  ;;  %3078 = vmatpush.msra.mxu2 %v959_v51  ;;  %v3350_v16 = vmul.f32 -1.442695, %v2755_v34  ;;  %v871_v51 = vld [vmem:[#allocation4 + $0x138] sm:$0xff]  ;;  %v1135_v3 = vld [vmem:[#allocation4 + $0xb88] sm:$0xff] }
 0x4e9   :  { %3137 = vmatpush.msra.mxu1 %v1351_v52  ;;  %3050 = vmatpush.msrb.mxu0 %v1118_v54  ;;  %v975_v52 = vld [vmem:[#allocation4 + $0x548] sm:$0xff]  ;;  %v1159_v54 = vld [vmem:[#allocation4 + $0xc78] sm:$0xff] }
 0x4ea   :  { %3079 = vmatpush.msra.mxu2 %v951_v55  ;;  %3102 = vmatpush.msra.mxu3 %v1055_v58  ;;  %3370 = vpow2.f32 %v3350_v16  ;;  %v1263_v55 = vld [vmem:[#allocation4 + $0x1088] sm:$0xff]  ;;  %v3369_v58 = vpop.eup %3368 }
 0x4eb   :  { %3138 = vmatpush.msra.mxu1 %v1343_v62  ;;  %3051 = vmatpush.msrb.mxu0 %v1110_v60  ;;  %3372 = vpow2.f32 %v3348_v24  ;;  %v1255_v62 = vld [vmem:[#allocation4 + $0x1038] sm:$0xff]  ;;  %v1119_v17 = vld [vmem:[#allocation4 + $0xae8] sm:$0xff] }
 0x4ec   :  { %3080 = vmatpush.msra.mxu2 %v943_v1  ;;  %3103 = vmatpush.msra.mxu3 %v1047_v2  ;;  %v3801_v1 = vadd.f32 1.0, %v3369_v58  ;;  %v1247_v2 = vld [vmem:[#allocation4 + $0xfe8] sm:$0xff] }
 0x4ed   :  { %3139 = vmatpush.msra.mxu1 %v1335_v40  ;;  %3052 = vmatpush.msrb.mxu0 %v1102_v5  ;;  %v847_v40 = vld [vmem:[#allocation4 + $0x48] sm:$0xff] }
 0x4ee   :  { %3053 = vmatmul.f32.vlgmr.msrb.gmra.mxu0 %v3762_v13  ;;  %3081 = vmatpush.msra.mxu2 %v935_v35  ;;  %3374 = vrcp.f32 %v3801_v1  ;;  %v3213_v30 = vand.u32 2147483647, %v3801_v1  ;;  %vm3209_vm13 = vweird.f32 %v3801_v1 }
 0x4ef   :  { %3104 = vmatpush.msra.mxu3 %v1039_v56  ;;  %3117 = vmatpush.msra.mxu0 %v1223_v8  ;;  %v1239_v56 = vld [vmem:[#allocation4 + $0xf98] sm:$0xff] }
 0x4f0   :  { %3140 = vmatpush.msra.mxu1 %v1327_v11  ;;  %3082 = vmatpush.msra.mxu2 %v927_v15  ;;  %v3371_v60 = vpop.eup %3370  ;;  %vm3214_vm2 = vcmp.eq.f32.partialorder %v3213_v30, 8.507059e+37 }
 0x4f1   :  { %3105 = vmatpush.msra.mxu3 %v1031_v20  ;;  %3118 = vmatpush.msra.mxu0 %v1215_v21  ;;  %v3373_v6 = vpop.eup %3372  ;;  %v3803_v7 = vadd.f32 1.0, %v3371_v60 }
 0x4f2   :  { %3141 = vmatpush.msra.mxu1 %v1319_v26  ;;  %3083 = vmatpush.msra.mxu2 %v919_v27  ;;  %v3806_v15 = vadd.f32 1.0, %v3373_v6  ;;  %v1111_v26 = vld [vmem:[#allocation4 + $0xa98] sm:$0xff] }
 0x4f3   :  { %3106 = vmatpush.msra.mxu3 %v1023_v57  ;;  %3119 = vmatpush.msra.mxu0 %v1207_v31  ;;  %3376 = vrcp.f32 %v3803_v7  ;;  %vm3224_vm1 = vweird.f32 %v3803_v7 }
 0x4f4   :  { %3142 = vmatpush.msra.mxu1 %v1311_v63  ;;  %3084 = vmatpush.msra.mxu2 %v911_v33  ;;  %3378 = vrcp.f32 %v3806_v15  ;;  %v3375_v31 = vpop.eup %3374  ;;  %vm3194_vm5 = vweird.f32 %v3806_v15  ;;  %v3198_v58 = vand.u32 2147483647, %v3806_v15 }
 0x4f5   :  { %3107 = vmatpush.msra.mxu3 %v1015_v36  ;;  %3120 = vmatpush.msra.mxu0 %v1199_v37  ;;  %v3205_v12 = vmul.f32 %v3375_v31, %v3801_v1  ;;  %vm3210_vm12 = vweird.f32 %v3375_v31 }
 0x4f6   :  { %3143 = vmatpush.msra.mxu1 %v1303_v38  ;;  %3085 = vmatpush.msra.mxu2 %v903_v39  ;;  %vm3824_vm0 = vmor %vm3209_vm13, %vm3210_vm12  ;;  %vm3325_vm12 = vcmask 1045508   ;;  %vm3199_vm13 = vcmp.eq.f32.partialorder %v3198_v58, 8.507059e+37 }
 0x4f7   :  { %3108 = vmatpush.msra.mxu3 %v1007_v9  ;;  %3121 = vmatpush.msra.mxu0 %v1191_v42 }
 0x4f8   :  { %3144 = vmatpush.msra.mxu1 %v1295_v14  ;;  %3086 = vmatpush.msra.mxu2 %v895_v18  ;;  %v3215_v14 = vand.u32 2147483648, %v3801_v1 }
 0x4f9   :  { %3109 = vmatpush.msra.mxu3 %v999_v19  ;;  %3122 = vmatpush.msra.mxu0 %v1183_v41  ;;  %v3230_v41 = vand.u32 2147483648, %v3803_v7 }
 0x4fa   :  { %3145 = vmatpush.msra.mxu1 %v1287_v44  ;;  %3087 = vmatpush.msra.mxu2 %v887_v45  ;;  %v3228_v45 = vand.u32 2147483647, %v3803_v7  ;;  %v3216_v24 = vor.u32 1.1754944e-38, %v3215_v14 }
 0x4fb   :  { %3110 = vmatpush.msra.mxu3 %v991_v47  ;;  %3123 = vmatpush.msra.mxu0 %v1175_v23  ;;  %v2794_v5 = vpop.f32.mrf.mxu3 }
 0x4fc   :  { %3146 = vmatpush.msra.mxu1 %v1279_v43  ;;  %3088 = vmatpush.msra.mxu2 %v879_v48  ;;  %vm3229_vm7 = vcmp.eq.f32.partialorder %v3228_v45, 8.507059e+37 }
 0x4fd   :  { %3111 = vmatpush.msra.mxu3 %v983_v49  ;;  %3124 = vmatpush.msra.mxu0 %v1167_v50 }
 0x4fe   :  { %3147 = vmatpush.msra.mxu1 %v1271_v46  ;;  %3089 = vmatpush.msra.mxu2 %v871_v51  ;;  %v3200_v51 = vand.u32 2147483648, %v3806_v15 }
 0x4ff   :  { %3112 = vmatpush.msra.mxu3 %v975_v52  ;;  %3125 = vmatpush.msra.mxu0 %v1159_v54  ;;  %v2834_v21 = vpop.f32.mrf.mxu1  ;;  %v3231_v54 = vor.u32 1.1754944e-38, %v3230_v41 }
 0x500   :  { %3148 = vmatpush.msra.mxu1 %v1263_v55  ;;  %3113 = vmatmul.f32.vlgmr.msra.gmra.mxu3 %v3752_v53  ;;  %v1127_v53 = vld [vmem:[#allocation4 + $0xb38] sm:$0xff]  ;;  %v3201_v1 = vor.u32 1.1754944e-38, %v3200_v51 }
 0x501   :  { %3090 = vmatpush.msra.mxu2 %v863_v59  ;;  %3126 = vmatpush.msra.mxu0 %v1151_v4 }
 0x502   :  { %3149 = vmatpush.msra.mxu1 %v1255_v62  ;;  %v2774_v35 = vpop.f32.mrf.mxu2 }
 0x503   :  { %3091 = vmatpush.msra.mxu2 %v855_v61  ;;  %3127 = vmatpush.msra.mxu0 %v1143_v0  ;;  %v2795_v8 = vadd.f32 %v2794_v5, %v2774_v35 }
 0x504   :  { %3150 = vmatpush.msra.mxu1 %v1247_v2 }
 0x505   :  { %3092 = vmatpush.msra.mxu2 %v847_v40  ;;  %3128 = vmatpush.msra.mxu0 %v1135_v3  ;;  %v2814_v11 = vpop.f32.mrf.mxu0 }
 0x506   :  { %3151 = vmatpush.msra.mxu1 %v1239_v56  ;;  %3093 = vmatmul.f32.vlgmr.msra.gmra.mxu2 %v3755_v25  ;;  %v2815_v20 = vadd.f32 %v2814_v11, %v2795_v8  ;;  %v3377_v25 = vpop.eup %3376 }
 0x507   :  { %3129 = vmatpush.msra.mxu0 %v1127_v53  ;;  %v3814_v22 = vpop.eup %3378  ;;  %v3220_v63 = vmul.f32 %v3377_v25, %v3803_v7  ;;  %vm3225_vm14 = vweird.f32 %v3377_v25 }
 0x508   :  { %3152 = vmatpush.msra.mxu1 %v1231_v10  ;;  %v2835_v27 = vadd.f32 %v2834_v21, %v2815_v20  ;;  %v3190_v34 = vmul.f32 %v3814_v22, %v3806_v15  ;;  %vm3195_vm15 = vweird.f32 %v3814_v22  ;;  %vm3834_vm3 = vmor %vm3224_vm1, %vm3225_vm14  ;;  %vm3327_vm14 = vcmask 1043456  }
 0x509   :  { %3153 = vmatmul.f32.vlgmr.msra.gmra.mxu1 %v3758_v29  ;;  %3130 = vmatpush.msra.mxu0 %v1119_v17  ;;  %v3206_v29 = vsub.f32 1.0, %v3205_v12  ;;  %v3221_v37 = vsub.f32 1.0, %v3220_v63  ;;  %vm3844_vm6 = vmor %vm3194_vm5, %vm3195_vm15 }
 0x50a   :  { %v3351_v57 = vmul.f32 -1.442695, %v2835_v27  ;;  %v3191_v39 = vsub.f32 1.0, %v3190_v34 }
 0x50b   :  { %3131 = vmatpush.msra.mxu0 %v1111_v26  ;;  %v3207_v38 = vmul.f32 %v3375_v31, %v3206_v29  ;;  %v3222_v32 = vmul.f32 %v3377_v25, %v3221_v37 }
 0x50c   :  { %3380 = vpow2.f32 %v3351_v57 }
 0x50d   :  { %3132 = vmatpush.msra.mxu0 %v1103_v28  ;;  %v3208_v9 = vadd.f32 %v3375_v31, %v3207_v38  ;;  %v3223_v18 = vadd.f32 %v3377_v25, %v3222_v32 }
 0x50e   :  { %3133 = vmatmul.f32.vlgmr.msra.gmra.mxu0 %v3762_v13  ;;  %v3192_v13 = vmul.f32 %v3814_v22, %v3191_v39 }
 0x50f   :  { %v3212_v44 = vsel %vm3824_vm0, %v3375_v31, %v3208_v9  ;;  %v3227_v49 = vsel %vm3834_vm3, %v3377_v25, %v3223_v18 }
 0x510   :  { %v3193_v23 = vadd.f32 %v3814_v22, %v3192_v13  ;;  %v3217_v52 = vsel %vm3214_vm2, %v3216_v24, %v3212_v44  ;;  %v3232_v4 = vsel %vm3229_vm7, %v3231_v54, %v3227_v49 }
 0x511   :  { %v3317_v61 = vrot.slane %v3217_v52, 6  ;;  %v3318_v40 = vrot.slane %v3232_v4, 4 }
 0x512   :  { %v3381_v33 = vpop.eup %3380  ;;  %v3197_v60 = vsel %vm3844_vm6, %v3814_v22, %v3193_v23 }
 0x513   :  { %v3184_v36 = vadd.f32 1.0, %v3381_v33  ;;  %v3202_v5 = vsel %vm3199_vm13, %v3201_v1, %v3197_v60 }
 0x514   :  { %v3324_v35 = vsel %vm3323_vm11, %v3202_v5, %v3317_v61 }
 0x515   :  { %3382 = vrcp.f32 %v3184_v36  ;;  %v3245_v48 = vand.u32 2147483648, %v3184_v36  ;;  %v3243_v46 = vand.u32 2147483647, %v3184_v36  ;;  %vm3239_vm8 = vweird.f32 %v3184_v36 }
 0x517   :  { %v3246_v62 = vor.u32 1.1754944e-38, %v3245_v48  ;;  %vm3244_vm10 = vcmp.eq.f32.partialorder %v3243_v46, 8.507059e+37 }
 0x51b   :  { %v3383_v42 = vpop.eup %3382 }
 0x51c   :  { %v3235_v16 = vmul.f32 %v3383_v42, %v3184_v36  ;;  %vm3240_vm4 = vweird.f32 %v3383_v42 }
 0x51d   :  { %vm3241_vm9 = vmor %vm3239_vm8, %vm3240_vm4  ;;  %v2874_v8 = vpop.f32.mrf.mxu3 }
 0x51e   :  { %v3236_v47 = vsub.f32 1.0, %v3235_v16 }
 0x520   :  { %v3237_v50 = vmul.f32 %v3383_v42, %v3236_v47 }
 0x521   :  { %v2914_v11 = vpop.f32.mrf.mxu1 }
 0x522   :  { %v3238_v59 = vadd.f32 %v3383_v42, %v3237_v50 }
 0x524   :  { %v3242_v0 = vsel %vm3241_vm9, %v3383_v42, %v3238_v59  ;;  %v2854_v56 = vpop.f32.mrf.mxu2 }
 0x525   :  { %v3247_v2 = vsel %vm3244_vm10, %v3246_v62, %v3242_v0  ;;  %v2875_v25 = vadd.f32 %v2874_v8, %v2854_v56 }
 0x526   :  { %v3319_v3 = vrot.slane %v3247_v2, 2 }
 0x527   :  { %v2894_v53 = vpop.f32.mrf.mxu0 }
 0x528   :  { %v3326_v6 = vsel %vm3325_vm12, %v3318_v40, %v3319_v3  ;;  %v2895_v63 = vadd.f32 %v2894_v53, %v2875_v25 }
 0x529   :  { %v3328_v7 = vsel %vm3327_vm14, %v3324_v35, %v3326_v6 }
 0x52a   :  { %3334 = vst [vmem:[%s3896_s6] sm:$0xff] %v3328_v7  ;;  %v2915_v36 = vadd.f32 %v2914_v11, %v2895_v63 }
 0x52c   :  { %v3352_v38 = vmul.f32 -1.442695, %v2915_v36 }
 0x53f   :  { %v2954_v15 = vpop.f32.mrf.mxu3 }
 0x543   :  { %v2994_v26 = vpop.f32.mrf.mxu1 }
 0x546   :  { %v2934_v10 = vpop.f32.mrf.mxu2 }
 0x547   :  { %v2955_v21 = vadd.f32 %v2954_v15, %v2934_v10 }
 0x549   :  { %v2974_v17 = vpop.f32.mrf.mxu0 }
 0x54a   :  { %v2975_v31 = vadd.f32 %v2974_v17, %v2955_v21 }
 0x54c   :  { %v2995_v22 = vadd.f32 %v2994_v26, %v2975_v31 }
 0x54e   :  { %v3353_v34 = vmul.f32 -1.442695, %v2995_v22 }
 0x550   :  { %3384 = vpow2.f32 %v3353_v34 }
 0x556   :  { %v3385_v39 = vpop.eup %3384 }
 0x557   :  { %v3186_v9 = vadd.f32 1.0, %v3385_v39 }
 0x559   :  { %v3273_v61 = vand.u32 2147483647, %v3186_v9  ;;  %v3275_v0 = vand.u32 2147483648, %v3186_v9  ;;  %vm3269_vm0 = vweird.f32 %v3186_v9 }
 0x55b   :  { %vm3274_vm5 = vcmp.eq.f32.partialorder %v3273_v61, 8.507059e+37  ;;  %v3276_v56 = vor.u32 1.1754944e-38, %v3275_v0 }
 0x561   :  { %v3034_v27 = vpop.f32.mrf.mxu3 }
 0x565   :  { %v3074_v33 = vpop.f32.mrf.mxu1 }
 0x568   :  { %v3014_v20 = vpop.f32.mrf.mxu2 }
 0x569   :  { %v3035_v28 = vadd.f32 %v3034_v27, %v3014_v20 }
 0x56b   :  { %v3054_v57 = vpop.f32.mrf.mxu0 }
 0x56c   :  { %v3055_v12 = vadd.f32 %v3054_v57, %v3035_v28 }
 0x56e   :  { %v3075_v29 = vadd.f32 %v3074_v33, %v3055_v12 }
 0x570   :  { %v3354_v37 = vmul.f32 -1.442695, %v3075_v29 }
 0x572   :  { %3386 = vpow2.f32 %v3354_v37 }
 0x573   :  { %3388 = vpow2.f32 %v3352_v38 }
 0x574   :  { %3390 = vrcp.f32 %v3186_v9 }
 0x578   :  { %v3387_v32 = vpop.eup %3386 }
 0x579   :  { %v3389_v42 = vpop.eup %3388  ;;  %v3187_v13 = vadd.f32 1.0, %v3387_v32 }
 0x57a   :  { %v3858_v19 = vadd.f32 1.0, %v3389_v42  ;;  %v3391_v23 = vpop.eup %3390 }
 0x57b   :  { %3392 = vrcp.f32 %v3187_v13  ;;  %v3265_v43 = vmul.f32 %v3391_v23, %v3186_v9  ;;  %vm3270_vm15 = vweird.f32 %v3391_v23  ;;  %v3290_v3 = vand.u32 2147483648, %v3187_v13 }
 0x57c   :  { %3394 = vrcp.f32 %v3858_v19  ;;  %vm3862_vm3 = vmor %vm3269_vm0, %vm3270_vm15  ;;  %vm3284_vm4 = vweird.f32 %v3187_v13  ;;  %v3288_v35 = vand.u32 2147483647, %v3187_v13  ;;  %vm3254_vm8 = vweird.f32 %v3858_v19 }
 0x57d   :  { %v3266_v46 = vsub.f32 1.0, %v3265_v43  ;;  %v3260_v17 = vand.u32 2147483648, %v3858_v19  ;;  %v3291_v21 = vor.u32 1.1754944e-38, %v3290_v3  ;;  %v3258_v27 = vand.u32 2147483647, %v3858_v19 }
 0x57e   :  { %vm3289_vm10 = vcmp.eq.f32.partialorder %v3288_v35, 8.507059e+37 }
 0x57f   :  { %v3267_v55 = vmul.f32 %v3391_v23, %v3266_v46  ;;  %v3261_v63 = vor.u32 1.1754944e-38, %v3260_v17 }
 0x581   :  { %v3393_v24 = vpop.eup %3392  ;;  %v3268_v4 = vadd.f32 %v3391_v23, %v3267_v55 }
 0x582   :  { %v3395_v48 = vpop.eup %3394  ;;  %v3280_v49 = vmul.f32 %v3393_v24, %v3187_v13  ;;  %vm3285_vm1 = vweird.f32 %v3393_v24 }
 0x583   :  { %v3114_v30 = vpop.f32.mrf.mxu3  ;;  %v3250_v51 = vmul.f32 %v3395_v48, %v3858_v19  ;;  %vm3255_vm2 = vweird.f32 %v3395_v48  ;;  %v3272_v5 = vsel %vm3862_vm3, %v3391_v23, %v3268_v4  ;;  %vm3868_vm6 = vmor %vm3284_vm4, %vm3285_vm1  ;;  %vm3259_vm1 = vcmp.eq.f32.partialorder %v3258_v27, 8.507059e+37 }
 0x584   :  { %v3281_v54 = vsub.f32 1.0, %v3280_v49  ;;  %v3277_v20 = vsel %vm3274_vm5, %v3276_v56, %v3272_v5  ;;  %vm3877_vm9 = vmor %vm3254_vm8, %vm3255_vm2 }
 0x585   :  { %v3251_v58 = vsub.f32 1.0, %v3250_v51  ;;  %v3320_v12 = vrot.slane %v3277_v20, 6 }
 0x586   :  { %v3154_v44 = vpop.f32.mrf.mxu1  ;;  %v3282_v59 = vmul.f32 %v3393_v24, %v3281_v54 }
 0x587   :  { %v3252_v60 = vmul.f32 %v3395_v48, %v3251_v58 }
 0x588   :  { %v3283_v1 = vadd.f32 %v3393_v24, %v3282_v59 }
 0x589   :  { %v3094_v14 = vpop.f32.mrf.mxu2  ;;  %v3253_v7 = vadd.f32 %v3395_v48, %v3252_v60 }
 0x58a   :  { %v3115_v18 = vadd.f32 %v3114_v30, %v3094_v14  ;;  %v3287_v10 = vsel %vm3868_vm6, %v3393_v24, %v3283_v1 }
 0x58b   :  { %v3134_v16 = vpop.f32.mrf.mxu0  ;;  %v3292_v57 = vsel %vm3289_vm10, %v3291_v21, %v3287_v10  ;;  %v3257_v25 = vsel %vm3877_vm9, %v3395_v48, %v3253_v7 }
 0x58c   :  { %v3135_v41 = vadd.f32 %v3134_v16, %v3115_v18  ;;  %v3321_v29 = vrot.slane %v3292_v57, 4  ;;  %v3262_v36 = vsel %vm3259_vm1, %v3261_v63, %v3257_v25 }
 0x58d   :  { %v3329_v37 = vsel %vm3323_vm11, %v3262_v36, %v3320_v12 }
 0x58e   :  { %v3155_v45 = vadd.f32 %v3154_v44, %v3135_v41 }
 0x590   :  { %v3355_v47 = vmul.f32 -1.442695, %v3155_v45 }
 0x592   :  { %3396 = vpow2.f32 %v3355_v47 }
 0x598   :  { %v3397_v50 = vpop.eup %3396 }
 0x599   :  { %v3188_v52 = vadd.f32 1.0, %v3397_v50 }
 0x59b   :  { %3398 = vrcp.f32 %v3188_v52  ;;  %v3305_v53 = vand.u32 2147483648, %v3188_v52  ;;  %v3303_v15 = vand.u32 2147483647, %v3188_v52  ;;  %vm3299_vm13 = vweird.f32 %v3188_v52 }
 0x59d   :  { %v3306_v31 = vor.u32 1.1754944e-38, %v3305_v53  ;;  %vm3304_vm0 = vcmp.eq.f32.partialorder %v3303_v15, 8.507059e+37 }
 0x5a1   :  { %v3399_v62 = vpop.eup %3398 }
 0x5a2   :  { %v3295_v2 = vmul.f32 %v3399_v62, %v3188_v52  ;;  %vm3300_vm7 = vweird.f32 %v3399_v62 }
 0x5a3   :  { %vm3301_vm15 = vmor %vm3299_vm13, %vm3300_vm7 }
 0x5a4   :  { %v3296_v6 = vsub.f32 1.0, %v3295_v2 }
 0x5a6   :  { %v3297_v11 = vmul.f32 %v3399_v62, %v3296_v6 }
 0x5a8   :  { %v3298_v28 = vadd.f32 %v3399_v62, %v3297_v11 }
 0x5aa   :  { %v3302_v22 = vsel %vm3301_vm15, %v3399_v62, %v3298_v28 }
 0x5ab   :  { %v3307_v33 = vsel %vm3304_vm0, %v3306_v31, %v3302_v22 }
 0x5ac   :  { %v3322_v34 = vrot.slane %v3307_v33, 2 }
 0x5ae   :  { %v3330_v38 = vsel %vm3325_vm12, %v3321_v29, %v3322_v34 }
 0x5af   :  { %v3331_v39 = vsel %vm3327_vm14, %v3329_v37, %v3330_v38 }
 0x5b0   :  { %3335 = vst [vmem:[%s3896_s6 + $0x8] sm:$0xff] %v3331_v39 }
 0x5b1   :  { %3344 = vsyncpa [#allocation3], 1 }
 0x5b2   :  { %3345 = vsyncpa [#allocation5], 1 }

</bundles_post_ra>
